<compile_context>
chip_gen: v6e
topology: v6e:2x2x1
jax: 0.10.0
libtpu: 0.0.40
codegen_flags: <defaults>
</compile_context>

<pallas_src>
import jax
import jax.numpy as jnp
from jax import lax
from jax.experimental import pallas as pl
from jax.experimental.pallas import tpu as pltpu

NUM_CLASSES = 5            # replaces 91 (FastRCNNPredictor(num_classes) path)
C1, C2, CM = 8, 16, 8      # backbone / mask-head channels
BOX_HID = 64               # logical box-head width
HID_PAD = 128              # lane-dense padded hidden width
HEAD_N = 128               # lane-dense padded width for cls(5)+bbox(20) / mask(5)
R_PROPOSALS = 4            # fixed proposals per image (RPN+NMS not translatable)
MASK_RES = 16
IMG = 32                   # input image height/width
FLAT_DIM = 8 * 8 * C2      # 1024 flattened conv2 features
FC_ROWS = FLAT_DIM + 2 * HID_PAD   # fc1 | fc2 | head rows of the fc weight bank


# ----------------------------------------------------------------------------
# Fused kernel: one image per grid step (grid=(B,), "parallel")
# ----------------------------------------------------------------------------
def _maskrcnn_kernel(xs_ref, w1_ref, w2_ref, wm_ref, wmp_ref, fc_ref, bias_ref,
                     meta_ref, mask_ref, f1p, f2p):
    """conv1 -> conv2 -> box head -> mask head, fully VMEM-resident.

    xs_ref : (1,16,9,9,3) f32  stride-4 space-to-depth planes of the 36x36
                               zero-padded input image.
    w1_ref : (9,3,C1)  bf16    conv1 per-tap matrices (tap = 3*i + j)
    w2_ref : (9,C1,C2) bf16    conv2 per-tap matrices
    wm_ref : (9,C2,CM) bf16    mask-head 3x3 conv per-tap matrices
    wmp_ref: (CM,128)  bf16    mask predictor 1x1 conv (5 classes, lane-padded)
    fc_ref : (1280,128) bf16   [fc1 (1024 rows) | fc2 (128) | cls+bbox head (128)]
    bias_ref: (8,128)  f32     rows: conv1, conv2, mconv, mpred, fc1, fc2, head, 0
    meta_ref: (1,1,128) f32    [score, label, dx, dy, dw, dh, 0...]
    mask_ref: (1,64,128) f32   lane0 = mask prob (8x8 flat), lane1 = mask > 0.5
    f1p: VMEM (4,9,9,C1) f32   zero-padded conv1 output in stride-2 plane layout
    f2p: VMEM (10,10,C2) f32   zero-padded conv2 output
    """
    f32, bf16 = jnp.float32, jnp.bfloat16

    # ---- conv1: 3x3 stride-2 pad-1 + ReLU, one matmul per tap --------------
    # Output split into 4 output-parity sub-grids so every tap is a contiguous
    # slice of a stride-4 input plane; sub-grids are sublane-concatenated.
    acc1 = jnp.zeros((256, C1), f32)
    for i in range(3):
        for j in range(3):
            parts = []
            for a in range(2):
                for b in range(2):
                    u, v = 2 * a + i, 2 * b + j
                    p = (u % 4) * 4 + (v % 4)
                    sl = xs_ref[0, p, u // 4:u // 4 + 8, v // 4:v // 4 + 8, :]
                    parts.append(sl.reshape(64, 3))
            cat = jnp.concatenate(parts, axis=0).astype(bf16)          # (256, 3)
            acc1 += jnp.dot(cat, w1_ref[3 * i + j], preferred_element_type=f32)
    f1 = jnp.maximum(acc1 + bias_ref[0:1, 0:C1], 0.0)                  # (256, C1)

    # scatter the 4 parity sub-grids into the zero-padded stride-2 plane scratch
    f1p[...] = jnp.zeros((4, 9, 9, C1), f32)
    for a in range(2):
        for b in range(2):
            g = a * 2 + b
            o = f1[g * 64:(g + 1) * 64, :].reshape(8, 8, C1)
            dp = ((a + 1) % 2) * 2 + ((b + 1) % 2)
            r0, c0 = (a + 1) // 2, (b + 1) // 2
            f1p[dp, r0:r0 + 8, c0:c0 + 8, :] = o

    # ---- conv2: 3x3 stride-2 pad-1 + ReLU -> (8,8,C2) -----------------------
    acc2 = jnp.zeros((64, C2), f32)
    for i in range(3):
        for j in range(3):
            p = (i % 2) * 2 + (j % 2)
            sl = f1p[p, i // 2:i // 2 + 8, j // 2:j // 2 + 8, :]       # (8,8,C1)
            acc2 += jnp.dot(sl.reshape(64, C1).astype(bf16), w2_ref[3 * i + j],
                            preferred_element_type=f32)
    f2 = jnp.maximum(acc2 + bias_ref[1:2, 0:C2], 0.0)                  # (64, C2)

    # ---- box head: flatten -> fc1 -> fc2 -> fused (cls|bbox) head ----------
    # Two lane-concats build the (1,1024) flat vector; fc1 is one K=1024 matmul.
    x8 = jnp.concatenate([f2[8 * t:8 * t + 8, :] for t in range(8)], axis=1)  # (8,128)
    flat = jnp.concatenate([x8[k:k + 1, :] for k in range(8)], axis=1)        # (1,1024)
    h = jnp.dot(flat.astype(bf16), fc_ref[0:FLAT_DIM, :],
                preferred_element_type=f32) + bias_ref[4:5, :]
    h = jnp.maximum(h, 0.0)
    h = jnp.dot(h.astype(bf16), fc_ref[FLAT_DIM:FLAT_DIM + HID_PAD, :],
                preferred_element_type=f32) + bias_ref[5:6, :]
    h = jnp.maximum(h, 0.0)
    logits = jnp.dot(h.astype(bf16), fc_ref[FLAT_DIM + HID_PAD:FC_ROWS, :],
                     preferred_element_type=f32) + bias_ref[6:7, :]           # (1,128)

    lane = lax.broadcasted_iota(jnp.int32, (1, HEAD_N), 1).astype(f32)
    cls = jnp.where(lane < NUM_CLASSES, logits, -1e30)
    cmax = jnp.max(cls, axis=-1, keepdims=True)                        # (1,1)
    label = jnp.min(jnp.where(cls >= cmax, lane, 1e9), axis=-1, keepdims=True)
    den = jnp.sum(jnp.exp(cls - cmax), axis=-1, keepdims=True)
    score = pl.reciprocal(den, approx=True)                 # max softmax prob

    # lane-dense meta row: [score, label, 4 box deltas of the argmax class]
    meta = jnp.where(lane == 0.0, score, 0.0) + jnp.where(lane == 1.0, label, 0.0)
    base = NUM_CLASSES + 4.0 * label                                   # (1,1)
    for k in range(4):
        dk = jnp.sum(jnp.where(lane == base + k, logits, 0.0),
                     axis=-1, keepdims=True)
        meta = meta + jnp.where(lane == 2.0 + k, dk, 0.0)
    meta_ref[...] = meta.reshape(1, 1, HEAD_N)

    # ---- mask head: 3x3 s1 conv + ReLU -> 1x1 conv -> sigmoid -> select ----
    f2p[...] = jnp.zeros((10, 10, C2), f32)
    f2p[1:9, 1:9, :] = f2.reshape(8, 8, C2)
    macc = jnp.zeros((64, CM), f32)
    for i in range(3):
        for j in range(3):
            sl = f2p[i:i + 8, j:j + 8, :]                              # (8,8,C2)
            macc += jnp.dot(sl.reshape(64, C2).astype(bf16), wm_ref[3 * i + j],
                            preferred_element_type=f32)
    m = jnp.maximum(macc + bias_ref[2:3, 0:CM], 0.0)                   # (64, CM)
    mlog = jnp.dot(m.astype(bf16), wmp_ref[...],
                   preferred_element_type=f32) + bias_ref[3:4, :]      # (64, 128)
    msig = jax.nn.sigmoid(mlog)

    lane_m = lax.broadcasted_iota(jnp.int32, (64, HEAD_N), 1).astype(f32)
    msel = jnp.sum(jnp.where(lane_m == label, msig, 0.0), axis=-1, keepdims=True)
    mbin = (msel > 0.5).astype(f32)
    mask_out = (jnp.where(lane_m == 0.0, msel, 0.0)
                + jnp.where(lane_m == 1.0, mbin, 0.0))
    mask_ref[...] = mask_out.reshape(1, 64, HEAD_N)


def _fused_forward(xs, pp):
    B = xs.shape[0]
    return pl.pallas_call(
        _maskrcnn_kernel,
        grid=(B,),
        in_specs=[
            pl.BlockSpec((1, 16, 9, 9, 3), lambda i: (i, 0, 0, 0, 0)),
            pl.BlockSpec((9, 3, C1), lambda i: (0, 0, 0)),
            pl.BlockSpec((9, C1, C2), lambda i: (0, 0, 0)),
            pl.BlockSpec((9, C2, CM), lambda i: (0, 0, 0)),
            pl.BlockSpec((CM, HEAD_N), lambda i: (0, 0)),
            pl.BlockSpec((FC_ROWS, HID_PAD), lambda i: (0, 0)),
            pl.BlockSpec((8, 128), lambda i: (0, 0)),
        ],
        out_specs=(
            pl.BlockSpec((1, 1, HEAD_N), lambda i: (i, 0, 0)),
            pl.BlockSpec((1, 64, HEAD_N), lambda i: (i, 0, 0)),
        ),
        out_shape=(
            jax.ShapeDtypeStruct((B, 1, HEAD_N), jnp.float32),   # score|label|deltas
            jax.ShapeDtypeStruct((B, 64, HEAD_N), jnp.float32),  # mask prob | binary
        ),
        scratch_shapes=[
            pltpu.VMEM((4, 9, 9, C1), jnp.float32),
            pltpu.VMEM((10, 10, C2), jnp.float32),
        ],
        # VMEM note (v7x 64 MiB): per-image blocks total <1 MiB, no retiling or
        # vmem_limit_bytes override needed on any generation.
        compiler_params=pltpu.CompilerParams(dimension_semantics=("parallel",)),
    )(xs, pp["conv1_w9"], pp["conv2_w9"], pp["mconv_w9"], pp["mpred_w"],
      pp["fc_bank"], pp["bias_bank"])


# ----------------------------------------------------------------------------
# Parameters (deterministic, synthetic -- no checkpoint loading)
# ----------------------------------------------------------------------------
def init_params(key):
    ks = jax.random.split(key, 8)
    w = lambda k, shape, s=0.05: s * jax.random.normal(k, shape, jnp.float32)
    z = lambda n: jnp.zeros((n,), jnp.float32)
    return {
        "conv1_w": w(ks[0], (3, 3, 3, C1)),   "conv1_b": z(C1),
        "conv2_w": w(ks[1], (3, 3, C1, C2)),  "conv2_b": z(C2),
        "fc1_w":   w(ks[2], (FLAT_DIM, BOX_HID)),        "fc1_b": z(BOX_HID),
        "fc2_w":   w(ks[3], (BOX_HID, BOX_HID)),         "fc2_b": z(BOX_HID),
        "cls_w":   w(ks[4], (BOX_HID, NUM_CLASSES)),     "cls_b": z(NUM_CLASSES),
        "bbox_w":  w(ks[5], (BOX_HID, NUM_CLASSES * 4)), "bbox_b": z(NUM_CLASSES * 4),
        "mconv_w": w(ks[6], (3, 3, C2, CM)),  "mconv_b": z(CM),
        "mpred_w": w(ks[7], (1, 1, CM, NUM_CLASSES)),    "mpred_b": z(NUM_CLASSES),
        # fixed proposal boxes (x1,y1,x2,y2) in 32x32 image coords
        "proposals": jnp.array([[2., 2., 14., 14.],
                                [16., 2., 30., 14.],
                                [2., 16., 14., 30.],
                                [8., 8., 24., 24.]], jnp.float32),
    }


def prepare_params(p):
    """One-time weight prep (outside the forward): bf16 per-tap conv matrices,
    box head padded to 128 lanes and packed into one (1280,128) bank, all
    biases packed into one (8,128) f32 bank, fc1 rows permuted to the kernel's
    flatten order."""
    f32 = lambda a: a.astype(jnp.float32)
    bf16 = lambda a: a.astype(jnp.bfloat16)
    padH = HID_PAD - BOX_HID

    # fc1: pad hidden 64->128; permute rows from natural order
    # n = pixel*C2 + c (pixel = 8*t + k) to kernel order m = k*128 + t*C2 + c.
    fc1_w = jnp.pad(f32(p["fc1_w"]), ((0, 0), (0, padH)))               # (1024,128)
    fc1_w = fc1_w.reshape(8, 8, C2, HID_PAD).transpose(1, 0, 2, 3).reshape(FLAT_DIM, HID_PAD)
    fc2_w = jnp.pad(f32(p["fc2_w"]), ((0, padH), (0, padH)))            # (128,128)
    head_w = jnp.concatenate([f32(p["cls_w"]), f32(p["bbox_w"])], axis=1)  # (64,25)
    head_w = jnp.pad(head_w, ((0, padH), (0, HEAD_N - head_w.shape[1])))   # (128,128)
    fc_bank = bf16(jnp.concatenate([fc1_w, fc2_w, head_w], axis=0))        # (1280,128)

    pad128 = lambda v: jnp.pad(f32(v), (0, 128 - v.shape[0]))
    head_b = jnp.concatenate([f32(p["cls_b"]), f32(p["bbox_b"])])          # (25,)
    bias_bank = jnp.stack([
        pad128(p["conv1_b"]), pad128(p["conv2_b"]), pad128(p["mconv_b"]),
        pad128(p["mpred_b"]), pad128(p["fc1_b"]), pad128(p["fc2_b"]),
        pad128(head_b), jnp.zeros((128,), jnp.float32)], axis=0)           # (8,128)

    mpred_w = f32(p["mpred_w"]).reshape(CM, NUM_CLASSES)
    mpred_w = jnp.pad(mpred_w, ((0, 0), (0, HEAD_N - NUM_CLASSES)))        # (8,128)

    return {
        "conv1_w9": bf16(f32(p["conv1_w"]).reshape(9, 3, C1)),
        "conv2_w9": bf16(f32(p["conv2_w"]).reshape(9, C1, C2)),
        "mconv_w9": bf16(f32(p["mconv_w"]).reshape(9, C2, CM)),
        "mpred_w":  bf16(mpred_w),
        "fc_bank":  fc_bank,
        "bias_bank": bias_bank,
        "proposals": f32(p["proposals"]),
    }


# ----------------------------------------------------------------------------
# Forward (eval branch of MaskRCNNModel.forward)
# ----------------------------------------------------------------------------
@jax.jit
def _forward_jit(pp, images_nchw):
    B = images_nchw.shape[0]
    x = jnp.transpose(images_nchw, (0, 2, 3, 1)).astype(jnp.float32)    # NCHW->NHWC

    # stride-4 space-to-depth planes of the zero-padded input (same byte count
    # as the input; every conv1 tap of every output-parity sub-grid becomes a
    # contiguous VMEM slice inside the kernel).
    xp = jnp.pad(x, ((0, 0), (1, 3), (1, 3), (0, 0)))                   # (B,36,36,3)
    xs = xp.reshape(B, 9, 4, 9, 4, 3).transpose(0, 2, 4, 1, 3, 5).reshape(B, 16, 9, 9, 3)

    # TODO(synk): RPN proposal generation + NMS + RoIAlign have no clean Pallas
    # equivalent; fixed proposals all share the whole per-image feature map, so
    # the box/mask heads run once per image and are broadcast over R proposals.
    meta, mask = _fused_forward(xs, pp)

    scores = meta[:, 0, 0]                                              # (B,)
    # TODO(synk): int64 labels need jax_enable_x64; int32 used instead.
    labels = meta[:, 0, 1].astype(jnp.int32)                            # (B,)
    deltas = meta[:, 0, 2:6]                                            # (B,4)
    boxes = pp["proposals"][None, :, :] + deltas[:, None, :]            # (B,R,4)

    # TODO(synk): ConvTranspose2d upsampling replaced by nearest-neighbor 2x;
    # the 1x1-conv/sigmoid/select/threshold are pointwise, so applying them at
    # 8x8 in-kernel and upsampling afterwards is exactly equivalent.
    m8p = mask[:, :, 0].reshape(B, 8, 8)
    m8b = mask[:, :, 1].reshape(B, 8, 8)
    up = lambda m: jnp.repeat(jnp.repeat(m, 2, axis=1), 2, axis=2)      # (B,16,16)
    m16p, m16b = up(m8p), up(m8b)

    R = R_PROPOSALS
    pred_masks, ious, outputs = [], [], []
    for b in range(B):   # unrolled at trace time -> no per-image host dispatch
        pred_masks.append(jnp.broadcast_to(m16p[b], (R, MASK_RES, MASK_RES)))
        ious.append(jnp.broadcast_to(scores[b], (R,)))
        outputs.append({
            "masks": jnp.broadcast_to(m16b[b], (R, MASK_RES, MASK_RES)).astype(jnp.uint8),
            "scores": jnp.broadcast_to(scores[b], (R,)),
            "labels": jnp.broadcast_to(labels[b], (R,)),
            "boxes": boxes[b],
        })
    return pred_masks, ious, outputs


def maskrcnn_forward(prepped, images_nchw, targets):
    # TODO(synk): training branch (loss_dict) of the wrapper is not implemented.
    # R_PROPOSALS > 0 always, so the wrapper's empty-prediction fallback onto
    # `targets` is unreachable; targets are unused in eval.
    del targets
    pred_masks, ious, outputs = _forward_jit(prepped, images_nchw)
    return None, list(pred_masks), list(ious), list(outputs)


# ----------------------------------------------------------------------------
if __name__ == "__main__":
    key = jax.random.PRNGKey(0)
    k_img, k_param = jax.random.split(key, 2)

    B = 2
    images = jax.random.normal(k_img, (B, 3, IMG, IMG), jnp.float32)   # NCHW like PyTorch

    # dummy targets (only used by the wrapper's empty-prediction fallback)
    targets = []
    for _ in range(B):
        targets.append({
            "labels": jnp.array([1, 2], jnp.int32),
            "boxes": jnp.array([[1., 1., 10., 10.], [5., 5., 20., 20.]], jnp.float32),
            "masks": jnp.zeros((2, IMG, IMG), jnp.uint8),
        })

    params = init_params(k_param)
    prepped = prepare_params(params)           # one-time weight prep
    loss_dict, pred_masks, ious, outputs = maskrcnn_forward(prepped, images, targets)

    for pm, iou, out in zip(pred_masks, ious, outputs):
        jax.block_until_ready(pm)
        jax.block_until_ready(iou)
        for k in ("masks", "scores", "labels", "boxes"):
            jax.block_until_ready(out[k])

    assert loss_dict is None
    assert pred_masks[0].shape == (R_PROPOSALS, MASK_RES, MASK_RES)
    assert outputs[0]["masks"].dtype == jnp.uint8
    assert outputs[0]["boxes"].shape == (R_PROPOSALS, 4)
    print("KERNEL_OK")
</pallas_src>

<mosaic_0001>
module attributes {stable_mosaic.version = 11 : i64} {
  func.func @_maskrcnn_kernel(%arg0: i32, %arg1: memref<1x16x9x9x3xf32, #tpu.memory_space<vmem>>, %arg2: memref<9x3x8xbf16, #tpu.memory_space<vmem>>, %arg3: memref<9x8x16xbf16, #tpu.memory_space<vmem>>, %arg4: memref<9x16x8xbf16, #tpu.memory_space<vmem>>, %arg5: memref<8x128xbf16, #tpu.memory_space<vmem>>, %arg6: memref<1280x128xbf16, #tpu.memory_space<vmem>>, %arg7: memref<8x128xf32, #tpu.memory_space<vmem>>, %arg8: memref<1x1x128xf32, #tpu.memory_space<vmem>>, %arg9: memref<1x64x128xf32, #tpu.memory_space<vmem>>, %arg10: memref<4x9x9x8xf32, #tpu.memory_space<vmem>>, %arg11: memref<10x10x16xf32, #tpu.memory_space<vmem>>) attributes {dimension_semantics = [#tpu.dimension_semantics<parallel>], iteration_bounds = array<i64: 2>, scalar_prefetch = 0 : i64, scratch_operands = 2 : i64, tpu.core_type = #tpu.core_type<tc>, window_params = [{transform_indices = @transform_0, window_bounds = array<i64: 1, 16, 9, 9, 3>}, {pipeline_mode = #tpu.pipeline_mode<synchronous>, transform_indices = @transform_1, window_bounds = array<i64: 9, 3, 8>}, {pipeline_mode = #tpu.pipeline_mode<synchronous>, transform_indices = @transform_2, window_bounds = array<i64: 9, 8, 16>}, {pipeline_mode = #tpu.pipeline_mode<synchronous>, transform_indices = @transform_3, window_bounds = array<i64: 9, 16, 8>}, {pipeline_mode = #tpu.pipeline_mode<synchronous>, transform_indices = @transform_4, window_bounds = array<i64: 8, 128>}, {pipeline_mode = #tpu.pipeline_mode<synchronous>, transform_indices = @transform_5, window_bounds = array<i64: 1280, 128>}, {pipeline_mode = #tpu.pipeline_mode<synchronous>, transform_indices = @transform_6, window_bounds = array<i64: 8, 128>}, {transform_indices = @transform_7, window_bounds = array<i64: 1, 1, 128>}, {transform_indices = @transform_8, window_bounds = array<i64: 1, 64, 128>}]} {
    %cst = arith.constant 0.000000e+00 : f32
    %0 = vector.broadcast %cst : f32 to vector<256x8xf32>
    %c0 = arith.constant 0 : index
    %c0_0 = arith.constant 0 : index
    %c0_1 = arith.constant 0 : index
    %c0_2 = arith.constant 0 : index
    %c0_3 = arith.constant 0 : index
    %1 = vector.load %arg1[%c0, %c0_0, %c0_1, %c0_2, %c0_3] : memref<1x16x9x9x3xf32, #tpu.memory_space<vmem>>, vector<1x1x8x8x3xf32>
    %2 = vector.shape_cast %1 : vector<1x1x8x8x3xf32> to vector<8x8x3xf32>
    %3 = vector.shape_cast %2 : vector<8x8x3xf32> to vector<64x3xf32>
    %c0_4 = arith.constant 0 : index
    %c2 = arith.constant 2 : index
    %c0_5 = arith.constant 0 : index
    %c0_6 = arith.constant 0 : index
    %c0_7 = arith.constant 0 : index
    %4 = vector.load %arg1[%c0_4, %c2, %c0_5, %c0_6, %c0_7] : memref<1x16x9x9x3xf32, #tpu.memory_space<vmem>>, vector<1x1x8x8x3xf32>
    %5 = vector.shape_cast %4 : vector<1x1x8x8x3xf32> to vector<8x8x3xf32>
    %6 = vector.shape_cast %5 : vector<8x8x3xf32> to vector<64x3xf32>
    %c0_8 = arith.constant 0 : index
    %c8 = arith.constant 8 : index
    %c0_9 = arith.constant 0 : index
    %c0_10 = arith.constant 0 : index
    %c0_11 = arith.constant 0 : index
    %7 = vector.load %arg1[%c0_8, %c8, %c0_9, %c0_10, %c0_11] : memref<1x16x9x9x3xf32, #tpu.memory_space<vmem>>, vector<1x1x8x8x3xf32>
    %8 = vector.shape_cast %7 : vector<1x1x8x8x3xf32> to vector<8x8x3xf32>
    %9 = vector.shape_cast %8 : vector<8x8x3xf32> to vector<64x3xf32>
    %c0_12 = arith.constant 0 : index
    %c10 = arith.constant 10 : index
    %c0_13 = arith.constant 0 : index
    %c0_14 = arith.constant 0 : index
    %c0_15 = arith.constant 0 : index
    %10 = vector.load %arg1[%c0_12, %c10, %c0_13, %c0_14, %c0_15] : memref<1x16x9x9x3xf32, #tpu.memory_space<vmem>>, vector<1x1x8x8x3xf32>
    %11 = vector.shape_cast %10 : vector<1x1x8x8x3xf32> to vector<8x8x3xf32>
    %12 = vector.shape_cast %11 : vector<8x8x3xf32> to vector<64x3xf32>
    %13 = tpu.concatenate %3, %6, %9, %12 in 0 : vector<64x3xf32>, vector<64x3xf32>, vector<64x3xf32>, vector<64x3xf32> -> vector<256x3xf32>
    %14 = arith.truncf %13 : vector<256x3xf32> to vector<256x3xbf16>
    %c0_16 = arith.constant 0 : index
    %c0_17 = arith.constant 0 : index
    %c0_18 = arith.constant 0 : index
    %15 = vector.load %arg2[%c0_16, %c0_17, %c0_18] : memref<9x3x8xbf16, #tpu.memory_space<vmem>>, vector<1x3x8xbf16>
    %16 = vector.shape_cast %15 : vector<1x3x8xbf16> to vector<3x8xbf16>
    %cst_19 = arith.constant dense<0.000000e+00> : vector<256x8xf32>
    %17 = tpu.matmul %14, %16, %cst_19 {dimension_numbers = #tpu.dot_dimension_numbers<[1], [0], [0], [1], [0, 0, 1, 1], [], []>} : vector<256x3xbf16>, vector<3x8xbf16>, vector<256x8xf32> -> vector<256x8xf32>
    %18 = arith.addf %0, %17 : vector<256x8xf32>
    %c0_20 = arith.constant 0 : index
    %c1 = arith.constant 1 : index
    %c0_21 = arith.constant 0 : index
    %c0_22 = arith.constant 0 : index
    %c0_23 = arith.constant 0 : index
    %19 = vector.load %arg1[%c0_20, %c1, %c0_21, %c0_22, %c0_23] : memref<1x16x9x9x3xf32, #tpu.memory_space<vmem>>, vector<1x1x8x8x3xf32>
    %20 = vector.shape_cast %19 : vector<1x1x8x8x3xf32> to vector<8x8x3xf32>
    %21 = vector.shape_cast %20 : vector<8x8x3xf32> to vector<64x3xf32>
    %c0_24 = arith.constant 0 : index
    %c3 = arith.constant 3 : index
    %c0_25 = arith.constant 0 : index
    %c0_26 = arith.constant 0 : index
    %c0_27 = arith.constant 0 : index
    %22 = vector.load %arg1[%c0_24, %c3, %c0_25, %c0_26, %c0_27] : memref<1x16x9x9x3xf32, #tpu.memory_space<vmem>>, vector<1x1x8x8x3xf32>
    %23 = vector.shape_cast %22 : vector<1x1x8x8x3xf32> to vector<8x8x3xf32>
    %24 = vector.shape_cast %23 : vector<8x8x3xf32> to vector<64x3xf32>
    %c0_28 = arith.constant 0 : index
    %c9 = arith.constant 9 : index
    %c0_29 = arith.constant 0 : index
    %c0_30 = arith.constant 0 : index
    %c0_31 = arith.constant 0 : index
    %25 = vector.load %arg1[%c0_28, %c9, %c0_29, %c0_30, %c0_31] : memref<1x16x9x9x3xf32, #tpu.memory_space<vmem>>, vector<1x1x8x8x3xf32>
    %26 = vector.shape_cast %25 : vector<1x1x8x8x3xf32> to vector<8x8x3xf32>
    %27 = vector.shape_cast %26 : vector<8x8x3xf32> to vector<64x3xf32>
    %c0_32 = arith.constant 0 : index
    %c11 = arith.constant 11 : index
    %c0_33 = arith.constant 0 : index
    %c0_34 = arith.constant 0 : index
    %c0_35 = arith.constant 0 : index
    %28 = vector.load %arg1[%c0_32, %c11, %c0_33, %c0_34, %c0_35] : memref<1x16x9x9x3xf32, #tpu.memory_space<vmem>>, vector<1x1x8x8x3xf32>
    %29 = vector.shape_cast %28 : vector<1x1x8x8x3xf32> to vector<8x8x3xf32>
    %30 = vector.shape_cast %29 : vector<8x8x3xf32> to vector<64x3xf32>
    %31 = tpu.concatenate %21, %24, %27, %30 in 0 : vector<64x3xf32>, vector<64x3xf32>, vector<64x3xf32>, vector<64x3xf32> -> vector<256x3xf32>
    %32 = arith.truncf %31 : vector<256x3xf32> to vector<256x3xbf16>
    %c1_36 = arith.constant 1 : index
    %c0_37 = arith.constant 0 : index
    %c0_38 = arith.constant 0 : index
    %33 = vector.load %arg2[%c1_36, %c0_37, %c0_38] : memref<9x3x8xbf16, #tpu.memory_space<vmem>>, vector<1x3x8xbf16>
    %34 = vector.shape_cast %33 : vector<1x3x8xbf16> to vector<3x8xbf16>
    %cst_39 = arith.constant dense<0.000000e+00> : vector<256x8xf32>
    %35 = tpu.matmul %32, %34, %cst_39 {dimension_numbers = #tpu.dot_dimension_numbers<[1], [0], [0], [1], [0, 0, 1, 1], [], []>} : vector<256x3xbf16>, vector<3x8xbf16>, vector<256x8xf32> -> vector<256x8xf32>
    %36 = arith.addf %18, %35 : vector<256x8xf32>
    %c0_40 = arith.constant 0 : index
    %c2_41 = arith.constant 2 : index
    %c0_42 = arith.constant 0 : index
    %c0_43 = arith.constant 0 : index
    %c0_44 = arith.constant 0 : index
    %37 = vector.load %arg1[%c0_40, %c2_41, %c0_42, %c0_43, %c0_44] : memref<1x16x9x9x3xf32, #tpu.memory_space<vmem>>, vector<1x1x8x8x3xf32>
    %38 = vector.shape_cast %37 : vector<1x1x8x8x3xf32> to vector<8x8x3xf32>
    %39 = vector.shape_cast %38 : vector<8x8x3xf32> to vector<64x3xf32>
    %c0_45 = arith.constant 0 : index
    %c0_46 = arith.constant 0 : index
    %c0_47 = arith.constant 0 : index
    %c1_48 = arith.constant 1 : index
    %c0_49 = arith.constant 0 : index
    %40 = vector.load %arg1[%c0_45, %c0_46, %c0_47, %c1_48, %c0_49] : memref<1x16x9x9x3xf32, #tpu.memory_space<vmem>>, vector<1x1x8x8x3xf32>
    %41 = vector.shape_cast %40 : vector<1x1x8x8x3xf32> to vector<8x8x3xf32>
    %42 = vector.shape_cast %41 : vector<8x8x3xf32> to vector<64x3xf32>
    %c0_50 = arith.constant 0 : index
    %c10_51 = arith.constant 10 : index
    %c0_52 = arith.constant 0 : index
    %c0_53 = arith.constant 0 : index
    %c0_54 = arith.constant 0 : index
    %43 = vector.load %arg1[%c0_50, %c10_51, %c0_52, %c0_53, %c0_54] : memref<1x16x9x9x3xf32, #tpu.memory_space<vmem>>, vector<1x1x8x8x3xf32>
    %44 = vector.shape_cast %43 : vector<1x1x8x8x3xf32> to vector<8x8x3xf32>
    %45 = vector.shape_cast %44 : vector<8x8x3xf32> to vector<64x3xf32>
    %c0_55 = arith.constant 0 : index
    %c8_56 = arith.constant 8 : index
    %c0_57 = arith.constant 0 : index
    %c1_58 = arith.constant 1 : index
    %c0_59 = arith.constant 0 : index
    %46 = vector.load %arg1[%c0_55, %c8_56, %c0_57, %c1_58, %c0_59] : memref<1x16x9x9x3xf32, #tpu.memory_space<vmem>>, vector<1x1x8x8x3xf32>
    %47 = vector.shape_cast %46 : vector<1x1x8x8x3xf32> to vector<8x8x3xf32>
    %48 = vector.shape_cast %47 : vector<8x8x3xf32> to vector<64x3xf32>
    %49 = tpu.concatenate %39, %42, %45, %48 in 0 : vector<64x3xf32>, vector<64x3xf32>, vector<64x3xf32>, vector<64x3xf32> -> vector<256x3xf32>
    %50 = arith.truncf %49 : vector<256x3xf32> to vector<256x3xbf16>
    %c2_60 = arith.constant 2 : index
    %c0_61 = arith.constant 0 : index
    %c0_62 = arith.constant 0 : index
    %51 = vector.load %arg2[%c2_60, %c0_61, %c0_62] : memref<9x3x8xbf16, #tpu.memory_space<vmem>>, vector<1x3x8xbf16>
    %52 = vector.shape_cast %51 : vector<1x3x8xbf16> to vector<3x8xbf16>
    %cst_63 = arith.constant dense<0.000000e+00> : vector<256x8xf32>
    %53 = tpu.matmul %50, %52, %cst_63 {dimension_numbers = #tpu.dot_dimension_numbers<[1], [0], [0], [1], [0, 0, 1, 1], [], []>} : vector<256x3xbf16>, vector<3x8xbf16>, vector<256x8xf32> -> vector<256x8xf32>
    %54 = arith.addf %36, %53 : vector<256x8xf32>
    %c0_64 = arith.constant 0 : index
    %c4 = arith.constant 4 : index
    %c0_65 = arith.constant 0 : index
    %c0_66 = arith.constant 0 : index
    %c0_67 = arith.constant 0 : index
    %55 = vector.load %arg1[%c0_64, %c4, %c0_65, %c0_66, %c0_67] : memref<1x16x9x9x3xf32, #tpu.memory_space<vmem>>, vector<1x1x8x8x3xf32>
    %56 = vector.shape_cast %55 : vector<1x1x8x8x3xf32> to vector<8x8x3xf32>
    %57 = vector.shape_cast %56 : vector<8x8x3xf32> to vector<64x3xf32>
    %c0_68 = arith.constant 0 : index
    %c6 = arith.constant 6 : index
    %c0_69 = arith.constant 0 : index
    %c0_70 = arith.constant 0 : index
    %c0_71 = arith.constant 0 : index
    %58 = vector.load %arg1[%c0_68, %c6, %c0_69, %c0_70, %c0_71] : memref<1x16x9x9x3xf32, #tpu.memory_space<vmem>>, vector<1x1x8x8x3xf32>
    %59 = vector.shape_cast %58 : vector<1x1x8x8x3xf32> to vector<8x8x3xf32>
    %60 = vector.shape_cast %59 : vector<8x8x3xf32> to vector<64x3xf32>
    %c0_72 = arith.constant 0 : index
    %c12 = arith.constant 12 : index
    %c0_73 = arith.constant 0 : index
    %c0_74 = arith.constant 0 : index
    %c0_75 = arith.constant 0 : index
    %61 = vector.load %arg1[%c0_72, %c12, %c0_73, %c0_74, %c0_75] : memref<1x16x9x9x3xf32, #tpu.memory_space<vmem>>, vector<1x1x8x8x3xf32>
    %62 = vector.shape_cast %61 : vector<1x1x8x8x3xf32> to vector<8x8x3xf32>
    %63 = vector.shape_cast %62 : vector<8x8x3xf32> to vector<64x3xf32>
    %c0_76 = arith.constant 0 : index
    %c14 = arith.constant 14 : index
    %c0_77 = arith.constant 0 : index
    %c0_78 = arith.constant 0 : index
    %c0_79 = arith.constant 0 : index
    %64 = vector.load %arg1[%c0_76, %c14, %c0_77, %c0_78, %c0_79] : memref<1x16x9x9x3xf32, #tpu.memory_space<vmem>>, vector<1x1x8x8x3xf32>
    %65 = vector.shape_cast %64 : vector<1x1x8x8x3xf32> to vector<8x8x3xf32>
    %66 = vector.shape_cast %65 : vector<8x8x3xf32> to vector<64x3xf32>
    %67 = tpu.concatenate %57, %60, %63, %66 in 0 : vector<64x3xf32>, vector<64x3xf32>, vector<64x3xf32>, vector<64x3xf32> -> vector<256x3xf32>
    %68 = arith.truncf %67 : vector<256x3xf32> to vector<256x3xbf16>
    %c3_80 = arith.constant 3 : index
    %c0_81 = arith.constant 0 : index
    %c0_82 = arith.constant 0 : index
    %69 = vector.load %arg2[%c3_80, %c0_81, %c0_82] : memref<9x3x8xbf16, #tpu.memory_space<vmem>>, vector<1x3x8xbf16>
    %70 = vector.shape_cast %69 : vector<1x3x8xbf16> to vector<3x8xbf16>
    %cst_83 = arith.constant dense<0.000000e+00> : vector<256x8xf32>
    %71 = tpu.matmul %68, %70, %cst_83 {dimension_numbers = #tpu.dot_dimension_numbers<[1], [0], [0], [1], [0, 0, 1, 1], [], []>} : vector<256x3xbf16>, vector<3x8xbf16>, vector<256x8xf32> -> vector<256x8xf32>
    %72 = arith.addf %54, %71 : vector<256x8xf32>
    %c0_84 = arith.constant 0 : index
    %c5 = arith.constant 5 : index
    %c0_85 = arith.constant 0 : index
    %c0_86 = arith.constant 0 : index
    %c0_87 = arith.constant 0 : index
    %73 = vector.load %arg1[%c0_84, %c5, %c0_85, %c0_86, %c0_87] : memref<1x16x9x9x3xf32, #tpu.memory_space<vmem>>, vector<1x1x8x8x3xf32>
    %74 = vector.shape_cast %73 : vector<1x1x8x8x3xf32> to vector<8x8x3xf32>
    %75 = vector.shape_cast %74 : vector<8x8x3xf32> to vector<64x3xf32>
    %c0_88 = arith.constant 0 : index
    %c7 = arith.constant 7 : index
    %c0_89 = arith.constant 0 : index
    %c0_90 = arith.constant 0 : index
    %c0_91 = arith.constant 0 : index
    %76 = vector.load %arg1[%c0_88, %c7, %c0_89, %c0_90, %c0_91] : memref<1x16x9x9x3xf32, #tpu.memory_space<vmem>>, vector<1x1x8x8x3xf32>
    %77 = vector.shape_cast %76 : vector<1x1x8x8x3xf32> to vector<8x8x3xf32>
    %78 = vector.shape_cast %77 : vector<8x8x3xf32> to vector<64x3xf32>
    %c0_92 = arith.constant 0 : index
    %c13 = arith.constant 13 : index
    %c0_93 = arith.constant 0 : index
    %c0_94 = arith.constant 0 : index
    %c0_95 = arith.constant 0 : index
    %79 = vector.load %arg1[%c0_92, %c13, %c0_93, %c0_94, %c0_95] : memref<1x16x9x9x3xf32, #tpu.memory_space<vmem>>, vector<1x1x8x8x3xf32>
    %80 = vector.shape_cast %79 : vector<1x1x8x8x3xf32> to vector<8x8x3xf32>
    %81 = vector.shape_cast %80 : vector<8x8x3xf32> to vector<64x3xf32>
    %c0_96 = arith.constant 0 : index
    %c15 = arith.constant 15 : index
    %c0_97 = arith.constant 0 : index
    %c0_98 = arith.constant 0 : index
    %c0_99 = arith.constant 0 : index
    %82 = vector.load %arg1[%c0_96, %c15, %c0_97, %c0_98, %c0_99] : memref<1x16x9x9x3xf32, #tpu.memory_space<vmem>>, vector<1x1x8x8x3xf32>
    %83 = vector.shape_cast %82 : vector<1x1x8x8x3xf32> to vector<8x8x3xf32>
    %84 = vector.shape_cast %83 : vector<8x8x3xf32> to vector<64x3xf32>
    %85 = tpu.concatenate %75, %78, %81, %84 in 0 : vector<64x3xf32>, vector<64x3xf32>, vector<64x3xf32>, vector<64x3xf32> -> vector<256x3xf32>
    %86 = arith.truncf %85 : vector<256x3xf32> to vector<256x3xbf16>
    %c4_100 = arith.constant 4 : index
    %c0_101 = arith.constant 0 : index
    %c0_102 = arith.constant 0 : index
    %87 = vector.load %arg2[%c4_100, %c0_101, %c0_102] : memref<9x3x8xbf16, #tpu.memory_space<vmem>>, vector<1x3x8xbf16>
    %88 = vector.shape_cast %87 : vector<1x3x8xbf16> to vector<3x8xbf16>
    %cst_103 = arith.constant dense<0.000000e+00> : vector<256x8xf32>
    %89 = tpu.matmul %86, %88, %cst_103 {dimension_numbers = #tpu.dot_dimension_numbers<[1], [0], [0], [1], [0, 0, 1, 1], [], []>} : vector<256x3xbf16>, vector<3x8xbf16>, vector<256x8xf32> -> vector<256x8xf32>
    %90 = arith.addf %72, %89 : vector<256x8xf32>
    %c0_104 = arith.constant 0 : index
    %c6_105 = arith.constant 6 : index
    %c0_106 = arith.constant 0 : index
    %c0_107 = arith.constant 0 : index
    %c0_108 = arith.constant 0 : index
    %91 = vector.load %arg1[%c0_104, %c6_105, %c0_106, %c0_107, %c0_108] : memref<1x16x9x9x3xf32, #tpu.memory_space<vmem>>, vector<1x1x8x8x3xf32>
    %92 = vector.shape_cast %91 : vector<1x1x8x8x3xf32> to vector<8x8x3xf32>
    %93 = vector.shape_cast %92 : vector<8x8x3xf32> to vector<64x3xf32>
    %c0_109 = arith.constant 0 : index
    %c4_110 = arith.constant 4 : index
    %c0_111 = arith.constant 0 : index
    %c1_112 = arith.constant 1 : index
    %c0_113 = arith.constant 0 : index
    %94 = vector.load %arg1[%c0_109, %c4_110, %c0_111, %c1_112, %c0_113] : memref<1x16x9x9x3xf32, #tpu.memory_space<vmem>>, vector<1x1x8x8x3xf32>
    %95 = vector.shape_cast %94 : vector<1x1x8x8x3xf32> to vector<8x8x3xf32>
    %96 = vector.shape_cast %95 : vector<8x8x3xf32> to vector<64x3xf32>
    %c0_114 = arith.constant 0 : index
    %c14_115 = arith.constant 14 : index
    %c0_116 = arith.constant 0 : index
    %c0_117 = arith.constant 0 : index
    %c0_118 = arith.constant 0 : index
    %97 = vector.load %arg1[%c0_114, %c14_115, %c0_116, %c0_117, %c0_118] : memref<1x16x9x9x3xf32, #tpu.memory_space<vmem>>, vector<1x1x8x8x3xf32>
    %98 = vector.shape_cast %97 : vector<1x1x8x8x3xf32> to vector<8x8x3xf32>
    %99 = vector.shape_cast %98 : vector<8x8x3xf32> to vector<64x3xf32>
    %c0_119 = arith.constant 0 : index
    %c12_120 = arith.constant 12 : index
    %c0_121 = arith.constant 0 : index
    %c1_122 = arith.constant 1 : index
    %c0_123 = arith.constant 0 : index
    %100 = vector.load %arg1[%c0_119, %c12_120, %c0_121, %c1_122, %c0_123] : memref<1x16x9x9x3xf32, #tpu.memory_space<vmem>>, vector<1x1x8x8x3xf32>
    %101 = vector.shape_cast %100 : vector<1x1x8x8x3xf32> to vector<8x8x3xf32>
    %102 = vector.shape_cast %101 : vector<8x8x3xf32> to vector<64x3xf32>
    %103 = tpu.concatenate %93, %96, %99, %102 in 0 : vector<64x3xf32>, vector<64x3xf32>, vector<64x3xf32>, vector<64x3xf32> -> vector<256x3xf32>
    %104 = arith.truncf %103 : vector<256x3xf32> to vector<256x3xbf16>
    %c5_124 = arith.constant 5 : index
    %c0_125 = arith.constant 0 : index
    %c0_126 = arith.constant 0 : index
    %105 = vector.load %arg2[%c5_124, %c0_125, %c0_126] : memref<9x3x8xbf16, #tpu.memory_space<vmem>>, vector<1x3x8xbf16>
    %106 = vector.shape_cast %105 : vector<1x3x8xbf16> to vector<3x8xbf16>
    %cst_127 = arith.constant dense<0.000000e+00> : vector<256x8xf32>
    %107 = tpu.matmul %104, %106, %cst_127 {dimension_numbers = #tpu.dot_dimension_numbers<[1], [0], [0], [1], [0, 0, 1, 1], [], []>} : vector<256x3xbf16>, vector<3x8xbf16>, vector<256x8xf32> -> vector<256x8xf32>
    %108 = arith.addf %90, %107 : vector<256x8xf32>
    %c0_128 = arith.constant 0 : index
    %c8_129 = arith.constant 8 : index
    %c0_130 = arith.constant 0 : index
    %c0_131 = arith.constant 0 : index
    %c0_132 = arith.constant 0 : index
    %109 = vector.load %arg1[%c0_128, %c8_129, %c0_130, %c0_131, %c0_132] : memref<1x16x9x9x3xf32, #tpu.memory_space<vmem>>, vector<1x1x8x8x3xf32>
    %110 = vector.shape_cast %109 : vector<1x1x8x8x3xf32> to vector<8x8x3xf32>
    %111 = vector.shape_cast %110 : vector<8x8x3xf32> to vector<64x3xf32>
    %c0_133 = arith.constant 0 : index
    %c10_134 = arith.constant 10 : index
    %c0_135 = arith.constant 0 : index
    %c0_136 = arith.constant 0 : index
    %c0_137 = arith.constant 0 : index
    %112 = vector.load %arg1[%c0_133, %c10_134, %c0_135, %c0_136, %c0_137] : memref<1x16x9x9x3xf32, #tpu.memory_space<vmem>>, vector<1x1x8x8x3xf32>
    %113 = vector.shape_cast %112 : vector<1x1x8x8x3xf32> to vector<8x8x3xf32>
    %114 = vector.shape_cast %113 : vector<8x8x3xf32> to vector<64x3xf32>
    %c0_138 = arith.constant 0 : index
    %c0_139 = arith.constant 0 : index
    %c1_140 = arith.constant 1 : index
    %c0_141 = arith.constant 0 : index
    %c0_142 = arith.constant 0 : index
    %115 = vector.load %arg1[%c0_138, %c0_139, %c1_140, %c0_141, %c0_142] : memref<1x16x9x9x3xf32, #tpu.memory_space<vmem>>, vector<1x1x8x8x3xf32>
    %116 = vector.shape_cast %115 : vector<1x1x8x8x3xf32> to vector<8x8x3xf32>
    %117 = vector.shape_cast %116 : vector<8x8x3xf32> to vector<64x3xf32>
    %c0_143 = arith.constant 0 : index
    %c2_144 = arith.constant 2 : index
    %c1_145 = arith.constant 1 : index
    %c0_146 = arith.constant 0 : index
    %c0_147 = arith.constant 0 : index
    %118 = vector.load %arg1[%c0_143, %c2_144, %c1_145, %c0_146, %c0_147] : memref<1x16x9x9x3xf32, #tpu.memory_space<vmem>>, vector<1x1x8x8x3xf32>
    %119 = vector.shape_cast %118 : vector<1x1x8x8x3xf32> to vector<8x8x3xf32>
    %120 = vector.shape_cast %119 : vector<8x8x3xf32> to vector<64x3xf32>
    %121 = tpu.concatenate %111, %114, %117, %120 in 0 : vector<64x3xf32>, vector<64x3xf32>, vector<64x3xf32>, vector<64x3xf32> -> vector<256x3xf32>
    %122 = arith.truncf %121 : vector<256x3xf32> to vector<256x3xbf16>
    %c6_148 = arith.constant 6 : index
    %c0_149 = arith.constant 0 : index
    %c0_150 = arith.constant 0 : index
    %123 = vector.load %arg2[%c6_148, %c0_149, %c0_150] : memref<9x3x8xbf16, #tpu.memory_space<vmem>>, vector<1x3x8xbf16>
    %124 = vector.shape_cast %123 : vector<1x3x8xbf16> to vector<3x8xbf16>
    %cst_151 = arith.constant dense<0.000000e+00> : vector<256x8xf32>
    %125 = tpu.matmul %122, %124, %cst_151 {dimension_numbers = #tpu.dot_dimension_numbers<[1], [0], [0], [1], [0, 0, 1, 1], [], []>} : vector<256x3xbf16>, vector<3x8xbf16>, vector<256x8xf32> -> vector<256x8xf32>
    %126 = arith.addf %108, %125 : vector<256x8xf32>
    %c0_152 = arith.constant 0 : index
    %c9_153 = arith.constant 9 : index
    %c0_154 = arith.constant 0 : index
    %c0_155 = arith.constant 0 : index
    %c0_156 = arith.constant 0 : index
    %127 = vector.load %arg1[%c0_152, %c9_153, %c0_154, %c0_155, %c0_156] : memref<1x16x9x9x3xf32, #tpu.memory_space<vmem>>, vector<1x1x8x8x3xf32>
    %128 = vector.shape_cast %127 : vector<1x1x8x8x3xf32> to vector<8x8x3xf32>
    %129 = vector.shape_cast %128 : vector<8x8x3xf32> to vector<64x3xf32>
    %c0_157 = arith.constant 0 : index
    %c11_158 = arith.constant 11 : index
    %c0_159 = arith.constant 0 : index
    %c0_160 = arith.constant 0 : index
    %c0_161 = arith.constant 0 : index
    %130 = vector.load %arg1[%c0_157, %c11_158, %c0_159, %c0_160, %c0_161] : memref<1x16x9x9x3xf32, #tpu.memory_space<vmem>>, vector<1x1x8x8x3xf32>
    %131 = vector.shape_cast %130 : vector<1x1x8x8x3xf32> to vector<8x8x3xf32>
    %132 = vector.shape_cast %131 : vector<8x8x3xf32> to vector<64x3xf32>
    %c0_162 = arith.constant 0 : index
    %c1_163 = arith.constant 1 : index
    %c1_164 = arith.constant 1 : index
    %c0_165 = arith.constant 0 : index
    %c0_166 = arith.constant 0 : index
    %133 = vector.load %arg1[%c0_162, %c1_163, %c1_164, %c0_165, %c0_166] : memref<1x16x9x9x3xf32, #tpu.memory_space<vmem>>, vector<1x1x8x8x3xf32>
    %134 = vector.shape_cast %133 : vector<1x1x8x8x3xf32> to vector<8x8x3xf32>
    %135 = vector.shape_cast %134 : vector<8x8x3xf32> to vector<64x3xf32>
    %c0_167 = arith.constant 0 : index
    %c3_168 = arith.constant 3 : index
    %c1_169 = arith.constant 1 : index
    %c0_170 = arith.constant 0 : index
    %c0_171 = arith.constant 0 : index
    %136 = vector.load %arg1[%c0_167, %c3_168, %c1_169, %c0_170, %c0_171] : memref<1x16x9x9x3xf32, #tpu.memory_space<vmem>>, vector<1x1x8x8x3xf32>
    %137 = vector.shape_cast %136 : vector<1x1x8x8x3xf32> to vector<8x8x3xf32>
    %138 = vector.shape_cast %137 : vector<8x8x3xf32> to vector<64x3xf32>
    %139 = tpu.concatenate %129, %132, %135, %138 in 0 : vector<64x3xf32>, vector<64x3xf32>, vector<64x3xf32>, vector<64x3xf32> -> vector<256x3xf32>
    %140 = arith.truncf %139 : vector<256x3xf32> to vector<256x3xbf16>
    %c7_172 = arith.constant 7 : index
    %c0_173 = arith.constant 0 : index
    %c0_174 = arith.constant 0 : index
    %141 = vector.load %arg2[%c7_172, %c0_173, %c0_174] : memref<9x3x8xbf16, #tpu.memory_space<vmem>>, vector<1x3x8xbf16>
    %142 = vector.shape_cast %141 : vector<1x3x8xbf16> to vector<3x8xbf16>
    %cst_175 = arith.constant dense<0.000000e+00> : vector<256x8xf32>
    %143 = tpu.matmul %140, %142, %cst_175 {dimension_numbers = #tpu.dot_dimension_numbers<[1], [0], [0], [1], [0, 0, 1, 1], [], []>} : vector<256x3xbf16>, vector<3x8xbf16>, vector<256x8xf32> -> vector<256x8xf32>
    %144 = arith.addf %126, %143 : vector<256x8xf32>
    %c0_176 = arith.constant 0 : index
    %c10_177 = arith.constant 10 : index
    %c0_178 = arith.constant 0 : index
    %c0_179 = arith.constant 0 : index
    %c0_180 = arith.constant 0 : index
    %145 = vector.load %arg1[%c0_176, %c10_177, %c0_178, %c0_179, %c0_180] : memref<1x16x9x9x3xf32, #tpu.memory_space<vmem>>, vector<1x1x8x8x3xf32>
    %146 = vector.shape_cast %145 : vector<1x1x8x8x3xf32> to vector<8x8x3xf32>
    %147 = vector.shape_cast %146 : vector<8x8x3xf32> to vector<64x3xf32>
    %c0_181 = arith.constant 0 : index
    %c8_182 = arith.constant 8 : index
    %c0_183 = arith.constant 0 : index
    %c1_184 = arith.constant 1 : index
    %c0_185 = arith.constant 0 : index
    %148 = vector.load %arg1[%c0_181, %c8_182, %c0_183, %c1_184, %c0_185] : memref<1x16x9x9x3xf32, #tpu.memory_space<vmem>>, vector<1x1x8x8x3xf32>
    %149 = vector.shape_cast %148 : vector<1x1x8x8x3xf32> to vector<8x8x3xf32>
    %150 = vector.shape_cast %149 : vector<8x8x3xf32> to vector<64x3xf32>
    %c0_186 = arith.constant 0 : index
    %c2_187 = arith.constant 2 : index
    %c1_188 = arith.constant 1 : index
    %c0_189 = arith.constant 0 : index
    %c0_190 = arith.constant 0 : index
    %151 = vector.load %arg1[%c0_186, %c2_187, %c1_188, %c0_189, %c0_190] : memref<1x16x9x9x3xf32, #tpu.memory_space<vmem>>, vector<1x1x8x8x3xf32>
    %152 = vector.shape_cast %151 : vector<1x1x8x8x3xf32> to vector<8x8x3xf32>
    %153 = vector.shape_cast %152 : vector<8x8x3xf32> to vector<64x3xf32>
    %c0_191 = arith.constant 0 : index
    %c0_192 = arith.constant 0 : index
    %c1_193 = arith.constant 1 : index
    %c1_194 = arith.constant 1 : index
    %c0_195 = arith.constant 0 : index
    %154 = vector.load %arg1[%c0_191, %c0_192, %c1_193, %c1_194, %c0_195] : memref<1x16x9x9x3xf32, #tpu.memory_space<vmem>>, vector<1x1x8x8x3xf32>
    %155 = vector.shape_cast %154 : vector<1x1x8x8x3xf32> to vector<8x8x3xf32>
    %156 = vector.shape_cast %155 : vector<8x8x3xf32> to vector<64x3xf32>
    %157 = tpu.concatenate %147, %150, %153, %156 in 0 : vector<64x3xf32>, vector<64x3xf32>, vector<64x3xf32>, vector<64x3xf32> -> vector<256x3xf32>
    %158 = arith.truncf %157 : vector<256x3xf32> to vector<256x3xbf16>
    %c8_196 = arith.constant 8 : index
    %c0_197 = arith.constant 0 : index
    %c0_198 = arith.constant 0 : index
    %159 = vector.load %arg2[%c8_196, %c0_197, %c0_198] : memref<9x3x8xbf16, #tpu.memory_space<vmem>>, vector<1x3x8xbf16>
    %160 = vector.shape_cast %159 : vector<1x3x8xbf16> to vector<3x8xbf16>
    %cst_199 = arith.constant dense<0.000000e+00> : vector<256x8xf32>
    %161 = tpu.matmul %158, %160, %cst_199 {dimension_numbers = #tpu.dot_dimension_numbers<[1], [0], [0], [1], [0, 0, 1, 1], [], []>} : vector<256x3xbf16>, vector<3x8xbf16>, vector<256x8xf32> -> vector<256x8xf32>
    %162 = arith.addf %144, %161 : vector<256x8xf32>
    %c0_200 = arith.constant 0 : index
    %c0_201 = arith.constant 0 : index
    %163 = vector.load %arg7[%c0_200, %c0_201] : memref<8x128xf32, #tpu.memory_space<vmem>>, vector<1x8xf32>
    %164 = vector.broadcast %163 : vector<1x8xf32> to vector<256x8xf32>
    %165 = arith.addf %162, %164 : vector<256x8xf32>
    %cst_202 = arith.constant 0.000000e+00 : f32
    %166 = vector.broadcast %cst_202 : f32 to vector<256x8xf32>
    %167 = arith.maximumf %165, %166 : vector<256x8xf32>
    %cst_203 = arith.constant 0.000000e+00 : f32
    %168 = vector.broadcast %cst_203 : f32 to vector<4x9x9x8xf32>
    %c0_204 = arith.constant 0 : index
    %c0_205 = arith.constant 0 : index
    %c0_206 = arith.constant 0 : index
    %c0_207 = arith.constant 0 : index
    %169 = vector.load %arg10[%c0_204, %c0_205, %c0_206, %c0_207] : memref<4x9x9x8xf32, #tpu.memory_space<vmem>>, vector<4x9x9x8xf32>
    tpu.vector_store %arg10[%c0_204, %c0_205, %c0_206, %c0_207], %168 {strides = array<i32>} : memref<4x9x9x8xf32, #tpu.memory_space<vmem>>, vector<4x9x9x8xf32>,
    %170 = vector.extract_strided_slice %167 {offsets = [0, 0], sizes = [64, 8], strides = [1, 1]} : vector<256x8xf32> to vector<64x8xf32>
    %171 = vector.shape_cast %170 : vector<64x8xf32> to vector<8x8x8xf32>
    %c3_208 = arith.constant 3 : index
    %c0_209 = arith.constant 0 : index
    %c0_210 = arith.constant 0 : index
    %c0_211 = arith.constant 0 : index
    %172 = vector.load %arg10[%c3_208, %c0_209, %c0_210, %c0_211] : memref<4x9x9x8xf32, #tpu.memory_space<vmem>>, vector<1x8x8x8xf32>
    %173 = vector.shape_cast %172 : vector<1x8x8x8xf32> to vector<8x8x8xf32>
    %174 = vector.shape_cast %171 : vector<8x8x8xf32> to vector<1x8x8x8xf32>
    tpu.vector_store %arg10[%c3_208, %c0_209, %c0_210, %c0_211], %174 {strides = array<i32>} : memref<4x9x9x8xf32, #tpu.memory_space<vmem>>, vector<1x8x8x8xf32>,
    %175 = vector.extract_strided_slice %167 {offsets = [64, 0], sizes = [64, 8], strides = [1, 1]} : vector<256x8xf32> to vector<64x8xf32>
    %176 = vector.shape_cast %175 : vector<64x8xf32> to vector<8x8x8xf32>
    %c2_212 = arith.constant 2 : index
    %c0_213 = arith.constant 0 : index
    %c1_214 = arith.constant 1 : index
    %c0_215 = arith.constant 0 : index
    %177 = vector.load %arg10[%c2_212, %c0_213, %c1_214, %c0_215] : memref<4x9x9x8xf32, #tpu.memory_space<vmem>>, vector<1x8x8x8xf32>
    %178 = vector.shape_cast %177 : vector<1x8x8x8xf32> to vector<8x8x8xf32>
    %179 = vector.shape_cast %176 : vector<8x8x8xf32> to vector<1x8x8x8xf32>
    tpu.vector_store %arg10[%c2_212, %c0_213, %c1_214, %c0_215], %179 {strides = array<i32>} : memref<4x9x9x8xf32, #tpu.memory_space<vmem>>, vector<1x8x8x8xf32>,
    %180 = vector.extract_strided_slice %167 {offsets = [128, 0], sizes = [64, 8], strides = [1, 1]} : vector<256x8xf32> to vector<64x8xf32>
    %181 = vector.shape_cast %180 : vector<64x8xf32> to vector<8x8x8xf32>
    %c1_216 = arith.constant 1 : index
    %c1_217 = arith.constant 1 : index
    %c0_218 = arith.constant 0 : index
    %c0_219 = arith.constant 0 : index
    %182 = vector.load %arg10[%c1_216, %c1_217, %c0_218, %c0_219] : memref<4x9x9x8xf32, #tpu.memory_space<vmem>>, vector<1x8x8x8xf32>
    %183 = vector.shape_cast %182 : vector<1x8x8x8xf32> to vector<8x8x8xf32>
    %184 = vector.shape_cast %181 : vector<8x8x8xf32> to vector<1x8x8x8xf32>
    tpu.vector_store %arg10[%c1_216, %c1_217, %c0_218, %c0_219], %184 {strides = array<i32>} : memref<4x9x9x8xf32, #tpu.memory_space<vmem>>, vector<1x8x8x8xf32>,
    %185 = vector.extract_strided_slice %167 {offsets = [192, 0], sizes = [64, 8], strides = [1, 1]} : vector<256x8xf32> to vector<64x8xf32>
    %186 = vector.shape_cast %185 : vector<64x8xf32> to vector<8x8x8xf32>
    %c0_220 = arith.constant 0 : index
    %c1_221 = arith.constant 1 : index
    %c1_222 = arith.constant 1 : index
    %c0_223 = arith.constant 0 : index
    %187 = vector.load %arg10[%c0_220, %c1_221, %c1_222, %c0_223] : memref<4x9x9x8xf32, #tpu.memory_space<vmem>>, vector<1x8x8x8xf32>
    %188 = vector.shape_cast %187 : vector<1x8x8x8xf32> to vector<8x8x8xf32>
    %189 = vector.shape_cast %186 : vector<8x8x8xf32> to vector<1x8x8x8xf32>
    tpu.vector_store %arg10[%c0_220, %c1_221, %c1_222, %c0_223], %189 {strides = array<i32>} : memref<4x9x9x8xf32, #tpu.memory_space<vmem>>, vector<1x8x8x8xf32>,
    %cst_224 = arith.constant 0.000000e+00 : f32
    %190 = vector.broadcast %cst_224 : f32 to vector<64x16xf32>
    %c0_225 = arith.constant 0 : index
    %c0_226 = arith.constant 0 : index
    %c0_227 = arith.constant 0 : index
    %c0_228 = arith.constant 0 : index
    %191 = vector.load %arg10[%c0_225, %c0_226, %c0_227, %c0_228] : memref<4x9x9x8xf32, #tpu.memory_space<vmem>>, vector<1x8x8x8xf32>
    %192 = vector.shape_cast %191 : vector<1x8x8x8xf32> to vector<8x8x8xf32>
    %193 = vector.shape_cast %192 : vector<8x8x8xf32> to vector<64x8xf32>
    %194 = arith.truncf %193 : vector<64x8xf32> to vector<64x8xbf16>
    %c0_229 = arith.constant 0 : index
    %c0_230 = arith.constant 0 : index
    %c0_231 = arith.constant 0 : index
    %195 = vector.load %arg3[%c0_229, %c0_230, %c0_231] : memref<9x8x16xbf16, #tpu.memory_space<vmem>>, vector<1x8x16xbf16>
    %196 = vector.shape_cast %195 : vector<1x8x16xbf16> to vector<8x16xbf16>
    %cst_232 = arith.constant dense<0.000000e+00> : vector<64x16xf32>
    %197 = tpu.matmul %194, %196, %cst_232 {dimension_numbers = #tpu.dot_dimension_numbers<[1], [0], [0], [1], [0, 0, 1, 1], [], []>} : vector<64x8xbf16>, vector<8x16xbf16>, vector<64x16xf32> -> vector<64x16xf32>
    %198 = arith.addf %190, %197 : vector<64x16xf32>
    %c1_233 = arith.constant 1 : index
    %c0_234 = arith.constant 0 : index
    %c0_235 = arith.constant 0 : index
    %c0_236 = arith.constant 0 : index
    %199 = vector.load %arg10[%c1_233, %c0_234, %c0_235, %c0_236] : memref<4x9x9x8xf32, #tpu.memory_space<vmem>>, vector<1x8x8x8xf32>
    %200 = vector.shape_cast %199 : vector<1x8x8x8xf32> to vector<8x8x8xf32>
    %201 = vector.shape_cast %200 : vector<8x8x8xf32> to vector<64x8xf32>
    %202 = arith.truncf %201 : vector<64x8xf32> to vector<64x8xbf16>
    %c1_237 = arith.constant 1 : index
    %c0_238 = arith.constant 0 : index
    %c0_239 = arith.constant 0 : index
    %203 = vector.load %arg3[%c1_237, %c0_238, %c0_239] : memref<9x8x16xbf16, #tpu.memory_space<vmem>>, vector<1x8x16xbf16>
    %204 = vector.shape_cast %203 : vector<1x8x16xbf16> to vector<8x16xbf16>
    %cst_240 = arith.constant dense<0.000000e+00> : vector<64x16xf32>
    %205 = tpu.matmul %202, %204, %cst_240 {dimension_numbers = #tpu.dot_dimension_numbers<[1], [0], [0], [1], [0, 0, 1, 1], [], []>} : vector<64x8xbf16>, vector<8x16xbf16>, vector<64x16xf32> -> vector<64x16xf32>
    %206 = arith.addf %198, %205 : vector<64x16xf32>
    %c0_241 = arith.constant 0 : index
    %c0_242 = arith.constant 0 : index
    %c1_243 = arith.constant 1 : index
    %c0_244 = arith.constant 0 : index
    %207 = vector.load %arg10[%c0_241, %c0_242, %c1_243, %c0_244] : memref<4x9x9x8xf32, #tpu.memory_space<vmem>>, vector<1x8x8x8xf32>
    %208 = vector.shape_cast %207 : vector<1x8x8x8xf32> to vector<8x8x8xf32>
    %209 = vector.shape_cast %208 : vector<8x8x8xf32> to vector<64x8xf32>
    %210 = arith.truncf %209 : vector<64x8xf32> to vector<64x8xbf16>
    %c2_245 = arith.constant 2 : index
    %c0_246 = arith.constant 0 : index
    %c0_247 = arith.constant 0 : index
    %211 = vector.load %arg3[%c2_245, %c0_246, %c0_247] : memref<9x8x16xbf16, #tpu.memory_space<vmem>>, vector<1x8x16xbf16>
    %212 = vector.shape_cast %211 : vector<1x8x16xbf16> to vector<8x16xbf16>
    %cst_248 = arith.constant dense<0.000000e+00> : vector<64x16xf32>
    %213 = tpu.matmul %210, %212, %cst_248 {dimension_numbers = #tpu.dot_dimension_numbers<[1], [0], [0], [1], [0, 0, 1, 1], [], []>} : vector<64x8xbf16>, vector<8x16xbf16>, vector<64x16xf32> -> vector<64x16xf32>
    %214 = arith.addf %206, %213 : vector<64x16xf32>
    %c2_249 = arith.constant 2 : index
    %c0_250 = arith.constant 0 : index
    %c0_251 = arith.constant 0 : index
    %c0_252 = arith.constant 0 : index
    %215 = vector.load %arg10[%c2_249, %c0_250, %c0_251, %c0_252] : memref<4x9x9x8xf32, #tpu.memory_space<vmem>>, vector<1x8x8x8xf32>
    %216 = vector.shape_cast %215 : vector<1x8x8x8xf32> to vector<8x8x8xf32>
    %217 = vector.shape_cast %216 : vector<8x8x8xf32> to vector<64x8xf32>
    %218 = arith.truncf %217 : vector<64x8xf32> to vector<64x8xbf16>
    %c3_253 = arith.constant 3 : index
    %c0_254 = arith.constant 0 : index
    %c0_255 = arith.constant 0 : index
    %219 = vector.load %arg3[%c3_253, %c0_254, %c0_255] : memref<9x8x16xbf16, #tpu.memory_space<vmem>>, vector<1x8x16xbf16>
    %220 = vector.shape_cast %219 : vector<1x8x16xbf16> to vector<8x16xbf16>
    %cst_256 = arith.constant dense<0.000000e+00> : vector<64x16xf32>
    %221 = tpu.matmul %218, %220, %cst_256 {dimension_numbers = #tpu.dot_dimension_numbers<[1], [0], [0], [1], [0, 0, 1, 1], [], []>} : vector<64x8xbf16>, vector<8x16xbf16>, vector<64x16xf32> -> vector<64x16xf32>
    %222 = arith.addf %214, %221 : vector<64x16xf32>
    %c3_257 = arith.constant 3 : index
    %c0_258 = arith.constant 0 : index
    %c0_259 = arith.constant 0 : index
    %c0_260 = arith.constant 0 : index
    %223 = vector.load %arg10[%c3_257, %c0_258, %c0_259, %c0_260] : memref<4x9x9x8xf32, #tpu.memory_space<vmem>>, vector<1x8x8x8xf32>
    %224 = vector.shape_cast %223 : vector<1x8x8x8xf32> to vector<8x8x8xf32>
    %225 = vector.shape_cast %224 : vector<8x8x8xf32> to vector<64x8xf32>
    %226 = arith.truncf %225 : vector<64x8xf32> to vector<64x8xbf16>
    %c4_261 = arith.constant 4 : index
    %c0_262 = arith.constant 0 : index
    %c0_263 = arith.constant 0 : index
    %227 = vector.load %arg3[%c4_261, %c0_262, %c0_263] : memref<9x8x16xbf16, #tpu.memory_space<vmem>>, vector<1x8x16xbf16>
    %228 = vector.shape_cast %227 : vector<1x8x16xbf16> to vector<8x16xbf16>
    %cst_264 = arith.constant dense<0.000000e+00> : vector<64x16xf32>
    %229 = tpu.matmul %226, %228, %cst_264 {dimension_numbers = #tpu.dot_dimension_numbers<[1], [0], [0], [1], [0, 0, 1, 1], [], []>} : vector<64x8xbf16>, vector<8x16xbf16>, vector<64x16xf32> -> vector<64x16xf32>
    %230 = arith.addf %222, %229 : vector<64x16xf32>
    %c2_265 = arith.constant 2 : index
    %c0_266 = arith.constant 0 : index
    %c1_267 = arith.constant 1 : index
    %c0_268 = arith.constant 0 : index
    %231 = vector.load %arg10[%c2_265, %c0_266, %c1_267, %c0_268] : memref<4x9x9x8xf32, #tpu.memory_space<vmem>>, vector<1x8x8x8xf32>
    %232 = vector.shape_cast %231 : vector<1x8x8x8xf32> to vector<8x8x8xf32>
    %233 = vector.shape_cast %232 : vector<8x8x8xf32> to vector<64x8xf32>
    %234 = arith.truncf %233 : vector<64x8xf32> to vector<64x8xbf16>
    %c5_269 = arith.constant 5 : index
    %c0_270 = arith.constant 0 : index
    %c0_271 = arith.constant 0 : index
    %235 = vector.load %arg3[%c5_269, %c0_270, %c0_271] : memref<9x8x16xbf16, #tpu.memory_space<vmem>>, vector<1x8x16xbf16>
    %236 = vector.shape_cast %235 : vector<1x8x16xbf16> to vector<8x16xbf16>
    %cst_272 = arith.constant dense<0.000000e+00> : vector<64x16xf32>
    %237 = tpu.matmul %234, %236, %cst_272 {dimension_numbers = #tpu.dot_dimension_numbers<[1], [0], [0], [1], [0, 0, 1, 1], [], []>} : vector<64x8xbf16>, vector<8x16xbf16>, vector<64x16xf32> -> vector<64x16xf32>
    %238 = arith.addf %230, %237 : vector<64x16xf32>
    %c0_273 = arith.constant 0 : index
    %c1_274 = arith.constant 1 : index
    %c0_275 = arith.constant 0 : index
    %c0_276 = arith.constant 0 : index
    %239 = vector.load %arg10[%c0_273, %c1_274, %c0_275, %c0_276] : memref<4x9x9x8xf32, #tpu.memory_space<vmem>>, vector<1x8x8x8xf32>
    %240 = vector.shape_cast %239 : vector<1x8x8x8xf32> to vector<8x8x8xf32>
    %241 = vector.shape_cast %240 : vector<8x8x8xf32> to vector<64x8xf32>
    %242 = arith.truncf %241 : vector<64x8xf32> to vector<64x8xbf16>
    %c6_277 = arith.constant 6 : index
    %c0_278 = arith.constant 0 : index
    %c0_279 = arith.constant 0 : index
    %243 = vector.load %arg3[%c6_277, %c0_278, %c0_279] : memref<9x8x16xbf16, #tpu.memory_space<vmem>>, vector<1x8x16xbf16>
    %244 = vector.shape_cast %243 : vector<1x8x16xbf16> to vector<8x16xbf16>
    %cst_280 = arith.constant dense<0.000000e+00> : vector<64x16xf32>
    %245 = tpu.matmul %242, %244, %cst_280 {dimension_numbers = #tpu.dot_dimension_numbers<[1], [0], [0], [1], [0, 0, 1, 1], [], []>} : vector<64x8xbf16>, vector<8x16xbf16>, vector<64x16xf32> -> vector<64x16xf32>
    %246 = arith.addf %238, %245 : vector<64x16xf32>
    %c1_281 = arith.constant 1 : index
    %c1_282 = arith.constant 1 : index
    %c0_283 = arith.constant 0 : index
    %c0_284 = arith.constant 0 : index
    %247 = vector.load %arg10[%c1_281, %c1_282, %c0_283, %c0_284] : memref<4x9x9x8xf32, #tpu.memory_space<vmem>>, vector<1x8x8x8xf32>
    %248 = vector.shape_cast %247 : vector<1x8x8x8xf32> to vector<8x8x8xf32>
    %249 = vector.shape_cast %248 : vector<8x8x8xf32> to vector<64x8xf32>
    %250 = arith.truncf %249 : vector<64x8xf32> to vector<64x8xbf16>
    %c7_285 = arith.constant 7 : index
    %c0_286 = arith.constant 0 : index
    %c0_287 = arith.constant 0 : index
    %251 = vector.load %arg3[%c7_285, %c0_286, %c0_287] : memref<9x8x16xbf16, #tpu.memory_space<vmem>>, vector<1x8x16xbf16>
    %252 = vector.shape_cast %251 : vector<1x8x16xbf16> to vector<8x16xbf16>
    %cst_288 = arith.constant dense<0.000000e+00> : vector<64x16xf32>
    %253 = tpu.matmul %250, %252, %cst_288 {dimension_numbers = #tpu.dot_dimension_numbers<[1], [0], [0], [1], [0, 0, 1, 1], [], []>} : vector<64x8xbf16>, vector<8x16xbf16>, vector<64x16xf32> -> vector<64x16xf32>
    %254 = arith.addf %246, %253 : vector<64x16xf32>
    %c0_289 = arith.constant 0 : index
    %c1_290 = arith.constant 1 : index
    %c1_291 = arith.constant 1 : index
    %c0_292 = arith.constant 0 : index
    %255 = vector.load %arg10[%c0_289, %c1_290, %c1_291, %c0_292] : memref<4x9x9x8xf32, #tpu.memory_space<vmem>>, vector<1x8x8x8xf32>
    %256 = vector.shape_cast %255 : vector<1x8x8x8xf32> to vector<8x8x8xf32>
    %257 = vector.shape_cast %256 : vector<8x8x8xf32> to vector<64x8xf32>
    %258 = arith.truncf %257 : vector<64x8xf32> to vector<64x8xbf16>
    %c8_293 = arith.constant 8 : index
    %c0_294 = arith.constant 0 : index
    %c0_295 = arith.constant 0 : index
    %259 = vector.load %arg3[%c8_293, %c0_294, %c0_295] : memref<9x8x16xbf16, #tpu.memory_space<vmem>>, vector<1x8x16xbf16>
    %260 = vector.shape_cast %259 : vector<1x8x16xbf16> to vector<8x16xbf16>
    %cst_296 = arith.constant dense<0.000000e+00> : vector<64x16xf32>
    %261 = tpu.matmul %258, %260, %cst_296 {dimension_numbers = #tpu.dot_dimension_numbers<[1], [0], [0], [1], [0, 0, 1, 1], [], []>} : vector<64x8xbf16>, vector<8x16xbf16>, vector<64x16xf32> -> vector<64x16xf32>
    %262 = arith.addf %254, %261 : vector<64x16xf32>
    %c1_297 = arith.constant 1 : index
    %c0_298 = arith.constant 0 : index
    %263 = vector.load %arg7[%c1_297, %c0_298] : memref<8x128xf32, #tpu.memory_space<vmem>>, vector<1x16xf32>
    %264 = vector.broadcast %263 : vector<1x16xf32> to vector<64x16xf32>
    %265 = arith.addf %262, %264 : vector<64x16xf32>
    %cst_299 = arith.constant 0.000000e+00 : f32
    %266 = vector.broadcast %cst_299 : f32 to vector<64x16xf32>
    %267 = arith.maximumf %265, %266 : vector<64x16xf32>
    %268 = vector.extract_strided_slice %267 {offsets = [0, 0], sizes = [8, 16], strides = [1, 1]} : vector<64x16xf32> to vector<8x16xf32>
    %269 = vector.extract_strided_slice %267 {offsets = [8, 0], sizes = [8, 16], strides = [1, 1]} : vector<64x16xf32> to vector<8x16xf32>
    %270 = vector.extract_strided_slice %267 {offsets = [16, 0], sizes = [8, 16], strides = [1, 1]} : vector<64x16xf32> to vector<8x16xf32>
    %271 = vector.extract_strided_slice %267 {offsets = [24, 0], sizes = [8, 16], strides = [1, 1]} : vector<64x16xf32> to vector<8x16xf32>
    %272 = vector.extract_strided_slice %267 {offsets = [32, 0], sizes = [8, 16], strides = [1, 1]} : vector<64x16xf32> to vector<8x16xf32>
    %273 = vector.extract_strided_slice %267 {offsets = [40, 0], sizes = [8, 16], strides = [1, 1]} : vector<64x16xf32> to vector<8x16xf32>
    %274 = vector.extract_strided_slice %267 {offsets = [48, 0], sizes = [8, 16], strides = [1, 1]} : vector<64x16xf32> to vector<8x16xf32>
    %275 = vector.extract_strided_slice %267 {offsets = [56, 0], sizes = [8, 16], strides = [1, 1]} : vector<64x16xf32> to vector<8x16xf32>
    %276 = tpu.concatenate %268, %269, %270, %271, %272, %273, %274, %275 in 1 : vector<8x16xf32>, vector<8x16xf32>, vector<8x16xf32>, vector<8x16xf32>, vector<8x16xf32>, vector<8x16xf32>, vector<8x16xf32>, vector<8x16xf32> -> vector<8x128xf32>
    %277 = vector.extract_strided_slice %276 {offsets = [0, 0], sizes = [1, 128], strides = [1, 1]} : vector<8x128xf32> to vector<1x128xf32>
    %278 = vector.extract_strided_slice %276 {offsets = [1, 0], sizes = [1, 128], strides = [1, 1]} : vector<8x128xf32> to vector<1x128xf32>
    %279 = vector.extract_strided_slice %276 {offsets = [2, 0], sizes = [1, 128], strides = [1, 1]} : vector<8x128xf32> to vector<1x128xf32>
    %280 = vector.extract_strided_slice %276 {offsets = [3, 0], sizes = [1, 128], strides = [1, 1]} : vector<8x128xf32> to vector<1x128xf32>
    %281 = vector.extract_strided_slice %276 {offsets = [4, 0], sizes = [1, 128], strides = [1, 1]} : vector<8x128xf32> to vector<1x128xf32>
    %282 = vector.extract_strided_slice %276 {offsets = [5, 0], sizes = [1, 128], strides = [1, 1]} : vector<8x128xf32> to vector<1x128xf32>
    %283 = vector.extract_strided_slice %276 {offsets = [6, 0], sizes = [1, 128], strides = [1, 1]} : vector<8x128xf32> to vector<1x128xf32>
    %284 = vector.extract_strided_slice %276 {offsets = [7, 0], sizes = [1, 128], strides = [1, 1]} : vector<8x128xf32> to vector<1x128xf32>
    %285 = tpu.concatenate %277, %278, %279, %280, %281, %282, %283, %284 in 1 : vector<1x128xf32>, vector<1x128xf32>, vector<1x128xf32>, vector<1x128xf32>, vector<1x128xf32>, vector<1x128xf32>, vector<1x128xf32>, vector<1x128xf32> -> vector<1x1024xf32>
    %286 = arith.truncf %285 : vector<1x1024xf32> to vector<1x1024xbf16>
    %c0_300 = arith.constant 0 : index
    %c0_301 = arith.constant 0 : index
    %287 = vector.load %arg6[%c0_300, %c0_301] : memref<1280x128xbf16, #tpu.memory_space<vmem>>, vector<1024x128xbf16>
    %cst_302 = arith.constant dense<0.000000e+00> : vector<1x128xf32>
    %288 = tpu.matmul %286, %287, %cst_302 {dimension_numbers = #tpu.dot_dimension_numbers<[1], [0], [0], [1], [0, 0, 1, 1], [], []>} : vector<1x1024xbf16>, vector<1024x128xbf16>, vector<1x128xf32> -> vector<1x128xf32>
    %c4_303 = arith.constant 4 : index
    %c0_304 = arith.constant 0 : index
    %289 = vector.load %arg7[%c4_303, %c0_304] : memref<8x128xf32, #tpu.memory_space<vmem>>, vector<1x128xf32>
    %290 = arith.addf %288, %289 : vector<1x128xf32>
    %cst_305 = arith.constant 0.000000e+00 : f32
    %291 = vector.broadcast %cst_305 : f32 to vector<1x128xf32>
    %292 = arith.maximumf %290, %291 : vector<1x128xf32>
    %293 = arith.truncf %292 : vector<1x128xf32> to vector<1x128xbf16>
    %c1024 = arith.constant 1024 : index
    %c0_306 = arith.constant 0 : index
    %294 = vector.load %arg6[%c1024, %c0_306] : memref<1280x128xbf16, #tpu.memory_space<vmem>>, vector<128x128xbf16>
    %cst_307 = arith.constant dense<0.000000e+00> : vector<1x128xf32>
    %295 = tpu.matmul %293, %294, %cst_307 {dimension_numbers = #tpu.dot_dimension_numbers<[1], [0], [0], [1], [0, 0, 1, 1], [], []>} : vector<1x128xbf16>, vector<128x128xbf16>, vector<1x128xf32> -> vector<1x128xf32>
    %c5_308 = arith.constant 5 : index
    %c0_309 = arith.constant 0 : index
    %296 = vector.load %arg7[%c5_308, %c0_309] : memref<8x128xf32, #tpu.memory_space<vmem>>, vector<1x128xf32>
    %297 = arith.addf %295, %296 : vector<1x128xf32>
    %cst_310 = arith.constant 0.000000e+00 : f32
    %298 = vector.broadcast %cst_310 : f32 to vector<1x128xf32>
    %299 = arith.maximumf %297, %298 : vector<1x128xf32>
    %300 = arith.truncf %299 : vector<1x128xf32> to vector<1x128xbf16>
    %c1152 = arith.constant 1152 : index
    %c0_311 = arith.constant 0 : index
    %301 = vector.load %arg6[%c1152, %c0_311] : memref<1280x128xbf16, #tpu.memory_space<vmem>>, vector<128x128xbf16>
    %cst_312 = arith.constant dense<0.000000e+00> : vector<1x128xf32>
    %302 = tpu.matmul %300, %301, %cst_312 {dimension_numbers = #tpu.dot_dimension_numbers<[1], [0], [0], [1], [0, 0, 1, 1], [], []>} : vector<1x128xbf16>, vector<128x128xbf16>, vector<1x128xf32> -> vector<1x128xf32>
    %c6_313 = arith.constant 6 : index
    %c0_314 = arith.constant 0 : index
    %303 = vector.load %arg7[%c6_313, %c0_314] : memref<8x128xf32, #tpu.memory_space<vmem>>, vector<1x128xf32>
    %304 = arith.addf %302, %303 : vector<1x128xf32>
    %305 = tpu.iota {dimensions = array<i32: 1>} : vector<1x128xi32>
    %306 = arith.sitofp %305 : vector<1x128xi32> to vector<1x128xf32>
    %cst_315 = arith.constant 5.000000e+00 : f32
    %307 = vector.broadcast %cst_315 : f32 to vector<1x128xf32>
    %308 = arith.cmpf olt, %306, %307 : vector<1x128xf32>
    %cst_316 = arith.constant -1.000000e+30 : f32
    %309 = vector.broadcast %cst_316 : f32 to vector<1x128xf32>
    %310 = arith.select %308, %304, %309 : vector<1x128xi1>, vector<1x128xf32>
    %cst_317 = arith.constant dense<0xFF800000> : vector<1xf32>
    %311 = vector.multi_reduction <maximumf>, %310, %cst_317 [1] : vector<1x128xf32> to vector<1xf32>
    %312 = vector.shape_cast %311 : vector<1xf32> to vector<1x1xf32>
    %313 = vector.broadcast %312 : vector<1x1xf32> to vector<1x128xf32>
    %314 = arith.cmpf oge, %310, %313 : vector<1x128xf32>
    %cst_318 = arith.constant 1.000000e+09 : f32
    %315 = vector.broadcast %cst_318 : f32 to vector<1x128xf32>
    %316 = arith.select %314, %306, %315 : vector<1x128xi1>, vector<1x128xf32>
    %cst_319 = arith.constant dense<0x7F800000> : vector<1xf32>
    %317 = vector.multi_reduction <minimumf>, %316, %cst_319 [1] : vector<1x128xf32> to vector<1xf32>
    %318 = vector.shape_cast %317 : vector<1xf32> to vector<1x1xf32>
    %319 = vector.broadcast %312 : vector<1x1xf32> to vector<1x128xf32>
    %320 = arith.subf %310, %319 : vector<1x128xf32>
    %321 = math.exp %320 : vector<1x128xf32>
    %cst_320 = arith.constant dense<0.000000e+00> : vector<1xf32>
    %322 = vector.multi_reduction <add>, %321, %cst_320 [1] : vector<1x128xf32> to vector<1xf32>
    %323 = vector.shape_cast %322 : vector<1xf32> to vector<1x1xf32>
    %324 = tpu.reciprocal %323 {approx = true} : vector<1x1xf32> -> vector<1x1xf32>
    %cst_321 = arith.constant 0.000000e+00 : f32
    %325 = vector.broadcast %cst_321 : f32 to vector<1x128xf32>
    %326 = arith.cmpf oeq, %306, %325 : vector<1x128xf32>
    %cst_322 = arith.constant 0.000000e+00 : f32
    %327 = vector.shape_cast %324 : vector<1x1xf32> to vector<1x1xf32>
    %328 = vector.broadcast %327 : vector<1x1xf32> to vector<1x128xf32>
    %329 = vector.broadcast %cst_322 : f32 to vector<1x128xf32>
    %330 = arith.select %326, %328, %329 : vector<1x128xi1>, vector<1x128xf32>
    %cst_323 = arith.constant 1.000000e+00 : f32
    %331 = vector.broadcast %cst_323 : f32 to vector<1x128xf32>
    %332 = arith.cmpf oeq, %306, %331 : vector<1x128xf32>
    %cst_324 = arith.constant 0.000000e+00 : f32
    %333 = vector.shape_cast %318 : vector<1x1xf32> to vector<1x1xf32>
    %334 = vector.broadcast %333 : vector<1x1xf32> to vector<1x128xf32>
    %335 = vector.broadcast %cst_324 : f32 to vector<1x128xf32>
    %336 = arith.select %332, %334, %335 : vector<1x128xi1>, vector<1x128xf32>
    %337 = arith.addf %330, %336 : vector<1x128xf32>
    %cst_325 = arith.constant 4.000000e+00 : f32
    %338 = vector.broadcast %cst_325 : f32 to vector<1x1xf32>
    %339 = arith.mulf %338, %318 : vector<1x1xf32>
    %cst_326 = arith.constant 5.000000e+00 : f32
    %340 = vector.broadcast %cst_326 : f32 to vector<1x1xf32>
    %341 = arith.addf %340, %339 : vector<1x1xf32>
    %cst_327 = arith.constant 0.000000e+00 : f32
    %342 = vector.broadcast %cst_327 : f32 to vector<1x1xf32>
    %343 = arith.addf %341, %342 : vector<1x1xf32>
    %344 = vector.broadcast %343 : vector<1x1xf32> to vector<1x128xf32>
    %345 = arith.cmpf oeq, %306, %344 : vector<1x128xf32>
    %cst_328 = arith.constant 0.000000e+00 : f32
    %346 = vector.broadcast %cst_328 : f32 to vector<1x128xf32>
    %347 = arith.select %345, %304, %346 : vector<1x128xi1>, vector<1x128xf32>
    %cst_329 = arith.constant dense<0.000000e+00> : vector<1xf32>
    %348 = vector.multi_reduction <add>, %347, %cst_329 [1] : vector<1x128xf32> to vector<1xf32>
    %349 = vector.shape_cast %348 : vector<1xf32> to vector<1x1xf32>
    %cst_330 = arith.constant 2.000000e+00 : f32
    %350 = vector.broadcast %cst_330 : f32 to vector<1x128xf32>
    %351 = arith.cmpf oeq, %306, %350 : vector<1x128xf32>
    %cst_331 = arith.constant 0.000000e+00 : f32
    %352 = vector.shape_cast %349 : vector<1x1xf32> to vector<1x1xf32>
    %353 = vector.broadcast %352 : vector<1x1xf32> to vector<1x128xf32>
    %354 = vector.broadcast %cst_331 : f32 to vector<1x128xf32>
    %355 = arith.select %351, %353, %354 : vector<1x128xi1>, vector<1x128xf32>
    %356 = arith.addf %337, %355 : vector<1x128xf32>
    %cst_332 = arith.constant 1.000000e+00 : f32
    %357 = vector.broadcast %cst_332 : f32 to vector<1x1xf32>
    %358 = arith.addf %341, %357 : vector<1x1xf32>
    %359 = vector.broadcast %358 : vector<1x1xf32> to vector<1x128xf32>
    %360 = arith.cmpf oeq, %306, %359 : vector<1x128xf32>
    %cst_333 = arith.constant 0.000000e+00 : f32
    %361 = vector.broadcast %cst_333 : f32 to vector<1x128xf32>
    %362 = arith.select %360, %304, %361 : vector<1x128xi1>, vector<1x128xf32>
    %cst_334 = arith.constant dense<0.000000e+00> : vector<1xf32>
    %363 = vector.multi_reduction <add>, %362, %cst_334 [1] : vector<1x128xf32> to vector<1xf32>
    %364 = vector.shape_cast %363 : vector<1xf32> to vector<1x1xf32>
    %cst_335 = arith.constant 3.000000e+00 : f32
    %365 = vector.broadcast %cst_335 : f32 to vector<1x128xf32>
    %366 = arith.cmpf oeq, %306, %365 : vector<1x128xf32>
    %cst_336 = arith.constant 0.000000e+00 : f32
    %367 = vector.shape_cast %364 : vector<1x1xf32> to vector<1x1xf32>
    %368 = vector.broadcast %367 : vector<1x1xf32> to vector<1x128xf32>
    %369 = vector.broadcast %cst_336 : f32 to vector<1x128xf32>
    %370 = arith.select %366, %368, %369 : vector<1x128xi1>, vector<1x128xf32>
    %371 = arith.addf %356, %370 : vector<1x128xf32>
    %cst_337 = arith.constant 2.000000e+00 : f32
    %372 = vector.broadcast %cst_337 : f32 to vector<1x1xf32>
    %373 = arith.addf %341, %372 : vector<1x1xf32>
    %374 = vector.broadcast %373 : vector<1x1xf32> to vector<1x128xf32>
    %375 = arith.cmpf oeq, %306, %374 : vector<1x128xf32>
    %cst_338 = arith.constant 0.000000e+00 : f32
    %376 = vector.broadcast %cst_338 : f32 to vector<1x128xf32>
    %377 = arith.select %375, %304, %376 : vector<1x128xi1>, vector<1x128xf32>
    %cst_339 = arith.constant dense<0.000000e+00> : vector<1xf32>
    %378 = vector.multi_reduction <add>, %377, %cst_339 [1] : vector<1x128xf32> to vector<1xf32>
    %379 = vector.shape_cast %378 : vector<1xf32> to vector<1x1xf32>
    %cst_340 = arith.constant 4.000000e+00 : f32
    %380 = vector.broadcast %cst_340 : f32 to vector<1x128xf32>
    %381 = arith.cmpf oeq, %306, %380 : vector<1x128xf32>
    %cst_341 = arith.constant 0.000000e+00 : f32
    %382 = vector.shape_cast %379 : vector<1x1xf32> to vector<1x1xf32>
    %383 = vector.broadcast %382 : vector<1x1xf32> to vector<1x128xf32>
    %384 = vector.broadcast %cst_341 : f32 to vector<1x128xf32>
    %385 = arith.select %381, %383, %384 : vector<1x128xi1>, vector<1x128xf32>
    %386 = arith.addf %371, %385 : vector<1x128xf32>
    %cst_342 = arith.constant 3.000000e+00 : f32
    %387 = vector.broadcast %cst_342 : f32 to vector<1x1xf32>
    %388 = arith.addf %341, %387 : vector<1x1xf32>
    %389 = vector.broadcast %388 : vector<1x1xf32> to vector<1x128xf32>
    %390 = arith.cmpf oeq, %306, %389 : vector<1x128xf32>
    %cst_343 = arith.constant 0.000000e+00 : f32
    %391 = vector.broadcast %cst_343 : f32 to vector<1x128xf32>
    %392 = arith.select %390, %304, %391 : vector<1x128xi1>, vector<1x128xf32>
    %cst_344 = arith.constant dense<0.000000e+00> : vector<1xf32>
    %393 = vector.multi_reduction <add>, %392, %cst_344 [1] : vector<1x128xf32> to vector<1xf32>
    %394 = vector.shape_cast %393 : vector<1xf32> to vector<1x1xf32>
    %cst_345 = arith.constant 5.000000e+00 : f32
    %395 = vector.broadcast %cst_345 : f32 to vector<1x128xf32>
    %396 = arith.cmpf oeq, %306, %395 : vector<1x128xf32>
    %cst_346 = arith.constant 0.000000e+00 : f32
    %397 = vector.shape_cast %394 : vector<1x1xf32> to vector<1x1xf32>
    %398 = vector.broadcast %397 : vector<1x1xf32> to vector<1x128xf32>
    %399 = vector.broadcast %cst_346 : f32 to vector<1x128xf32>
    %400 = arith.select %396, %398, %399 : vector<1x128xi1>, vector<1x128xf32>
    %401 = arith.addf %386, %400 : vector<1x128xf32>
    %402 = vector.shape_cast %401 : vector<1x128xf32> to vector<1x1x128xf32>
    %c0_347 = arith.constant 0 : index
    %c0_348 = arith.constant 0 : index
    %c0_349 = arith.constant 0 : index
    %403 = vector.load %arg8[%c0_347, %c0_348, %c0_349] : memref<1x1x128xf32, #tpu.memory_space<vmem>>, vector<1x1x128xf32>
    tpu.vector_store %arg8[%c0_347, %c0_348, %c0_349], %402 {strides = array<i32>} : memref<1x1x128xf32, #tpu.memory_space<vmem>>, vector<1x1x128xf32>,
    %cst_350 = arith.constant 0.000000e+00 : f32
    %404 = vector.broadcast %cst_350 : f32 to vector<10x10x16xf32>
    %c0_351 = arith.constant 0 : index
    %c0_352 = arith.constant 0 : index
    %c0_353 = arith.constant 0 : index
    %405 = vector.load %arg11[%c0_351, %c0_352, %c0_353] : memref<10x10x16xf32, #tpu.memory_space<vmem>>, vector<10x10x16xf32>
    tpu.vector_store %arg11[%c0_351, %c0_352, %c0_353], %404 {strides = array<i32>} : memref<10x10x16xf32, #tpu.memory_space<vmem>>, vector<10x10x16xf32>,
    %406 = vector.shape_cast %267 : vector<64x16xf32> to vector<8x8x16xf32>
    %c1_354 = arith.constant 1 : index
    %c1_355 = arith.constant 1 : index
    %c0_356 = arith.constant 0 : index
    %407 = vector.load %arg11[%c1_354, %c1_355, %c0_356] : memref<10x10x16xf32, #tpu.memory_space<vmem>>, vector<8x8x16xf32>
    tpu.vector_store %arg11[%c1_354, %c1_355, %c0_356], %406 {strides = array<i32>} : memref<10x10x16xf32, #tpu.memory_space<vmem>>, vector<8x8x16xf32>,
    %cst_357 = arith.constant 0.000000e+00 : f32
    %408 = vector.broadcast %cst_357 : f32 to vector<64x8xf32>
    %c0_358 = arith.constant 0 : index
    %c0_359 = arith.constant 0 : index
    %c0_360 = arith.constant 0 : index
    %409 = vector.load %arg11[%c0_358, %c0_359, %c0_360] : memref<10x10x16xf32, #tpu.memory_space<vmem>>, vector<8x8x16xf32>
    %410 = vector.shape_cast %409 : vector<8x8x16xf32> to vector<64x16xf32>
    %411 = arith.truncf %410 : vector<64x16xf32> to vector<64x16xbf16>
    %c0_361 = arith.constant 0 : index
    %c0_362 = arith.constant 0 : index
    %c0_363 = arith.constant 0 : index
    %412 = vector.load %arg4[%c0_361, %c0_362, %c0_363] : memref<9x16x8xbf16, #tpu.memory_space<vmem>>, vector<1x16x8xbf16>
    %413 = vector.shape_cast %412 : vector<1x16x8xbf16> to vector<16x8xbf16>
    %cst_364 = arith.constant dense<0.000000e+00> : vector<64x8xf32>
    %414 = tpu.matmul %411, %413, %cst_364 {dimension_numbers = #tpu.dot_dimension_numbers<[1], [0], [0], [1], [0, 0, 1, 1], [], []>} : vector<64x16xbf16>, vector<16x8xbf16>, vector<64x8xf32> -> vector<64x8xf32>
    %415 = arith.addf %408, %414 : vector<64x8xf32>
    %c0_365 = arith.constant 0 : index
    %c1_366 = arith.constant 1 : index
    %c0_367 = arith.constant 0 : index
    %416 = vector.load %arg11[%c0_365, %c1_366, %c0_367] : memref<10x10x16xf32, #tpu.memory_space<vmem>>, vector<8x8x16xf32>
    %417 = vector.shape_cast %416 : vector<8x8x16xf32> to vector<64x16xf32>
    %418 = arith.truncf %417 : vector<64x16xf32> to vector<64x16xbf16>
    %c1_368 = arith.constant 1 : index
    %c0_369 = arith.constant 0 : index
    %c0_370 = arith.constant 0 : index
    %419 = vector.load %arg4[%c1_368, %c0_369, %c0_370] : memref<9x16x8xbf16, #tpu.memory_space<vmem>>, vector<1x16x8xbf16>
    %420 = vector.shape_cast %419 : vector<1x16x8xbf16> to vector<16x8xbf16>
    %cst_371 = arith.constant dense<0.000000e+00> : vector<64x8xf32>
    %421 = tpu.matmul %418, %420, %cst_371 {dimension_numbers = #tpu.dot_dimension_numbers<[1], [0], [0], [1], [0, 0, 1, 1], [], []>} : vector<64x16xbf16>, vector<16x8xbf16>, vector<64x8xf32> -> vector<64x8xf32>
    %422 = arith.addf %415, %421 : vector<64x8xf32>
    %c0_372 = arith.constant 0 : index
    %c2_373 = arith.constant 2 : index
    %c0_374 = arith.constant 0 : index
    %423 = vector.load %arg11[%c0_372, %c2_373, %c0_374] : memref<10x10x16xf32, #tpu.memory_space<vmem>>, vector<8x8x16xf32>
    %424 = vector.shape_cast %423 : vector<8x8x16xf32> to vector<64x16xf32>
    %425 = arith.truncf %424 : vector<64x16xf32> to vector<64x16xbf16>
    %c2_375 = arith.constant 2 : index
    %c0_376 = arith.constant 0 : index
    %c0_377 = arith.constant 0 : index
    %426 = vector.load %arg4[%c2_375, %c0_376, %c0_377] : memref<9x16x8xbf16, #tpu.memory_space<vmem>>, vector<1x16x8xbf16>
    %427 = vector.shape_cast %426 : vector<1x16x8xbf16> to vector<16x8xbf16>
    %cst_378 = arith.constant dense<0.000000e+00> : vector<64x8xf32>
    %428 = tpu.matmul %425, %427, %cst_378 {dimension_numbers = #tpu.dot_dimension_numbers<[1], [0], [0], [1], [0, 0, 1, 1], [], []>} : vector<64x16xbf16>, vector<16x8xbf16>, vector<64x8xf32> -> vector<64x8xf32>
    %429 = arith.addf %422, %428 : vector<64x8xf32>
    %c1_379 = arith.constant 1 : index
    %c0_380 = arith.constant 0 : index
    %c0_381 = arith.constant 0 : index
    %430 = vector.load %arg11[%c1_379, %c0_380, %c0_381] : memref<10x10x16xf32, #tpu.memory_space<vmem>>, vector<8x8x16xf32>
    %431 = vector.shape_cast %430 : vector<8x8x16xf32> to vector<64x16xf32>
    %432 = arith.truncf %431 : vector<64x16xf32> to vector<64x16xbf16>
    %c3_382 = arith.constant 3 : index
    %c0_383 = arith.constant 0 : index
    %c0_384 = arith.constant 0 : index
    %433 = vector.load %arg4[%c3_382, %c0_383, %c0_384] : memref<9x16x8xbf16, #tpu.memory_space<vmem>>, vector<1x16x8xbf16>
    %434 = vector.shape_cast %433 : vector<1x16x8xbf16> to vector<16x8xbf16>
    %cst_385 = arith.constant dense<0.000000e+00> : vector<64x8xf32>
    %435 = tpu.matmul %432, %434, %cst_385 {dimension_numbers = #tpu.dot_dimension_numbers<[1], [0], [0], [1], [0, 0, 1, 1], [], []>} : vector<64x16xbf16>, vector<16x8xbf16>, vector<64x8xf32> -> vector<64x8xf32>
    %436 = arith.addf %429, %435 : vector<64x8xf32>
    %c1_386 = arith.constant 1 : index
    %c1_387 = arith.constant 1 : index
    %c0_388 = arith.constant 0 : index
    %437 = vector.load %arg11[%c1_386, %c1_387, %c0_388] : memref<10x10x16xf32, #tpu.memory_space<vmem>>, vector<8x8x16xf32>
    %438 = vector.shape_cast %437 : vector<8x8x16xf32> to vector<64x16xf32>
    %439 = arith.truncf %438 : vector<64x16xf32> to vector<64x16xbf16>
    %c4_389 = arith.constant 4 : index
    %c0_390 = arith.constant 0 : index
    %c0_391 = arith.constant 0 : index
    %440 = vector.load %arg4[%c4_389, %c0_390, %c0_391] : memref<9x16x8xbf16, #tpu.memory_space<vmem>>, vector<1x16x8xbf16>
    %441 = vector.shape_cast %440 : vector<1x16x8xbf16> to vector<16x8xbf16>
    %cst_392 = arith.constant dense<0.000000e+00> : vector<64x8xf32>
    %442 = tpu.matmul %439, %441, %cst_392 {dimension_numbers = #tpu.dot_dimension_numbers<[1], [0], [0], [1], [0, 0, 1, 1], [], []>} : vector<64x16xbf16>, vector<16x8xbf16>, vector<64x8xf32> -> vector<64x8xf32>
    %443 = arith.addf %436, %442 : vector<64x8xf32>
    %c1_393 = arith.constant 1 : index
    %c2_394 = arith.constant 2 : index
    %c0_395 = arith.constant 0 : index
    %444 = vector.load %arg11[%c1_393, %c2_394, %c0_395] : memref<10x10x16xf32, #tpu.memory_space<vmem>>, vector<8x8x16xf32>
    %445 = vector.shape_cast %444 : vector<8x8x16xf32> to vector<64x16xf32>
    %446 = arith.truncf %445 : vector<64x16xf32> to vector<64x16xbf16>
    %c5_396 = arith.constant 5 : index
    %c0_397 = arith.constant 0 : index
    %c0_398 = arith.constant 0 : index
    %447 = vector.load %arg4[%c5_396, %c0_397, %c0_398] : memref<9x16x8xbf16, #tpu.memory_space<vmem>>, vector<1x16x8xbf16>
    %448 = vector.shape_cast %447 : vector<1x16x8xbf16> to vector<16x8xbf16>
    %cst_399 = arith.constant dense<0.000000e+00> : vector<64x8xf32>
    %449 = tpu.matmul %446, %448, %cst_399 {dimension_numbers = #tpu.dot_dimension_numbers<[1], [0], [0], [1], [0, 0, 1, 1], [], []>} : vector<64x16xbf16>, vector<16x8xbf16>, vector<64x8xf32> -> vector<64x8xf32>
    %450 = arith.addf %443, %449 : vector<64x8xf32>
    %c2_400 = arith.constant 2 : index
    %c0_401 = arith.constant 0 : index
    %c0_402 = arith.constant 0 : index
    %451 = vector.load %arg11[%c2_400, %c0_401, %c0_402] : memref<10x10x16xf32, #tpu.memory_space<vmem>>, vector<8x8x16xf32>
    %452 = vector.shape_cast %451 : vector<8x8x16xf32> to vector<64x16xf32>
    %453 = arith.truncf %452 : vector<64x16xf32> to vector<64x16xbf16>
    %c6_403 = arith.constant 6 : index
    %c0_404 = arith.constant 0 : index
    %c0_405 = arith.constant 0 : index
    %454 = vector.load %arg4[%c6_403, %c0_404, %c0_405] : memref<9x16x8xbf16, #tpu.memory_space<vmem>>, vector<1x16x8xbf16>
    %455 = vector.shape_cast %454 : vector<1x16x8xbf16> to vector<16x8xbf16>
    %cst_406 = arith.constant dense<0.000000e+00> : vector<64x8xf32>
    %456 = tpu.matmul %453, %455, %cst_406 {dimension_numbers = #tpu.dot_dimension_numbers<[1], [0], [0], [1], [0, 0, 1, 1], [], []>} : vector<64x16xbf16>, vector<16x8xbf16>, vector<64x8xf32> -> vector<64x8xf32>
    %457 = arith.addf %450, %456 : vector<64x8xf32>
    %c2_407 = arith.constant 2 : index
    %c1_408 = arith.constant 1 : index
    %c0_409 = arith.constant 0 : index
    %458 = vector.load %arg11[%c2_407, %c1_408, %c0_409] : memref<10x10x16xf32, #tpu.memory_space<vmem>>, vector<8x8x16xf32>
    %459 = vector.shape_cast %458 : vector<8x8x16xf32> to vector<64x16xf32>
    %460 = arith.truncf %459 : vector<64x16xf32> to vector<64x16xbf16>
    %c7_410 = arith.constant 7 : index
    %c0_411 = arith.constant 0 : index
    %c0_412 = arith.constant 0 : index
    %461 = vector.load %arg4[%c7_410, %c0_411, %c0_412] : memref<9x16x8xbf16, #tpu.memory_space<vmem>>, vector<1x16x8xbf16>
    %462 = vector.shape_cast %461 : vector<1x16x8xbf16> to vector<16x8xbf16>
    %cst_413 = arith.constant dense<0.000000e+00> : vector<64x8xf32>
    %463 = tpu.matmul %460, %462, %cst_413 {dimension_numbers = #tpu.dot_dimension_numbers<[1], [0], [0], [1], [0, 0, 1, 1], [], []>} : vector<64x16xbf16>, vector<16x8xbf16>, vector<64x8xf32> -> vector<64x8xf32>
    %464 = arith.addf %457, %463 : vector<64x8xf32>
    %c2_414 = arith.constant 2 : index
    %c2_415 = arith.constant 2 : index
    %c0_416 = arith.constant 0 : index
    %465 = vector.load %arg11[%c2_414, %c2_415, %c0_416] : memref<10x10x16xf32, #tpu.memory_space<vmem>>, vector<8x8x16xf32>
    %466 = vector.shape_cast %465 : vector<8x8x16xf32> to vector<64x16xf32>
    %467 = arith.truncf %466 : vector<64x16xf32> to vector<64x16xbf16>
    %c8_417 = arith.constant 8 : index
    %c0_418 = arith.constant 0 : index
    %c0_419 = arith.constant 0 : index
    %468 = vector.load %arg4[%c8_417, %c0_418, %c0_419] : memref<9x16x8xbf16, #tpu.memory_space<vmem>>, vector<1x16x8xbf16>
    %469 = vector.shape_cast %468 : vector<1x16x8xbf16> to vector<16x8xbf16>
    %cst_420 = arith.constant dense<0.000000e+00> : vector<64x8xf32>
    %470 = tpu.matmul %467, %469, %cst_420 {dimension_numbers = #tpu.dot_dimension_numbers<[1], [0], [0], [1], [0, 0, 1, 1], [], []>} : vector<64x16xbf16>, vector<16x8xbf16>, vector<64x8xf32> -> vector<64x8xf32>
    %471 = arith.addf %464, %470 : vector<64x8xf32>
    %c2_421 = arith.constant 2 : index
    %c0_422 = arith.constant 0 : index
    %472 = vector.load %arg7[%c2_421, %c0_422] : memref<8x128xf32, #tpu.memory_space<vmem>>, vector<1x8xf32>
    %473 = vector.broadcast %472 : vector<1x8xf32> to vector<64x8xf32>
    %474 = arith.addf %471, %473 : vector<64x8xf32>
    %cst_423 = arith.constant 0.000000e+00 : f32
    %475 = vector.broadcast %cst_423 : f32 to vector<64x8xf32>
    %476 = arith.maximumf %474, %475 : vector<64x8xf32>
    %477 = arith.truncf %476 : vector<64x8xf32> to vector<64x8xbf16>
    %c0_424 = arith.constant 0 : index
    %c0_425 = arith.constant 0 : index
    %478 = vector.load %arg5[%c0_424, %c0_425] : memref<8x128xbf16, #tpu.memory_space<vmem>>, vector<8x128xbf16>
    %cst_426 = arith.constant dense<0.000000e+00> : vector<64x128xf32>
    %479 = tpu.matmul %477, %478, %cst_426 {dimension_numbers = #tpu.dot_dimension_numbers<[1], [0], [0], [1], [0, 0, 1, 1], [], []>} : vector<64x8xbf16>, vector<8x128xbf16>, vector<64x128xf32> -> vector<64x128xf32>
    %c3_427 = arith.constant 3 : index
    %c0_428 = arith.constant 0 : index
    %480 = vector.load %arg7[%c3_427, %c0_428] : memref<8x128xf32, #tpu.memory_space<vmem>>, vector<1x128xf32>
    %481 = vector.broadcast %480 : vector<1x128xf32> to vector<64x128xf32>
    %482 = arith.addf %479, %481 : vector<64x128xf32>
    %483 = arith.negf %482 : vector<64x128xf32>
    %484 = math.exp %483 : vector<64x128xf32>
    %cst_429 = arith.constant 1.000000e+00 : f32
    %485 = vector.broadcast %cst_429 : f32 to vector<64x128xf32>
    %486 = arith.addf %485, %484 : vector<64x128xf32>
    %487 = arith.divf %485, %486 : vector<64x128xf32>
    %488 = tpu.iota {dimensions = array<i32: 1>} : vector<64x128xi32>
    %489 = arith.sitofp %488 : vector<64x128xi32> to vector<64x128xf32>
    %490 = vector.broadcast %318 : vector<1x1xf32> to vector<64x128xf32>
    %491 = arith.cmpf oeq, %489, %490 : vector<64x128xf32>
    %cst_430 = arith.constant 0.000000e+00 : f32
    %492 = vector.broadcast %cst_430 : f32 to vector<64x128xf32>
    %493 = arith.select %491, %487, %492 : vector<64x128xi1>, vector<64x128xf32>
    %cst_431 = arith.constant dense<0.000000e+00> : vector<64xf32>
    %494 = vector.multi_reduction <add>, %493, %cst_431 [1] : vector<64x128xf32> to vector<64xf32>
    %495 = vector.shape_cast %494 : vector<64xf32> to vector<64x1xf32>
    %cst_432 = arith.constant 5.000000e-01 : f32
    %496 = vector.broadcast %cst_432 : f32 to vector<64x1xf32>
    %497 = arith.cmpf ogt, %495, %496 : vector<64x1xf32>
    %498 = arith.extui %497 : vector<64x1xi1> to vector<64x1xi32>
    %499 = arith.sitofp %498 : vector<64x1xi32> to vector<64x1xf32>
    %cst_433 = arith.constant 0.000000e+00 : f32
    %500 = vector.broadcast %cst_433 : f32 to vector<64x128xf32>
    %501 = arith.cmpf oeq, %489, %500 : vector<64x128xf32>
    %cst_434 = arith.constant 0.000000e+00 : f32
    %502 = vector.shape_cast %495 : vector<64x1xf32> to vector<64x1xf32>
    %503 = vector.broadcast %502 : vector<64x1xf32> to vector<64x128xf32>
    %504 = vector.broadcast %cst_434 : f32 to vector<64x128xf32>
    %505 = arith.select %501, %503, %504 : vector<64x128xi1>, vector<64x128xf32>
    %cst_435 = arith.constant 1.000000e+00 : f32
    %506 = vector.broadcast %cst_435 : f32 to vector<64x128xf32>
    %507 = arith.cmpf oeq, %489, %506 : vector<64x128xf32>
    %cst_436 = arith.constant 0.000000e+00 : f32
    %508 = vector.shape_cast %499 : vector<64x1xf32> to vector<64x1xf32>
    %509 = vector.broadcast %508 : vector<64x1xf32> to vector<64x128xf32>
    %510 = vector.broadcast %cst_436 : f32 to vector<64x128xf32>
    %511 = arith.select %507, %509, %510 : vector<64x128xi1>, vector<64x128xf32>
    %512 = arith.addf %505, %511 : vector<64x128xf32>
    %513 = vector.shape_cast %512 : vector<64x128xf32> to vector<1x64x128xf32>
    %c0_437 = arith.constant 0 : index
    %c0_438 = arith.constant 0 : index
    %c0_439 = arith.constant 0 : index
    %514 = vector.load %arg9[%c0_437, %c0_438, %c0_439] : memref<1x64x128xf32, #tpu.memory_space<vmem>>, vector<1x64x128xf32>
    tpu.vector_store %arg9[%c0_437, %c0_438, %c0_439], %513 {strides = array<i32>} : memref<1x64x128xf32, #tpu.memory_space<vmem>>, vector<1x64x128xf32>,
    return
  }
  func.func @transform_0(%arg0: i32) -> (i32, i32, i32, i32, i32) {
    %c0_i32 = arith.constant 0 : i32
    %c0_i32_0 = arith.constant 0 : i32
    %c0_i32_1 = arith.constant 0 : i32
    %c0_i32_2 = arith.constant 0 : i32
    %c0_i32_3 = arith.constant 0 : i32
    return %arg0, %c0_i32, %c0_i32_0, %c0_i32_1, %c0_i32_2 : i32, i32, i32, i32, i32
  }
  func.func @transform_1(%arg0: i32) -> (i32, i32, i32) {
    %c0_i32 = arith.constant 0 : i32
    %c0_i32_0 = arith.constant 0 : i32
    %c0_i32_1 = arith.constant 0 : i32
    %c0_i32_2 = arith.constant 0 : i32
    return %c0_i32, %c0_i32_0, %c0_i32_1 : i32, i32, i32
  }
  func.func @transform_2(%arg0: i32) -> (i32, i32, i32) {
    %c0_i32 = arith.constant 0 : i32
    %c0_i32_0 = arith.constant 0 : i32
    %c0_i32_1 = arith.constant 0 : i32
    %c0_i32_2 = arith.constant 0 : i32
    return %c0_i32, %c0_i32_0, %c0_i32_1 : i32, i32, i32
  }
  func.func @transform_3(%arg0: i32) -> (i32, i32, i32) {
    %c0_i32 = arith.constant 0 : i32
    %c0_i32_0 = arith.constant 0 : i32
    %c0_i32_1 = arith.constant 0 : i32
    %c0_i32_2 = arith.constant 0 : i32
    return %c0_i32, %c0_i32_0, %c0_i32_1 : i32, i32, i32
  }
  func.func @transform_4(%arg0: i32) -> (i32, i32) {
    %c0_i32 = arith.constant 0 : i32
    %c0_i32_0 = arith.constant 0 : i32
    %c0_i32_1 = arith.constant 0 : i32
    return %c0_i32, %c0_i32_0 : i32, i32
  }
  func.func @transform_5(%arg0: i32) -> (i32, i32) {
    %c0_i32 = arith.constant 0 : i32
    %c0_i32_0 = arith.constant 0 : i32
    %c0_i32_1 = arith.constant 0 : i32
    return %c0_i32, %c0_i32_0 : i32, i32
  }
  func.func @transform_6(%arg0: i32) -> (i32, i32) {
    %c0_i32 = arith.constant 0 : i32
    %c0_i32_0 = arith.constant 0 : i32
    %c0_i32_1 = arith.constant 0 : i32
    return %c0_i32, %c0_i32_0 : i32, i32
  }
  func.func @transform_7(%arg0: i32) -> (i32, i32, i32) {
    %c0_i32 = arith.constant 0 : i32
    %c0_i32_0 = arith.constant 0 : i32
    %c0_i32_1 = arith.constant 0 : i32
    return %arg0, %c0_i32, %c0_i32_0 : i32, i32, i32
  }
  func.func @transform_8(%arg0: i32) -> (i32, i32, i32) {
    %c0_i32 = arith.constant 0 : i32
    %c0_i32_0 = arith.constant 0 : i32
    %c0_i32_1 = arith.constant 0 : i32
    return %arg0, %c0_i32, %c0_i32_0 : i32, i32, i32
  }
}

</mosaic_0001>

<bundles_post_ra>
// kernel: squeeze.18
= control target key start
LH: loop header
LB: loop body
LE: loop exit
PB: predicated region body
PF: predicated region fallthrough
CT: control target
= control target key end

     0   :  { %s67_s8 = smov 104   ;;  %vm8_vm0 = vcmask 64512   ;;  %s68_s11 = smov 112   ;;  %s118_s0 = inlined_call_operand.vmem [shape: f32[2,64], index: 0, kind: input, shape index: {}]   ;;  %s119_s1 = inlined_call_operand.vmem [shape: f32[2,8,8], index: 1, kind: output, shape index: {}]  }
   0x1   :  { %v5_v0 = vld [vmem:[%s118_s0] sm:$0x3]  ;;  %s66_s0 = smov 120   ;;  %s69_s12 = smov 96  }
   0x2   :  { %6 = vst [vmem:[#allocation0] sm:$0x3] %v5_v0  ;;  %s70_s13 = smov 88   ;;  %s71_s14 = smov 80  }
   0x3   :  { %s72_s15 = smov 72  }
   0x9   :  { %v10_v1 = vld [vmem:[#allocation0] sm:$0x3]  }
   0xa   :  { %v22_v2 = vld [vmem:[#allocation0] sm:$0x3]   ;;  %11 = vrot.lane.b32.xlu0 %v10_v1, %s66_s0 }
   0xb   :  { %23 = vrot.lane.b32.xlu1 %v22_v2, %s67_s8  ;;  %v16_v3 = vld [vmem:[#allocation0] sm:$0x3]  }
   0xc   :  { %v28_v4 = vld [vmem:[#allocation0] sm:$0x3]  }
   0xd   :  { %v7_v5 = vld [vmem:[#allocation0] sm:$0x3]  }
   0xe   :  { %9 = vst.msk [vmem:[%s119_s1] ss:$8 sm:$0x3] %vm8_vm0, %v7_v5   ;;  %17 = vrot.lane.b32.xlu0 %v16_v3, %s68_s11  ;;  %v34_v6 = vld [vmem:[#allocation0] sm:$0x3]  }
   0xf   :  { %29 = vrot.lane.b32.xlu1 %v28_v4, %s69_s12  ;;  %v40_v7 = vld [vmem:[#allocation0] sm:$0x3]  }
  0x10   :  { %v46_v8 = vld [vmem:[#allocation0] sm:$0x3]  }
  0x12   :  { %35 = vrot.lane.b32.xlu0 %v34_v6, %s70_s13 }
  0x13   :  { %41 = vrot.lane.b32.xlu1 %v40_v7, %s71_s14 }
  0x16   :  { %47 = vrot.lane.b32.xlu0 %v46_v8, %s72_s15 }
  0x7c   :  { %v12_v9 = vpop.permute.xlu0 %11  }
  0x7d   :  { %v24_v10 = vpop.permute.xlu1 %23   ;;  %52 = vst.msk [vmem:[%s119_s1 + $0x1] ss:$8 sm:$0x3] %vm8_vm0, %v12_v9  }
  0x7e   :  { %54 = vst.msk [vmem:[%s119_s1 + $0x3] ss:$8 sm:$0x3] %vm8_vm0, %v24_v10  }
  0x80   :  { %v18_v11 = vpop.permute.xlu0 %17  }
  0x81   :  { %v30_v12 = vpop.permute.xlu1 %29   ;;  %53 = vst.msk [vmem:[%s119_s1 + $0x2] ss:$8 sm:$0x3] %vm8_vm0, %v18_v11  }
  0x82   :  { %55 = vst.msk [vmem:[%s119_s1 + $0x4] ss:$8 sm:$0x3] %vm8_vm0, %v30_v12  }
  0x84   :  { %v36_v13 = vpop.permute.xlu0 %35  }
  0x85   :  { %v42_v14 = vpop.permute.xlu1 %41   ;;  %56 = vst.msk [vmem:[%s119_s1 + $0x5] ss:$8 sm:$0x3] %vm8_vm0, %v36_v13  }
  0x86   :  { %57 = vst.msk [vmem:[%s119_s1 + $0x6] ss:$8 sm:$0x3] %vm8_vm0, %v42_v14  }
  0x88   :  { %v48_v15 = vpop.permute.xlu0 %47  }
  0x89   :  { %58 = vst.msk [vmem:[%s119_s1 + $0x7] ss:$8 sm:$0x3] %vm8_vm0, %v48_v15  }

// kernel: _forward_jit.1
= control target key start
LH: loop header
LB: loop body
LE: loop exit
PB: predicated region body
PF: predicated region fallthrough
CT: control target
= control target key end

     0   :  { %s7768_s27 = smov 0   ;;  %s10023_s0 = inlined_call_operand.vmem [shape: f32[2,16,9,9,3], index: 0, kind: input, shape index: {}]   ;;  %s10024_s1 = inlined_call_operand.vmem [shape: bf16[9,3,8], index: 1, kind: input, shape index: {}]   ;;  %s10025_s2 = inlined_call_operand.vmem [shape: bf16[9,8,16], index: 2, kind: input, shape index: {}]   ;;  %s10026_s3 = inlined_call_operand.vmem [shape: bf16[9,16,8], index: 3, kind: input, shape index: {}]   ;;  %s10027_s4 = inlined_call_operand.vmem [shape: bf16[8,128], index: 4, kind: input, shape index: {}]   ;;  %s10028_s5 = inlined_call_operand.vmem [shape: bf16[1280,128], index: 5, kind: input, shape index: {}]   ;;  %s10029_s6 = inlined_call_operand.vmem [shape: f32[8,128], index: 6, kind: input, shape index: {}]   ;;  %s10030_s7 = inlined_call_operand.vmem [shape: f32[2,1,128], index: 7, kind: output, shape index: {0}]   ;;  %s10031_s8 = inlined_call_operand.vmem [shape: f32[2,64,128], index: 8, kind: output, shape index: {1}]  }
   0x1 LB: > { %s6068_s28 = sadd.s32 4294967295, %s7711_s27   ;;  %p6072_p0 = scmp.ge.s32.totalorder %s7711_s27, 1  ;;  %s7711_s27 = sphi %s7768_s27, %s19_s27  }
   0x2   : > { %p265_p1 = scmp.lt.s32.totalorder %s7711_s27, 3 }
   0x4   : > { %p266_p2 = pnand %p6072_p0, %p265_p1 }
   0x6   : > { %269 = sbr.rel (%p266_p2) target bundleno = 2029 (0x7ed), region = 48 }
   0xb   : > { %v6132_v0 = vld [vmem:[%s10024_s1 + $0x2] sm:$0x3]  ;;  %vm471_vm0 = vcmask 1040384   ;;  %vm472_vm1 = vcmask 1041408   ;;  %p302_p3 = scmp.lt.s32.totalorder %s6068_s28, 1  ;;  %v7713_v1 = vmov 65535  }
   0xc   : > { %v473_v2 = vsel %vm471_vm0, 4294967295, %v7713_v1  ;;  %v6173_v3 = vld [vmem:[%s10024_s1 + $0x4] sm:$0x3]  ;;  %v367_v4 = vld [vmem:[%s10024_s1] sm:$0x3]  ;;  %vm422_vm2 = vcmask 23552  }
   0xd   : > { %v7786_v5 = vsel %vm472_vm1, %v473_v2, 0  ;;  %s10224_s28 = smov (!%p302_p3, %s6068_s28), 1  ;;  %v6222_v9 = vld [vmem:[%s10024_s1 + $0x6] sm:$0x3]  ;;  %v6271_v10 = vld [vmem:[%s10024_s1 + $0x8] sm:$0x3] }
   0xe   : > { %v476_v6 = vand.u32 %v6132_v0, %v7786_v5  ;;  %v902_v7 = vand.u32 %v6173_v3, %v7786_v5  ;;  %v688_v8 = vand.u32 %v7786_v5, %v367_v4  ;;  %s7526_s13 = smul.u32 2304, %s10224_s28  ;;  %v1200_v27 = vand.u32 %v6222_v9, %v7786_v5  ;;  %v6304_v40 = vld [vmem:[%s10024_s1 + $0xa] sm:$0x3]  ;;  %s7715_s19 = smov 32  }
   0xf   : > { %v7827_v30 = vand.u32 %v6271_v10, %v7786_v5  ;;  %v7846_v44 = vand.u32 %v6304_v40, %v7786_v5  ;;  %vm2876_vm3 = vcmask 1043456   ;;  %vm2726_vm4 = vcmask 64512   ;;  %s7716_s30 = smov 48   ;;  %s7718_s22 = smov 64  }
  0x10   : > { %6978 = vmatprep.subr.bf16.mxu0 %v476_v6  ;;  %7514 = vmatprep.subr.bf16.mxu1 %v476_v6  ;;  %s7800_s18 = scalar_lea.vmem %s10023_s0, %s7526_s13  ;;  %vm2728_vm5 = vcmask 57344   ;;  %vm3788_vm6 = vcmask 130048   ;;  %vm4777_vm7 = vcmask 123904   ;;  %s7717_s13 = smov 16   ;;  %vm3790_vm8 = vcmask 261120  }
  0x11   : > { %6979 = vmatpush3.bf16.msra.mxu0 %v476_v6  ;;  %7515 = vmatpush3.bf16.msra.mxu1 %v476_v6  ;;  %v6100_v11 = vld [vmem:[%s7800_s18 + $0x90] sm:$0xff]  ;;  %v6101_v12 = vld [vmem:[%s7800_s18 + $0xa0] sm:$0xff]  ;;  %s7719_s23 = smov 96   ;;  %s7720_s24 = smov 80   ;;  %vm3792_vm9 = vcmask 392192   ;;  %vm3794_vm10 = vcmask 523264  }
  0x12   : > { %v6128_v13 = vld [vmem:[%s7800_s18 + $0x670] sm:$0xff]  ;;  %7046 = vmatprep.subr.bf16.mxu0 %v902_v7  ;;  %7012 = vmatprep.subr.bf16.mxu1 %v688_v8  ;;  %v404_v14 = vpack.c.bf16 %v6101_v12, %v6100_v11  ;;  %v6129_v15 = vld [vmem:[%s7800_s18 + $0x680] sm:$0xff]  ;;  %s7721_s25 = smov 112   ;;  %vm3796_vm11 = vcmask 654336   ;;  %vm3798_vm12 = vcmask 785408   ;;  %vm3800_vm13 = vcmask 916480   ;;  %s309_s14 = scalar_lea.vmem %s10030_s7, %s10224_s28 }
  0x13   : > { %v6102_v16 = vld [vmem:[%s7800_s18 + $0xb0] sm:$0xff]  ;;  %v6103_v17 = vld [vmem:[%s7800_s18 + $0xc0] sm:$0xff]  ;;  %v7811_v18 = vpack.c.bf16 %v6129_v15, %v6128_v13  ;;  %vm7722_vm14 = vmmov 0  }
  0x14   : > { %v405_v19 = vpack.c.bf16 %v6103_v17, %v6102_v16  ;;  %v6130_v20 = vld [vmem:[%s7800_s18 + $0x690] sm:$0xff]  ;;  %v6131_v21 = vld [vmem:[%s7800_s18 + $0x6a0] sm:$0xff]  ;;  %6980 = vmatprep.mubr.msk.bf16.mxu0 %vm422_vm2, %v404_v14 }
  0x15   : > { %v6104_v22 = vld [vmem:[%s7800_s18 + $0xd0] sm:$0xff]  ;;  %v7817_v23 = vpack.c.bf16 %v6131_v21, %v6130_v20  ;;  %v6105_v24 = vld [vmem:[%s7800_s18 + $0xe0] sm:$0xff]  ;;  %7008 = vmatprep.mubr.msk.bf16.mxu1 %vm422_vm2, %v7811_v18 }
  0x16   : > { %v316_v25 = vld [vmem:[%s7800_s18] sm:$0xff]  ;;  %v317_v26 = vld [vmem:[%s7800_s18 + $0x10] sm:$0xff]  ;;  %6981 = vmatmul.mubr.msk.bf16.vlgmr.msra.gmra.mxu0 %vm422_vm2, %v405_v19  ;;  %v406_v28 = vpack.c.bf16 %v6105_v24, %v6104_v22 }
  0x17   : > { %v351_v29 = vpack.c.bf16 %v317_v26, %v316_v25  ;;  %7009 = vmatmul.mubr.msk.bf16.vlgmr.msra.gmra.mxu1 %vm422_vm2, %v7817_v23  ;;  %7047 = vmatpush3.bf16.msra.mxu0 %v902_v7  ;;  %v6106_v31 = vld [vmem:[%s7800_s18 + $0xf0] sm:$0xff]  ;;  %v6107_v32 = vld [vmem:[%s7800_s18 + $0x100] sm:$0xff] }
  0x18   : > { %v318_v33 = vld [vmem:[%s7800_s18 + $0x20] sm:$0xff]  ;;  %7013 = vmatpush3.bf16.msra.mxu1 %v688_v8  ;;  %6984 = vmatprep.mubr.msk.bf16.mxu0 %vm422_vm2, %v406_v28  ;;  %v319_v34 = vld [vmem:[%s7800_s18 + $0x30] sm:$0xff]  ;;  %v407_v39 = vpack.c.bf16 %v6107_v32, %v6106_v31 }
  0x19   : > { %v6108_v35 = vld [vmem:[%s7800_s18 + $0x1b0] sm:$0xff]  ;;  %v6109_v36 = vld [vmem:[%s7800_s18 + $0x1c0] sm:$0xff]  ;;  %7014 = vmatprep.mubr.msk.bf16.mxu1 %vm422_vm2, %v351_v29  ;;  %7080 = vmatprep.subr.bf16.mxu1 %v1200_v27  ;;  %v352_v41 = vpack.c.bf16 %v319_v34, %v318_v33 }
  0x1a   : > { %v320_v37 = vld [vmem:[%s7800_s18 + $0x40] sm:$0xff]  ;;  %v321_v38 = vld [vmem:[%s7800_s18 + $0x50] sm:$0xff]  ;;  %7114 = vmatprep.subr.bf16.mxu0 %v7827_v30  ;;  %v408_v42 = vpack.c.bf16 %v6109_v36, %v6108_v35 }
  0x1b   : > { %v353_v43 = vpack.c.bf16 %v321_v38, %v320_v37  ;;  %v6110_v45 = vld [vmem:[%s7800_s18 + $0x1d0] sm:$0xff]  ;;  %v6111_v46 = vld [vmem:[%s7800_s18 + $0x1e0] sm:$0xff] }
  0x1c   : > { %v322_v47 = vld [vmem:[%s7800_s18 + $0x60] sm:$0xff]  ;;  %v323_v48 = vld [vmem:[%s7800_s18 + $0x70] sm:$0xff]  ;;  %v409_v53 = vpack.c.bf16 %v6111_v46, %v6110_v45 }
  0x1d   : > { %v6112_v49 = vld [vmem:[%s7800_s18 + $0x1f0] sm:$0xff]  ;;  %v6113_v50 = vld [vmem:[%s7800_s18 + $0x200] sm:$0xff]  ;;  %v354_v54 = vpack.c.bf16 %v323_v48, %v322_v47  ;;  %v6337_v47 = vld [vmem:[%s10024_s1 + $0xc] sm:$0x3] }
  0x1e   : > { %6985 = vmatmul.mubr.msk.bf16.gmra.mxu0 %vm422_vm2, %v407_v39  ;;  %v6076_v51 = vld [vmem:[%s7800_s18 + $0x120] sm:$0xff]  ;;  %v6077_v52 = vld [vmem:[%s7800_s18 + $0x130] sm:$0xff]  ;;  %v410_v55 = vpack.c.bf16 %v6113_v50, %v6112_v49  ;;  %v7963_v50 = vand.u32 %v6337_v47, %v7786_v5 }
  0x1f   : > { %7015 = vmatmul.mubr.msk.bf16.vlgmr.msra.gmra.mxu1 %vm422_vm2, %v352_v41  ;;  %6988 = vmatprep.mubr.msk.bf16.mxu0 %vm422_vm2, %v408_v42  ;;  %v7861_v56 = vpack.c.bf16 %v6077_v52, %v6076_v51  ;;  %v6114_v57 = vld [vmem:[%s7800_s18 + $0x210] sm:$0xff]  ;;  %v6115_v58 = vld [vmem:[%s7800_s18 + $0x220] sm:$0xff] }
  0x20   : > { %7018 = vmatprep.mubr.msk.bf16.mxu1 %vm422_vm2, %v353_v43  ;;  %7081 = vmatpush3.bf16.msra.mxu1 %v1200_v27  ;;  %v6078_v59 = vld [vmem:[%s7800_s18 + $0x140] sm:$0xff]  ;;  %v6079_v60 = vld [vmem:[%s7800_s18 + $0x150] sm:$0xff]  ;;  %v411_v1 = vpack.c.bf16 %v6115_v58, %v6114_v57 }
  0x21   : > { %7148 = vmatprep.subr.bf16.mxu1 %v7846_v44  ;;  %v6116_v61 = vld [vmem:[%s7800_s18 + $0x510] sm:$0xff]  ;;  %v6117_v62 = vld [vmem:[%s7800_s18 + $0x520] sm:$0xff]  ;;  %v356_v2 = vpack.c.bf16 %v6079_v60, %v6078_v59 }
  0x22   : > { %v6080_v63 = vld [vmem:[%s7800_s18 + $0x160] sm:$0xff]  ;;  %v6081_v0 = vld [vmem:[%s7800_s18 + $0x170] sm:$0xff]  ;;  %v7876_v3 = vpack.c.bf16 %v6117_v62, %v6116_v61 }
  0x23   : > { %v7878_v4 = vpack.c.bf16 %v6081_v0, %v6080_v63  ;;  %v6118_v6 = vld [vmem:[%s7800_s18 + $0x530] sm:$0xff]  ;;  %v6119_v7 = vld [vmem:[%s7800_s18 + $0x540] sm:$0xff] }
  0x24   : > { %v6082_v8 = vld [vmem:[%s7800_s18 + $0x180] sm:$0xff]  ;;  %v6083_v9 = vld [vmem:[%s7800_s18 + $0x190] sm:$0xff]  ;;  %v7894_v14 = vpack.c.bf16 %v6119_v7, %v6118_v6 }
  0x25   : > { %v6120_v10 = vld [vmem:[%s7800_s18 + $0x550] sm:$0xff]  ;;  %v6121_v11 = vld [vmem:[%s7800_s18 + $0x560] sm:$0xff]  ;;  %v358_v15 = vpack.c.bf16 %v6083_v9, %v6082_v8 }
  0x26   : > { %6989 = vmatmul.mubr.msk.bf16.gmra.mxu0 %vm422_vm2, %v409_v53  ;;  %v6084_v12 = vld [vmem:[%s7800_s18 + $0x480] sm:$0xff]  ;;  %v6085_v13 = vld [vmem:[%s7800_s18 + $0x490] sm:$0xff]  ;;  %v7896_v16 = vpack.c.bf16 %v6121_v11, %v6120_v10 }
  0x27   : > { %7019 = vmatmul.mubr.msk.bf16.gmra.mxu1 %vm422_vm2, %v354_v54  ;;  %6992 = vmatprep.mubr.msk.bf16.mxu0 %vm422_vm2, %v410_v55  ;;  %v7898_v17 = vpack.c.bf16 %v6085_v13, %v6084_v12  ;;  %v6122_v19 = vld [vmem:[%s7800_s18 + $0x570] sm:$0xff]  ;;  %v6123_v20 = vld [vmem:[%s7800_s18 + $0x580] sm:$0xff] }
  0x28   : > { %7022 = vmatprep.mubr.msk.bf16.mxu1 %vm422_vm2, %v7861_v56  ;;  %v6086_v21 = vld [vmem:[%s7800_s18 + $0x4a0] sm:$0xff]  ;;  %v6087_v22 = vld [vmem:[%s7800_s18 + $0x4b0] sm:$0xff]  ;;  %v7915_v28 = vpack.c.bf16 %v6123_v20, %v6122_v19 }
  0x29   : > { %v6124_v24 = vld [vmem:[%s7800_s18 + $0x630] sm:$0xff]  ;;  %v6125_v25 = vld [vmem:[%s7800_s18 + $0x640] sm:$0xff]  ;;  %v7917_v29 = vpack.c.bf16 %v6087_v22, %v6086_v21 }
  0x2a   : > { %v6088_v26 = vld [vmem:[%s7800_s18 + $0x4c0] sm:$0xff]  ;;  %v6089_v27 = vld [vmem:[%s7800_s18 + $0x4d0] sm:$0xff]  ;;  %v7919_v31 = vpack.c.bf16 %v6125_v25, %v6124_v24 }
  0x2b   : > { %v7921_v32 = vpack.c.bf16 %v6089_v27, %v6088_v26  ;;  %v6126_v33 = vld [vmem:[%s7800_s18 + $0x650] sm:$0xff]  ;;  %v6127_v34 = vld [vmem:[%s7800_s18 + $0x660] sm:$0xff] }
  0x2c   : > { %v6090_v35 = vld [vmem:[%s7800_s18 + $0x4e0] sm:$0xff]  ;;  %v6091_v36 = vld [vmem:[%s7800_s18 + $0x4f0] sm:$0xff]  ;;  %v7937_v39 = vpack.c.bf16 %v6127_v34, %v6126_v33 }
  0x2d   : > { %v6092_v37 = vld [vmem:[%s7800_s18 + $0x5a0] sm:$0xff]  ;;  %v6093_v38 = vld [vmem:[%s7800_s18 + $0x5b0] sm:$0xff]  ;;  %v7939_v40 = vpack.c.bf16 %v6091_v36, %v6090_v35 }
  0x2e   : > { %6993 = vmatmul.mubr.msk.bf16.gmra.mxu0 %vm422_vm2, %v411_v1  ;;  %v7941_v41 = vpack.c.bf16 %v6093_v38, %v6092_v37  ;;  %v6094_v42 = vld [vmem:[%s7800_s18 + $0x5c0] sm:$0xff]  ;;  %v6095_v43 = vld [vmem:[%s7800_s18 + $0x5d0] sm:$0xff] }
  0x2f   : > { %7023 = vmatmul.mubr.msk.bf16.gmra.mxu1 %vm422_vm2, %v356_v2  ;;  %6996 = vmatprep.mubr.msk.bf16.mxu0 %vm422_vm2, %v7876_v3  ;;  %v6096_v45 = vld [vmem:[%s7800_s18 + $0x5e0] sm:$0xff]  ;;  %v6097_v46 = vld [vmem:[%s7800_s18 + $0x5f0] sm:$0xff]  ;;  %v7958_v48 = vpack.c.bf16 %v6095_v43, %v6094_v42 }
  0x30   : > { %7026 = vmatprep.mubr.msk.bf16.mxu1 %vm422_vm2, %v7878_v4  ;;  %v7960_v49 = vpack.c.bf16 %v6097_v46, %v6096_v45  ;;  %v6098_v51 = vld [vmem:[%s7800_s18 + $0x600] sm:$0xff]  ;;  %v6099_v52 = vld [vmem:[%s7800_s18 + $0x610] sm:$0xff] }
  0x31   : > { %v851_v53 = vld [vmem:[%s7800_s18 + $0x1] sm:$0xff]  ;;  %v852_v54 = vld [vmem:[%s7800_s18 + $0x11] sm:$0xff]  ;;  %v7980_v57 = vpack.c.bf16 %v6099_v52, %v6098_v51 }
  0x32   : > { %v6190_v55 = vld [vmem:[%s7800_s18 + $0x240] sm:$0xff]  ;;  %v867_v58 = vpack.c.bf16 %v852_v54, %v851_v53  ;;  %v854_v61 = vld [vmem:[%s7800_s18 + $0x31] sm:$0xff] }
  0x33   : > { %v853_v60 = vld [vmem:[%s7800_s18 + $0x21] sm:$0xff]  ;;  %v6193_v62 = vld [vmem:[%s7800_s18 + $0x270] sm:$0xff] }
  0x34   : > { %v855_v63 = vld [vmem:[%s7800_s18 + $0x41] sm:$0xff]  ;;  %v856_v0 = vld [vmem:[%s7800_s18 + $0x51] sm:$0xff]  ;;  %v868_v6 = vpack.c.bf16 %v854_v61, %v853_v60 }
  0x35   : > { %v6194_v1 = vld [vmem:[%s7800_s18 + $0x280] sm:$0xff]  ;;  %v869_v8 = vpack.c.bf16 %v856_v0, %v855_v63  ;;  %v858_v11 = vld [vmem:[%s7800_s18 + $0x71] sm:$0xff] }
  0x36   : > { %6997 = vmatmul.mubr.msk.bf16.gmra.mxu0 %vm422_vm2, %v7894_v14  ;;  %v857_v10 = vld [vmem:[%s7800_s18 + $0x61] sm:$0xff]  ;;  %v6199_v20 = vld [vmem:[%s7800_s18 + $0x370] sm:$0xff] }
  0x37   : > { %7027 = vmatmul.mubr.msk.bf16.gmra.mxu1 %vm422_vm2, %v358_v15  ;;  %7000 = vmatprep.mubr.msk.bf16.mxu0 %vm422_vm2, %v7896_v16  ;;  %v6196_v13 = vld [vmem:[%s7800_s18 + $0x2a0] sm:$0xff]  ;;  %v870_v21 = vpack.c.bf16 %v858_v11, %v857_v10  ;;  %v6201_v26 = vld [vmem:[%s7800_s18 + $0x390] sm:$0xff] }
  0x38   : > { %7030 = vmatprep.mubr.msk.bf16.mxu1 %vm422_vm2, %v7898_v17  ;;  %v6198_v19 = vld [vmem:[%s7800_s18 + $0x360] sm:$0xff]  ;;  %v6203_v27 = vld [vmem:[%s7800_s18 + $0x3b0] sm:$0xff] }
  0x39   : > { %v8013_v24 = vpack.c.bf16 %v6199_v20, %v6198_v19  ;;  %v6200_v25 = vld [vmem:[%s7800_s18 + $0x380] sm:$0xff]  ;;  %v6205_v36 = vld [vmem:[%s7800_s18 + $0x3d0] sm:$0xff] }
  0x3a   : > { %v8025_v33 = vpack.c.bf16 %v6201_v26, %v6200_v25  ;;  %v6204_v35 = vld [vmem:[%s7800_s18 + $0x3c0] sm:$0xff]  ;;  %v6166_v38 = vld [vmem:[%s7800_s18 + $0x491] sm:$0xff] }
  0x3b   : > { %v6165_v37 = vld [vmem:[%s7800_s18 + $0x481] sm:$0xff]  ;;  %v6207_v43 = vld [vmem:[%s7800_s18 + $0x6d0] sm:$0xff]  ;;  %v8043_v45 = vpack.c.bf16 %v6205_v36, %v6204_v35 }
  0x3c   : > { %v6206_v42 = vld [vmem:[%s7800_s18 + $0x6c0] sm:$0xff]  ;;  %v8045_v46 = vpack.c.bf16 %v6166_v38, %v6165_v37  ;;  %v6168_v52 = vld [vmem:[%s7800_s18 + $0x4b1] sm:$0xff] }
  0x3d   : > { %v1141_v47 = vpack.c.bf16 %v6207_v43, %v6206_v42  ;;  %v6167_v51 = vld [vmem:[%s7800_s18 + $0x4a1] sm:$0xff]  ;;  %v6209_v54 = vld [vmem:[%s7800_s18 + $0x6f0] sm:$0xff] }
  0x3e   : > { %7001 = vmatmul.mubr.msk.bf16.gmra.mxu0 %vm422_vm2, %v7915_v28  ;;  %v6208_v53 = vld [vmem:[%s7800_s18 + $0x6e0] sm:$0xff]  ;;  %v8062_v60 = vpack.c.bf16 %v6168_v52, %v6167_v51  ;;  %v6172_v0 = vld [vmem:[%s7800_s18 + $0x4f1] sm:$0xff] }
  0x3f   : > { %7031 = vmatmul.mubr.msk.bf16.gmra.mxu1 %vm422_vm2, %v7917_v29  ;;  %7004 = vmatprep.mubr.msk.bf16.mxu0 %vm422_vm2, %v7919_v31  ;;  %v1142_v61 = vpack.c.bf16 %v6209_v54, %v6208_v53  ;;  %v6171_v63 = vld [vmem:[%s7800_s18 + $0x4e1] sm:$0xff]  ;;  %v6219_v25 = vld [vmem:[%s7800_s18 + $0x830] sm:$0xff] }
  0x40   : > { %7034 = vmatprep.mubr.msk.bf16.mxu1 %vm422_vm2, %v7921_v32  ;;  %v6242_v19 = vld [vmem:[%s7800_s18 + $0x300] sm:$0xff]  ;;  %v6243_v26 = vld [vmem:[%s7800_s18 + $0x310] sm:$0xff] }
  0x41   : > { %v6216_v20 = vld [vmem:[%s7800_s18 + $0x800] sm:$0xff]  ;;  %v6395_v35 = vld [vmem:[%s10024_s1 + $0x10] sm:$0x3] }
  0x42   : > { %v8106_v42 = vand.u32 %v6395_v35, %v7786_v5  ;;  %v6220_v43 = vld [vmem:[%s7800_s18 + $0x840] sm:$0xff]  ;;  %v6247_v52 = vld [vmem:[%s7800_s18 + $0x3f0] sm:$0xff] }
  0x43   : > { %v6246_v51 = vld [vmem:[%s7800_s18 + $0x340] sm:$0xff] }
  0x44   : > { %v6248_v53 = vld [vmem:[%s7800_s18 + $0x400] sm:$0xff] }
  0x45   : > { %v6294_v35 = vld [vmem:[%s7800_s18 + $0x2a1] sm:$0xff] }
  0x46   : > { %7005 = vmatmul.mubr.msk.bf16.gmra.mxu0 %vm422_vm2, %v7937_v39 }
  0x47   : > { %7035 = vmatmul.mubr.msk.bf16.gmra.mxu1 %vm422_vm2, %v7939_v40  ;;  %7048 = vmatprep.mubr.msk.bf16.mxu0 %vm422_vm2, %v7861_v56  ;;  %v6191_v56 = vld [vmem:[%s7800_s18 + $0x250] sm:$0xff] }
  0x48   : > { %7038 = vmatprep.mubr.msk.bf16.mxu1 %vm422_vm2, %v7941_v41  ;;  %v1133_v59 = vpack.c.bf16 %v6191_v56, %v6190_v55  ;;  %v6169_v55 = vld [vmem:[%s7800_s18 + $0x4c1] sm:$0xff]  ;;  %v6170_v56 = vld [vmem:[%s7800_s18 + $0x4d1] sm:$0xff] }
  0x4e   : > { %7049 = vmatmul.mubr.msk.bf16.vlgmr.msra.gmra.mxu0 %vm422_vm2, %v356_v2  ;;  %v6195_v2 = vld [vmem:[%s7800_s18 + $0x290] sm:$0xff] }
  0x4f   : > { %7039 = vmatmul.mubr.msk.bf16.gmra.mxu1 %vm422_vm2, %v7958_v48  ;;  %7115 = vmatpush3.bf16.msra.mxu0 %v7827_v30  ;;  %v6192_v30 = vld [vmem:[%s7800_s18 + $0x260] sm:$0xff]  ;;  %v1135_v9 = vpack.c.bf16 %v6195_v2, %v6194_v1  ;;  %v6213_v2 = vld [vmem:[%s7800_s18 + $0x730] sm:$0xff] }
  0x50   : > { %7042 = vmatprep.mubr.msk.bf16.mxu1 %vm422_vm2, %v7960_v49  ;;  %7052 = vmatprep.mubr.msk.bf16.mxu0 %vm422_vm2, %v7878_v4  ;;  %v6370_v4 = vld [vmem:[%s10024_s1 + $0xe] sm:$0x3]  ;;  %v1134_v7 = vpack.c.bf16 %v6193_v62, %v6192_v30  ;;  %v8064_v30 = vpack.c.bf16 %v6170_v56, %v6169_v55  ;;  %v6212_v1 = vld [vmem:[%s7800_s18 + $0x720] sm:$0xff]  ;;  %v1435_v55 = vpack.c.bf16 %v6248_v53, %v6247_v52  ;;  %v6249_v56 = vld [vmem:[%s7800_s18 + $0x410] sm:$0xff] }
  0x51   : > { %7182 = vmatprep.subr.bf16.mxu0 %v7963_v50  ;;  %v8001_v12 = vand.u32 %v6370_v4, %v7786_v5  ;;  %v6239_v4 = vld [vmem:[%s7800_s18 + $0x2d0] sm:$0xff]  ;;  %v1144_v10 = vpack.c.bf16 %v6213_v2, %v6212_v1  ;;  %v6254_v1 = vld [vmem:[%s7800_s18 + $0x460] sm:$0xff] }
  0x52   : > { %v6221_v5 = vld [vmem:[%s7800_s18 + $0x850] sm:$0xff]  ;;  %v6256_v2 = vld [vmem:[%s7800_s18 + $0x760] sm:$0xff] }
  0x53   : > { %v6265_v53 = vld [vmem:[%s7800_s18 + $0x890] sm:$0xff] }
  0x56   : > { %7053 = vmatmul.mubr.msk.bf16.gmra.mxu0 %vm422_vm2, %v358_v15  ;;  %v6197_v15 = vld [vmem:[%s7800_s18 + $0x2b0] sm:$0xff] }
  0x57   : > { %7043 = vmatmul.mubr.msk.bf16.gmra.mxu1 %vm422_vm2, %v7980_v57  ;;  %7056 = vmatprep.mubr.msk.bf16.mxu0 %vm422_vm2, %v867_v58  ;;  %v1136_v22 = vpack.c.bf16 %v6197_v15, %v6196_v13  ;;  %v6210_v58 = vld [vmem:[%s7800_s18 + $0x700] sm:$0xff]  ;;  %v6241_v15 = vld [vmem:[%s7800_s18 + $0x2f0] sm:$0xff] }
  0x58   : > { %7082 = vmatprep.mubr.msk.bf16.mxu1 %vm422_vm2, %v1133_v59  ;;  %v6211_v59 = vld [vmem:[%s7800_s18 + $0x710] sm:$0xff] }
  0x59   : > { %v1143_v62 = vpack.c.bf16 %v6211_v59, %v6210_v58  ;;  %v6250_v58 = vld [vmem:[%s7800_s18 + $0x420] sm:$0xff]  ;;  %v6251_v59 = vld [vmem:[%s7800_s18 + $0x430] sm:$0xff] }
  0x5e   : > { %7057 = vmatmul.mubr.msk.bf16.gmra.mxu0 %vm422_vm2, %v868_v6  ;;  %v6240_v6 = vld [vmem:[%s7800_s18 + $0x2e0] sm:$0xff] }
  0x5f   : > { %7083 = vmatmul.mubr.msk.bf16.vlgmr.msra.gmra.mxu1 %vm422_vm2, %v1134_v7  ;;  %7060 = vmatprep.mubr.msk.bf16.mxu0 %vm422_vm2, %v869_v8  ;;  %v6214_v7 = vld [vmem:[%s7800_s18 + $0x7e0] sm:$0xff]  ;;  %v6215_v8 = vld [vmem:[%s7800_s18 + $0x7f0] sm:$0xff]  ;;  %v1431_v11 = vpack.c.bf16 %v6240_v6, %v6239_v4 }
  0x60   : > { %7086 = vmatprep.mubr.msk.bf16.mxu1 %vm422_vm2, %v1135_v9  ;;  %7149 = vmatpush3.bf16.msra.mxu1 %v7846_v44  ;;  %v6202_v44 = vld [vmem:[%s7800_s18 + $0x3a0] sm:$0xff]  ;;  %v8080_v9 = vpack.c.bf16 %v6172_v0, %v6171_v63  ;;  %v8082_v13 = vpack.c.bf16 %v6215_v8, %v6214_v7  ;;  %v6253_v0 = vld [vmem:[%s7800_s18 + $0x450] sm:$0xff] }
  0x61   : > { %7216 = vmatprep.subr.bf16.mxu1 %v8001_v12  ;;  %v8027_v34 = vpack.c.bf16 %v6203_v27, %v6202_v44  ;;  %v6244_v44 = vld [vmem:[%s7800_s18 + $0x320] sm:$0xff]  ;;  %v1432_v27 = vpack.c.bf16 %v6242_v19, %v6241_v15  ;;  %v1438_v6 = vpack.c.bf16 %v6254_v1, %v6253_v0  ;;  %v6259_v15 = vld [vmem:[%s7800_s18 + $0x790] sm:$0xff] }
  0x62   : > { %v1433_v38 = vpack.c.bf16 %v6244_v44, %v6243_v26  ;;  %v6288_v4 = vld [vmem:[%s7800_s18 + $0x241] sm:$0xff]  ;;  %v6261_v44 = vld [vmem:[%s7800_s18 + $0x7b0] sm:$0xff] }
  0x63   : > { %v6260_v19 = vld [vmem:[%s7800_s18 + $0x7a0] sm:$0xff] }
  0x66   : > { %7061 = vmatmul.mubr.msk.bf16.gmra.mxu0 %vm422_vm2, %v870_v21  ;;  %v6217_v21 = vld [vmem:[%s7800_s18 + $0x810] sm:$0xff] }
  0x67   : > { %7087 = vmatmul.mubr.msk.bf16.gmra.mxu1 %vm422_vm2, %v1136_v22  ;;  %7064 = vmatprep.mubr.msk.bf16.mxu0 %vm422_vm2, %v7941_v41  ;;  %v6218_v22 = vld [vmem:[%s7800_s18 + $0x820] sm:$0xff]  ;;  %v8101_v36 = vpack.c.bf16 %v6217_v21, %v6216_v20  ;;  %v6293_v21 = vld [vmem:[%s7800_s18 + $0x291] sm:$0xff] }
  0x68   : > { %7090 = vmatprep.mubr.msk.bf16.mxu1 %vm422_vm2, %v8013_v24  ;;  %v8103_v37 = vpack.c.bf16 %v6219_v25, %v6218_v22  ;;  %v6292_v20 = vld [vmem:[%s7800_s18 + $0x281] sm:$0xff]  ;;  %v1441_v25 = vpack.c.bf16 %v6260_v19, %v6259_v15 }
  0x69   : > { %v1711_v26 = vpack.c.bf16 %v6293_v21, %v6292_v20 }
  0x6e   : > { %7065 = vmatmul.mubr.msk.bf16.gmra.mxu0 %vm422_vm2, %v7958_v48 }
  0x6f   : > { %7091 = vmatmul.mubr.msk.bf16.gmra.mxu1 %vm422_vm2, %v8025_v33  ;;  %7068 = vmatprep.mubr.msk.bf16.mxu0 %vm422_vm2, %v7960_v49 }
  0x70   : > { %7094 = vmatprep.mubr.msk.bf16.mxu1 %vm422_vm2, %v8027_v34 }
  0x76   : > { %7069 = vmatmul.mubr.msk.bf16.gmra.mxu0 %vm422_vm2, %v7980_v57 }
  0x77   : > { %7095 = vmatmul.mubr.msk.bf16.gmra.mxu1 %vm422_vm2, %v8043_v45  ;;  %7072 = vmatprep.mubr.msk.bf16.mxu0 %vm422_vm2, %v8045_v46 }
  0x78   : > { %7098 = vmatprep.mubr.msk.bf16.mxu1 %vm422_vm2, %v1141_v47  ;;  %v6245_v47 = vld [vmem:[%s7800_s18 + $0x330] sm:$0xff] }
  0x79   : > { %v1434_v54 = vpack.c.bf16 %v6246_v51, %v6245_v47  ;;  %v6264_v47 = vld [vmem:[%s7800_s18 + $0x880] sm:$0xff] }
  0x7e   : > { %7073 = vmatmul.mubr.msk.bf16.gmra.mxu0 %vm422_vm2, %v8062_v60 }
  0x7f   : > { %7099 = vmatmul.mubr.msk.bf16.gmra.mxu1 %vm422_vm2, %v1142_v61  ;;  %7076 = vmatprep.mubr.msk.bf16.mxu0 %vm422_vm2, %v8064_v30  ;;  %v6252_v61 = vld [vmem:[%s7800_s18 + $0x440] sm:$0xff] }
  0x80   : > { %7102 = vmatprep.mubr.msk.bf16.mxu1 %vm422_vm2, %v1143_v62  ;;  %v1436_v62 = vpack.c.bf16 %v6250_v58, %v6249_v56  ;;  %v1437_v63 = vpack.c.bf16 %v6252_v61, %v6251_v59  ;;  %v6268_v56 = vld [vmem:[%s7800_s18 + $0x8c0] sm:$0xff]  ;;  %v6269_v61 = vld [vmem:[%s7800_s18 + $0x8d0] sm:$0xff] }
  0x86   : > { %7077 = vmatmul.mubr.msk.bf16.gmra.mxu0 %vm422_vm2, %v8080_v9 }
  0x87   : > { %7103 = vmatmul.mubr.msk.bf16.gmra.mxu1 %vm422_vm2, %v1144_v10  ;;  %7116 = vmatprep.mubr.msk.bf16.mxu0 %vm422_vm2, %v1431_v11  ;;  %v6258_v10 = vld [vmem:[%s7800_s18 + $0x780] sm:$0xff] }
  0x88   : > { %7106 = vmatprep.mubr.msk.bf16.mxu1 %vm422_vm2, %v8082_v13  ;;  %v6290_v11 = vld [vmem:[%s7800_s18 + $0x261] sm:$0xff] }
  0x8e   : > { %7117 = vmatmul.mubr.msk.bf16.vlgmr.msra.gmra.mxu0 %vm422_vm2, %v1432_v27  ;;  %v6262_v27 = vld [vmem:[%s7800_s18 + $0x7c0] sm:$0xff] }
  0x8f   : > { %7107 = vmatmul.mubr.msk.bf16.gmra.mxu1 %vm422_vm2, %v8101_v36  ;;  %7183 = vmatpush3.bf16.msra.mxu0 %v7963_v50  ;;  %v8122_v50 = vpack.c.bf16 %v6221_v5, %v6220_v43  ;;  %v6263_v43 = vld [vmem:[%s7800_s18 + $0x870] sm:$0xff]  ;;  %v1442_v51 = vpack.c.bf16 %v6262_v27, %v6261_v44 }
  0x90   : > { %7110 = vmatprep.mubr.msk.bf16.mxu1 %vm422_vm2, %v8103_v37  ;;  %7120 = vmatprep.mubr.msk.bf16.mxu0 %vm422_vm2, %v1433_v38  ;;  %v6295_v38 = vld [vmem:[%s7800_s18 + $0x2b1] sm:$0xff]  ;;  %v1443_v52 = vpack.c.bf16 %v6264_v47, %v6263_v43 }
  0x91   : > { %7250 = vmatprep.subr.bf16.mxu0 %v8106_v42  ;;  %v1712_v5 = vpack.c.bf16 %v6295_v38, %v6294_v35 }
  0x96   : > { %7121 = vmatmul.mubr.msk.bf16.gmra.mxu0 %vm422_vm2, %v1434_v54  ;;  %v6266_v54 = vld [vmem:[%s7800_s18 + $0x8a0] sm:$0xff] }
  0x97   : > { %7111 = vmatmul.mubr.msk.bf16.gmra.mxu1 %vm422_vm2, %v8122_v50  ;;  %7124 = vmatprep.mubr.msk.bf16.mxu0 %vm422_vm2, %v1435_v55  ;;  %v6267_v55 = vld [vmem:[%s7800_s18 + $0x8b0] sm:$0xff]  ;;  %v1444_v58 = vpack.c.bf16 %v6266_v54, %v6265_v53  ;;  %v7673_v54 = vld [vmem:[%s7800_s18 + $0x40] sm:$0xff] }
  0x98   : > { %7150 = vmatprep.mubr.msk.bf16.mxu1 %vm422_vm2, %v8013_v24  ;;  %v6255_v24 = vld [vmem:[%s7800_s18 + $0x750] sm:$0xff]  ;;  %v1445_v59 = vpack.c.bf16 %v6268_v56, %v6267_v55 }
  0x99   : > { %v1439_v7 = vpack.c.bf16 %v6256_v2, %v6255_v24  ;;  %v6299_v24 = vld [vmem:[%s7800_s18 + $0x6f1] sm:$0xff]  ;;  %v6300_v2 = vld [vmem:[%s7800_s18 + $0x701] sm:$0xff] }
  0x9a   : > { %v7672_v53 = vld [vmem:[%s7800_s18 + $0x30] sm:$0xff] }
  0x9b   : > { %v1958_v55 = vpack.c.bf16 %v7673_v54, %v7672_v53  ;;  %v7685_v53 = vld [vmem:[%s7800_s18 + $0x170] sm:$0xff]  ;;  %v7686_v54 = vld [vmem:[%s7800_s18 + $0x180] sm:$0xff] }
  0x9e   : > { %7125 = vmatmul.mubr.msk.bf16.gmra.mxu0 %vm422_vm2, %v1436_v62  ;;  %v6270_v62 = vld [vmem:[%s7800_s18 + $0x8e0] sm:$0xff] }
  0x9f   : > { %7151 = vmatmul.mubr.msk.bf16.vlgmr.msra.gmra.mxu1 %vm422_vm2, %v8025_v33  ;;  %7128 = vmatprep.mubr.msk.bf16.mxu0 %vm422_vm2, %v1437_v63  ;;  %v6289_v33 = vld [vmem:[%s7800_s18 + $0x251] sm:$0xff]  ;;  %v1446_v0 = vpack.c.bf16 %v6270_v62, %v6269_v61 }
  0xa0   : > { %7154 = vmatprep.mubr.msk.bf16.mxu1 %vm422_vm2, %v8027_v34  ;;  %7217 = vmatpush3.bf16.msra.mxu1 %v8001_v12  ;;  %v1709_v8 = vpack.c.bf16 %v6289_v33, %v6288_v4  ;;  %v6257_v34 = vld [vmem:[%s7800_s18 + $0x770] sm:$0xff] }
  0xa1   : > { %v6291_v12 = vld [vmem:[%s7800_s18 + $0x271] sm:$0xff]  ;;  %v1440_v22 = vpack.c.bf16 %v6258_v10, %v6257_v34 }
  0xa2   : > { %v6297_v63 = vld [vmem:[%s7800_s18 + $0x6d1] sm:$0xff] }
  0xa6   : > { %7129 = vmatmul.mubr.msk.bf16.gmra.mxu0 %vm422_vm2, %v1438_v6 }
  0xa7   : > { %7155 = vmatmul.mubr.msk.bf16.gmra.mxu1 %vm422_vm2, %v8043_v45  ;;  %7132 = vmatprep.mubr.msk.bf16.mxu0 %vm422_vm2, %v1439_v7  ;;  %v1710_v45 = vpack.c.bf16 %v6291_v12, %v6290_v11 }
  0xa8   : > { %7158 = vmatprep.mubr.msk.bf16.mxu1 %vm422_vm2, %v1709_v8 }
  0xae   : > { %7133 = vmatmul.mubr.msk.bf16.gmra.mxu0 %vm422_vm2, %v1440_v22 }
  0xaf   : > { %7159 = vmatmul.mubr.msk.bf16.gmra.mxu1 %vm422_vm2, %v1710_v45  ;;  %7136 = vmatprep.mubr.msk.bf16.mxu0 %vm422_vm2, %v1441_v25  ;;  %v7670_v45 = vld [vmem:[%s7800_s18 + $0x10] sm:$0xff]  ;;  %v7671_v25 = vld [vmem:[%s7800_s18 + $0x20] sm:$0xff] }
  0xb0   : > { %7162 = vmatprep.mubr.msk.bf16.mxu1 %vm422_vm2, %v1711_v26  ;;  %v1957_v26 = vpack.c.bf16 %v7671_v25, %v7670_v45 }
  0xb6   : > { %7137 = vmatmul.mubr.msk.bf16.gmra.mxu0 %vm422_vm2, %v1442_v51 }
  0xb7   : > { %7163 = vmatmul.mubr.msk.bf16.gmra.mxu1 %vm422_vm2, %v1712_v5  ;;  %7140 = vmatprep.mubr.msk.bf16.mxu0 %vm422_vm2, %v1443_v52 }
  0xb8   : > { %7166 = vmatprep.mubr.msk.bf16.mxu1 %vm422_vm2, %v8082_v13  ;;  %v6296_v13 = vld [vmem:[%s7800_s18 + $0x6c1] sm:$0xff] }
  0xb9   : > { %v1713_v1 = vpack.c.bf16 %v6297_v63, %v6296_v13 }
  0xbe   : > { %7141 = vmatmul.mubr.msk.bf16.gmra.mxu0 %vm422_vm2, %v1444_v58  ;;  %v7674_v58 = vld [vmem:[%s7800_s18 + $0x50] sm:$0xff] }
  0xbf   : > { %7167 = vmatmul.mubr.msk.bf16.gmra.mxu1 %vm422_vm2, %v8101_v36  ;;  %7144 = vmatprep.mubr.msk.bf16.mxu0 %vm422_vm2, %v1445_v59  ;;  %v6298_v36 = vld [vmem:[%s7800_s18 + $0x6e1] sm:$0xff] }
  0xc0   : > { %7170 = vmatprep.mubr.msk.bf16.mxu1 %vm422_vm2, %v8103_v37  ;;  %v6301_v37 = vld [vmem:[%s7800_s18 + $0x711] sm:$0xff]  ;;  %v1714_v4 = vpack.c.bf16 %v6299_v24, %v6298_v36  ;;  %v7675_v59 = vld [vmem:[%s7800_s18 + $0x60] sm:$0xff] }
  0xc1   : > { %v1715_v33 = vpack.c.bf16 %v6301_v37, %v6300_v2 }
  0xc6   : > { %7145 = vmatmul.mubr.msk.bf16.gmra.mxu0 %vm422_vm2, %v1446_v0 }
  0xc7   : > { %7171 = vmatmul.mubr.msk.bf16.gmra.mxu1 %vm422_vm2, %v8122_v50  ;;  %7184 = vmatprep.mubr.msk.bf16.mxu0 %vm422_vm2, %v7898_v17  ;;  %v6302_v17 = vld [vmem:[%s7800_s18 + $0x721] sm:$0xff]  ;;  %v6303_v50 = vld [vmem:[%s7800_s18 + $0x731] sm:$0xff] }
  0xc8   : > { %7174 = vmatprep.mubr.msk.bf16.mxu1 %vm422_vm2, %v1713_v1  ;;  %v1716_v6 = vpack.c.bf16 %v6303_v50, %v6302_v17  ;;  %v6328_v1 = vld [vmem:[%s7800_s18 + $0x80] sm:$0xff] }
  0xce   : > { %7185 = vmatmul.mubr.msk.bf16.vlgmr.msra.gmra.mxu0 %vm422_vm2, %v7917_v29 }
  0xcf   : > { %7175 = vmatmul.mubr.msk.bf16.gmra.mxu1 %vm422_vm2, %v1714_v4  ;;  %7251 = vmatpush3.bf16.msra.mxu0 %v8106_v42 }
  0xd0   : > { %7178 = vmatprep.mubr.msk.bf16.mxu1 %vm422_vm2, %v1715_v33  ;;  %7188 = vmatprep.mubr.msk.bf16.mxu0 %vm422_vm2, %v7921_v32  ;;  %v7676_v33 = vld [vmem:[%s7800_s18 + $0x70] sm:$0xff] }
  0xd1   : > { %v1960_v17 = vpack.c.bf16 %v6328_v1, %v7676_v33  ;;  %v6361_v33 = vld [vmem:[%s7800_s18 + $0x110] sm:$0xff] }
  0xd6   : > { %v6982_v7 = vpop.f32.mrf.mxu0  ;;  %7189 = vmatmul.mubr.msk.bf16.gmra.mxu0 %vm422_vm2, %v7939_v40 }
  0xd7   : > { %v8210_v8 = vpop.f32.mrf.mxu1  ;;  %7179 = vmatmul.mubr.msk.bf16.gmra.mxu1 %vm422_vm2, %v1716_v6  ;;  %7192 = vmatprep.mubr.msk.bf16.mxu0 %vm422_vm2, %v7941_v41  ;;  %v7677_v6 = vld [vmem:[%s7800_s18 + $0x130] sm:$0xff] }
  0xd8   : > { %v512_v29 = vpop.f32.mrf.mxu0  ;;  %7218 = vmatprep.mubr.msk.bf16.mxu1 %vm422_vm2, %v7876_v3 }
  0xd9   : > { %v8217_v42 = vpop.f32.mrf.mxu1 }
  0xda   : > { %v6983_v32 = vpop.f32.mrf.mxu0 }
  0xdb   : > { %v8219_v34 = vpop.f32.mrf.mxu1 }
  0xdc   : > { %v515_v10 = vpop.f32.mrf.mxu0 }
  0xdd   : > { %v8221_v40 = vpop.f32.mrf.mxu1 }
  0xde   : > { %10043 = vst [vmem:[#allocation4_spill] sm:$0xff] %v8221_v40  ;;  %v6986_v11 = vpop.f32.mrf.mxu0  ;;  %7193 = vmatmul.mubr.msk.bf16.gmra.mxu0 %vm422_vm2, %v7958_v48 }
  0xdf   : > { %v7016_v12 = vpop.f32.mrf.mxu1  ;;  %7219 = vmatmul.mubr.msk.bf16.vlgmr.msra.gmra.mxu1 %vm422_vm2, %v7894_v14  ;;  %7196 = vmatprep.mubr.msk.bf16.mxu0 %vm422_vm2, %v7960_v49 }
  0xe0   : > { %v8229_v3 = vadd.f32 %v7016_v12, %v6982_v7  ;;  %v528_v15 = vpop.f32.mrf.mxu0  ;;  %7222 = vmatprep.mubr.msk.bf16.mxu1 %vm422_vm2, %v7896_v16 }
  0xe1   : > { %v724_v19 = vpop.f32.mrf.mxu1 }
  0xe2   : > { %v8233_v20 = vadd.f32 %v724_v19, %v512_v29  ;;  %v6987_v21 = vpop.f32.mrf.mxu0 }
  0xe3   : > { %v7017_v22 = vpop.f32.mrf.mxu1 }
  0xe4   : > { %v8237_v44 = vadd.f32 %v7017_v22, %v6983_v32  ;;  %v531_v14 = vpop.f32.mrf.mxu0 }
  0xe5   : > { %v727_v27 = vpop.f32.mrf.mxu1 }
  0xe6   : > { %v8239_v35 = vadd.f32 %v727_v27, %v515_v10  ;;  %v6990_v38 = vpop.f32.mrf.mxu0  ;;  %7197 = vmatmul.mubr.msk.bf16.gmra.mxu0 %vm422_vm2, %v7980_v57  ;;  %v7679_v10 = vld [vmem:[%s7800_s18 + $0xa0] sm:$0xff]  ;;  %v7681_v27 = vld [vmem:[%s7800_s18 + $0x150] sm:$0xff] }
  0xe7   : > { %v7020_v16 = vpop.f32.mrf.mxu1  ;;  %7223 = vmatmul.mubr.msk.bf16.gmra.mxu1 %vm422_vm2, %v7915_v28  ;;  %7200 = vmatprep.mubr.msk.bf16.mxu0 %vm422_vm2, %v1957_v26  ;;  %v1959_v28 = vpack.c.bf16 %v7675_v59, %v7674_v58  ;;  %v7687_v59 = vld [vmem:[%s7800_s18 + $0xe0] sm:$0xff] }
  0xe8   : > { %v8246_v43 = vadd.f32 %v7020_v16, %v6986_v11  ;;  %v544_v47 = vpop.f32.mrf.mxu0  ;;  %7226 = vmatprep.mubr.msk.bf16.mxu1 %vm422_vm2, %v7919_v31  ;;  %v7680_v11 = vld [vmem:[%s7800_s18 + $0xb0] sm:$0xff] }
  0xe9   : > { %v740_v51 = vpop.f32.mrf.mxu1  ;;  %v2205_v12 = vpack.c.bf16 %v7680_v11, %v7679_v10  ;;  %v7690_v11 = vld [vmem:[%s7800_s18 + $0x100] sm:$0xff] }
  0xea   : > { %v8250_v5 = vadd.f32 %v740_v51, %v528_v15  ;;  %v6991_v52 = vpop.f32.mrf.mxu0  ;;  %v7684_v51 = vld [vmem:[%s7800_s18 + $0xd0] sm:$0xff] }
  0xeb   : > { %v7021_v56 = vpop.f32.mrf.mxu1 }
  0xec   : > { %v8256_v61 = vadd.f32 %v7021_v56, %v6987_v21  ;;  %v547_v62 = vpop.f32.mrf.mxu0 }
  0xed   : > { %v743_v13 = vpop.f32.mrf.mxu1 }
  0xee   : > { %v8258_v63 = vadd.f32 %v743_v13, %v531_v14  ;;  %v6994_v31 = vpop.f32.mrf.mxu0  ;;  %7201 = vmatmul.mubr.msk.bf16.gmra.mxu0 %vm422_vm2, %v1958_v55  ;;  %v8300_v55 = vpack.c.bf16 %v7686_v54, %v7685_v53 }
  0xef   : > { %v7024_v0 = vpop.f32.mrf.mxu1  ;;  %7227 = vmatmul.mubr.msk.bf16.gmra.mxu1 %vm422_vm2, %v7937_v39  ;;  %7204 = vmatprep.mubr.msk.bf16.mxu0 %vm422_vm2, %v1959_v28  ;;  %v7678_v39 = vld [vmem:[%s7800_s18 + $0x140] sm:$0xff]  ;;  %v7688_v28 = vld [vmem:[%s7800_s18 + $0xf0] sm:$0xff] }
  0xf0   : > { %v8265_v36 = vadd.f32 %v7024_v0, %v6990_v38  ;;  %v560_v24 = vpop.f32.mrf.mxu0  ;;  %7230 = vmatprep.mubr.msk.bf16.mxu1 %vm422_vm2, %v7811_v18  ;;  %v8274_v7 = vpack.c.bf16 %v7678_v39, %v7677_v6  ;;  %v7682_v38 = vld [vmem:[%s7800_s18 + $0x160] sm:$0xff]  ;;  %v7689_v39 = vld [vmem:[%s7800_s18 + $0x190] sm:$0xff] }
  0xf1   : > { %v756_v2 = vpop.f32.mrf.mxu1  ;;  %v8294_v16 = vpack.c.bf16 %v7682_v38, %v7681_v27 }
  0xf2   : > { %v8269_v37 = vadd.f32 %v756_v2, %v544_v47  ;;  %v6995_v4 = vpop.f32.mrf.mxu0  ;;  %v7683_v47 = vld [vmem:[%s7800_s18 + $0xc0] sm:$0xff] }
  0xf3   : > { %v7025_v50 = vpop.f32.mrf.mxu1 }
  0xf4   : > { %v8276_v29 = vadd.f32 %v7025_v50, %v6991_v52  ;;  %v563_v32 = vpop.f32.mrf.mxu0  ;;  %v2206_v52 = vpack.c.bf16 %v7684_v51, %v7683_v47 }
  0xf5   : > { %v759_v18 = vpop.f32.mrf.mxu1 }
  0xf6   : > { %v8280_v15 = vadd.f32 %v759_v18, %v547_v62  ;;  %v6998_v19 = vpop.f32.mrf.mxu0  ;;  %7205 = vmatmul.mubr.msk.bf16.gmra.mxu0 %vm422_vm2, %v1960_v17  ;;  %v2207_v62 = vpack.c.bf16 %v7688_v28, %v7687_v59  ;;  %v7693_v59 = vld [vmem:[%s7800_s18 + $0x1e0] sm:$0xff]  ;;  %v7694_v28 = vld [vmem:[%s7800_s18 + $0x1f0] sm:$0xff] }
  0xf7   : > { %v7028_v21 = vpop.f32.mrf.mxu1  ;;  %7231 = vmatmul.mubr.msk.bf16.gmra.mxu1 %vm422_vm2, %v7817_v23  ;;  %7208 = vmatprep.mubr.msk.bf16.mxu0 %vm422_vm2, %v8274_v7 }
  0xf8   : > { %v8287_v22 = vadd.f32 %v7028_v21, %v6994_v31  ;;  %v576_v45 = vpop.f32.mrf.mxu0  ;;  %7234 = vmatprep.mubr.msk.bf16.mxu1 %vm422_vm2, %v2205_v12  ;;  %v2208_v12 = vpack.c.bf16 %v6361_v33, %v7690_v11  ;;  %v6369_v11 = vld [vmem:[%s7800_s18 + $0x230] sm:$0xff] }
  0xf9   : > { %v772_v25 = vpop.f32.mrf.mxu1 }
  0xfa   : > { %v8290_v26 = vadd.f32 %v772_v25, %v560_v24  ;;  %v6999_v14 = vpop.f32.mrf.mxu0  ;;  %v6336_v24 = vld [vmem:[%s7800_s18 + $0x1a0] sm:$0xff]  ;;  %v7692_v25 = vld [vmem:[%s7800_s18 + $0x1d0] sm:$0xff] }
  0xfb   : > { %v7029_v23 = vpop.f32.mrf.mxu1 }
  0xfc   : > { %v8302_v56 = vadd.f32 %v7029_v23, %v6995_v4  ;;  %v8304_v58 = vpop.f32.mrf.mxu0 }
  0xfd   : > { %10044 = vst [vmem:[#allocation5_spill] sm:$0xff] %v8304_v58  ;;  %v775_v13 = vpop.f32.mrf.mxu1 }
  0xfe   : > { %v8308_v31 = vadd.f32 %v775_v13, %v563_v32  ;;  %v7002_v0 = vpop.f32.mrf.mxu0  ;;  %7209 = vmatmul.mubr.msk.bf16.gmra.mxu0 %vm422_vm2, %v8294_v16  ;;  %v8323_v32 = vpack.c.bf16 %v6336_v24, %v7689_v39  ;;  %v7695_v24 = vld [vmem:[%s7800_s18 + $0x200] sm:$0xff] }
  0xff   : > { %v7032_v1 = vpop.f32.mrf.mxu1  ;;  %7235 = vmatmul.mubr.msk.bf16.gmra.mxu1 %vm422_vm2, %v2206_v52  ;;  %7212 = vmatprep.mubr.msk.bf16.mxu0 %vm422_vm2, %v8300_v55 }
 0x100   : > { %v8316_v2 = vadd.f32 %v7032_v1, %v6998_v19  ;;  %v592_v4 = vpop.f32.mrf.mxu0  ;;  %7238 = vmatprep.mubr.msk.bf16.mxu1 %vm422_vm2, %v2207_v62  ;;  %v7691_v19 = vld [vmem:[%s7800_s18 + $0x1c0] sm:$0xff]  ;;  %v2210_v62 = vpack.c.bf16 %v7694_v28, %v7693_v59 }
 0x101   : > { %v788_v17 = vpop.f32.mrf.mxu1  ;;  %v2209_v27 = vpack.c.bf16 %v7692_v25, %v7691_v19 }
 0x102   : > { %v8320_v50 = vadd.f32 %v788_v17, %v576_v45  ;;  %v7003_v6 = vpop.f32.mrf.mxu0 }
 0x103   : > { %v7033_v10 = vpop.f32.mrf.mxu1 }
 0x104   : > { %v8326_v18 = vadd.f32 %v7033_v10, %v6999_v14  ;;  %v8328_v21 = vpop.f32.mrf.mxu0 }
 0x105   : > { %10045 = vst [vmem:[#allocation6_spill] sm:$0xff] %v8328_v21  ;;  %v8332_v38 = vpop.f32.mrf.mxu1 }
 0x106   : > { %10046 = vst [vmem:[#allocation7_spill] sm:$0xff] %v8332_v38  ;;  %v7006_v45 = vpop.f32.mrf.mxu0  ;;  %7213 = vmatmul.mubr.msk.bf16.gmra.mxu0 %vm422_vm2, %v8323_v32 }
 0x107   : > { %v7036_v23 = vpop.f32.mrf.mxu1  ;;  %7239 = vmatmul.mubr.msk.bf16.gmra.mxu1 %vm422_vm2, %v2208_v12  ;;  %7252 = vmatprep.mubr.msk.bf16.mxu0 %vm422_vm2, %v7941_v41  ;;  %v7696_v41 = vld [vmem:[%s7800_s18 + $0x210] sm:$0xff] }
 0x108   : > { %v8339_v14 = vadd.f32 %v7036_v23, %v7002_v0  ;;  %v608_v47 = vpop.f32.mrf.mxu0  ;;  %7242 = vmatprep.mubr.msk.bf16.mxu1 %vm422_vm2, %v2209_v27  ;;  %v2211_v0 = vpack.c.bf16 %v7696_v41, %v7695_v24  ;;  %v7697_v23 = vld [vmem:[%s7800_s18 + $0x220] sm:$0xff] }
 0x109   : > { %v804_v51 = vpop.f32.mrf.mxu1 }
 0x10a   : > { %v8342_v52 = vadd.f32 %v804_v51, %v592_v4  ;;  %v7007_v53 = vpop.f32.mrf.mxu0  ;;  %v2212_v51 = vpack.c.bf16 %v6369_v11, %v7697_v23 }
 0x10b   : > { %v7037_v54 = vpop.f32.mrf.mxu1 }
 0x10c   : > { %v8346_v13 = vadd.f32 %v7037_v54, %v7003_v6  ;;  %v8348_v1 = vpop.f32.mrf.mxu0 }
 0x10d   : > { %10047 = vst [vmem:[#allocation8_spill] sm:$0xff] %v8348_v1  ;;  %v8352_v33 = vpop.f32.mrf.mxu1 }
 0x10e   : > { %10048 = vst [vmem:[#allocation9_spill] sm:$0xff] %v8352_v33  ;;  %v7050_v17 = vpop.f32.mrf.mxu0  ;;  %7253 = vmatmul.mubr.msk.bf16.vlgmr.msra.gmra.mxu0 %vm422_vm2, %v7958_v48 }
 0x10f   : > { %v7040_v4 = vpop.f32.mrf.mxu1  ;;  %v1067_v39 = vadd.f32 %v7050_v17, %v8229_v3  ;;  %7243 = vmatmul.mubr.msk.bf16.gmra.mxu1 %vm422_vm2, %v2210_v62  ;;  %7256 = vmatprep.mubr.msk.bf16.mxu0 %vm422_vm2, %v7960_v49 }
 0x110   : > { %v8360_v6 = vadd.f32 %v7040_v4, %v7006_v45  ;;  %v938_v10 = vpop.f32.mrf.mxu0  ;;  %7246 = vmatprep.mubr.msk.bf16.mxu1 %vm422_vm2, %v2211_v0 }
 0x111   : > { %v820_v12 = vpop.f32.mrf.mxu1  ;;  %v1065_v19 = vadd.f32 %v938_v10, %v8233_v20 }
 0x112   : > { %v8365_v25 = vadd.f32 %v820_v12, %v608_v47  ;;  %v7051_v48 = vpop.f32.mrf.mxu0 }
 0x113   : > { %v7041_v27 = vpop.f32.mrf.mxu1  ;;  %v1068_v3 = vadd.f32 %v7051_v48, %v8237_v44 }
 0x114   : > { %v8369_v54 = vadd.f32 %v7041_v27, %v7007_v53  ;;  %v941_v49 = vpop.f32.mrf.mxu0 }
 0x115   : > { %v8371_v45 = vpop.f32.mrf.mxu1  ;;  %v8374_v59 = vadd.f32 %v941_v49, %v8239_v35 }
 0x116   : > { %10049 = vst [vmem:[#allocation10_spill] sm:$0xff] %v8371_v45  ;;  %v7054_v28 = vpop.f32.mrf.mxu0  ;;  %7257 = vmatmul.mubr.msk.bf16.gmra.mxu0 %vm422_vm2, %v7980_v57 }
 0x117   : > { %v7044_v20 = vpop.f32.mrf.mxu1  ;;  %v1071_v47 = vadd.f32 %v7054_v28, %v8246_v43  ;;  %7247 = vmatmul.mubr.msk.bf16.gmra.mxu1 %vm422_vm2, %v2212_v51  ;;  %7260 = vmatprep.mubr.msk.bf16.mxu0 %vm422_vm2, %v8045_v46 }
 0x118   : > { %v8383_v44 = vadd.f32 %v7044_v20, %v8210_v8  ;;  %v954_v53 = vpop.f32.mrf.mxu0 }
 0x119   : > { %v836_v62 = vpop.f32.mrf.mxu1  ;;  %v1069_v35 = vadd.f32 %v954_v53, %v8250_v5 }
 0x11a   : > { %v8387_v24 = vadd.f32 %v836_v62, %v8217_v42  ;;  %v7055_v41 = vpop.f32.mrf.mxu0 }
 0x11b   : > { %v7045_v57 = vpop.f32.mrf.mxu1  ;;  %v1072_v0 = vadd.f32 %v7055_v41, %v8256_v61 }
 0x11c   : > { %v8391_v43 = vadd.f32 %v7045_v57, %v8219_v34  ;;  %v957_v17 = vpop.f32.mrf.mxu0 }
 0x11d   : > { %v8393_v4 = vpop.f32.mrf.mxu1  ;;  %v8396_v46 = vadd.f32 %v957_v17, %v8258_v63 }
 0x11e   : > { %10050 = vst [vmem:[#allocation11_spill] sm:$0xff] %v8393_v4  ;;  %v7058_v8 = vpop.f32.mrf.mxu0  ;;  %7261 = vmatmul.mubr.msk.bf16.gmra.mxu0 %vm422_vm2, %v8062_v60 }
 0x11f   : > { %v1075_v42 = vadd.f32 %v7058_v8, %v8265_v36  ;;  %v7084_v5 = vpop.f32.mrf.mxu1  ;;  %7264 = vmatprep.mubr.msk.bf16.mxu0 %vm422_vm2, %v8064_v30 }
 0x120   : > { %v8403_v61 = vadd.f32 %v7084_v5, %v1067_v39  ;;  %v970_v34 = vpop.f32.mrf.mxu0 }
 0x121   : > { %v1073_v10 = vadd.f32 %v970_v34, %v8269_v37  ;;  %v1236_v11 = vpop.f32.mrf.mxu1  ;;  %v7698_v34 = vld [vmem:[%s7800_s18 + $0x11] sm:$0xff] }
 0x122   : > { %v8406_v12 = vadd.f32 %v1236_v11, %v1065_v19  ;;  %v7059_v63 = vpop.f32.mrf.mxu0 }
 0x123   : > { %v1076_v48 = vadd.f32 %v7059_v63, %v8276_v29  ;;  %v7085_v27 = vpop.f32.mrf.mxu1 }
 0x124   : > { %v8409_v23 = vadd.f32 %v7085_v27, %v1068_v3  ;;  %v973_v60 = vpop.f32.mrf.mxu0 }
 0x125   : > { %v8412_v36 = vadd.f32 %v973_v60, %v8280_v15  ;;  %v8414_v51 = vpop.f32.mrf.mxu1 }
 0x126   : > { %v7062_v30 = vpop.f32.mrf.mxu0  ;;  %7265 = vmatmul.mubr.msk.bf16.gmra.mxu0 %vm422_vm2, %v8080_v9 }
 0x127   : > { %v1079_v37 = vadd.f32 %v7062_v30, %v8287_v22  ;;  %v7088_v39 = vpop.f32.mrf.mxu1  ;;  %7268 = vmatprep.mubr.msk.bf16.mxu0 %vm422_vm2, %v8274_v7 }
 0x128   : > { %v8421_v29 = vadd.f32 %v7088_v39, %v1071_v47  ;;  %v986_v19 = vpop.f32.mrf.mxu0 }
 0x129   : > { %v1077_v3 = vadd.f32 %v986_v19, %v8290_v26  ;;  %v1252_v49 = vpop.f32.mrf.mxu1  ;;  %v7700_v19 = vld [vmem:[%s7800_s18 + $0x31] sm:$0xff] }
 0x12a   : > { %v8424_v15 = vadd.f32 %v1252_v49, %v1069_v35  ;;  %v7063_v28 = vpop.f32.mrf.mxu0  ;;  %v7701_v49 = vld [vmem:[%s7800_s18 + $0x41] sm:$0xff] }
 0x12b   : > { %v1080_v20 = vadd.f32 %v7063_v28, %v8302_v56  ;;  %v7089_v53 = vpop.f32.mrf.mxu1  ;;  %v2444_v28 = vpack.c.bf16 %v7701_v49, %v7700_v19 }
 0x12c   : > { %v8427_v62 = vadd.f32 %v7089_v53, %v1072_v0  ;;  %v989_v9 = vpop.f32.mrf.mxu0 }
 0x12d   : > { %v8430_v22 = vadd.f32 %v989_v9, %v8308_v31  ;;  %v8432_v7 = vpop.f32.mrf.mxu1  ;;  %v7703_v9 = vld [vmem:[%s7800_s18 + $0x61] sm:$0xff] }
 0x12e   : > { %v7066_v47 = vpop.f32.mrf.mxu0  ;;  %7269 = vmatmul.mubr.msk.bf16.gmra.mxu0 %vm422_vm2, %v8294_v16  ;;  %v7699_v16 = vld [vmem:[%s7800_s18 + $0x21] sm:$0xff] }
 0x12f   : > { %v1083_v26 = vadd.f32 %v7066_v47, %v8316_v2  ;;  %v7092_v35 = vpop.f32.mrf.mxu1  ;;  %7272 = vmatprep.mubr.msk.bf16.mxu0 %vm422_vm2, %v8300_v55  ;;  %v2443_v2 = vpack.c.bf16 %v7699_v16, %v7698_v34 }
 0x130   : > { %v8439_v56 = vadd.f32 %v7092_v35, %v1075_v42  ;;  %v1002_v41 = vpop.f32.mrf.mxu0 }
 0x131   : > { %v1081_v57 = vadd.f32 %v1002_v41, %v8320_v50  ;;  %v1268_v31 = vpop.f32.mrf.mxu1 }
 0x132   : > { %v8442_v0 = vadd.f32 %v1268_v31, %v1073_v10  ;;  %v7067_v17 = vpop.f32.mrf.mxu0 }
 0x133   : > { %v1084_v8 = vadd.f32 %v7067_v17, %v8326_v18  ;;  %v7093_v5 = vpop.f32.mrf.mxu1 }
 0x134   : > { %v8447_v11 = vadd.f32 %v7093_v5, %v1076_v48  ;;  %v8449_v55 = vpop.f32.mrf.mxu0 }
 0x135   : > { %10051 = vst [vmem:[#allocation12_spill] sm:$0xff] %v8449_v55  ;;  %v8451_v42 = vpop.f32.mrf.mxu1 }
 0x136   : > { %v7070_v63 = vpop.f32.mrf.mxu0  ;;  %7273 = vmatmul.mubr.msk.bf16.gmra.mxu0 %vm422_vm2, %v8323_v32 }
 0x137   : > { %v1087_v50 = vadd.f32 %v7070_v63, %v8339_v14  ;;  %v7096_v18 = vpop.f32.mrf.mxu1  ;;  %7276 = vmatprep.mubr.msk.bf16.mxu0 %vm422_vm2, %v2443_v2  ;;  %v7702_v14 = vld [vmem:[%s7800_s18 + $0x51] sm:$0xff] }
 0x138   : > { %v8457_v10 = vadd.f32 %v7096_v18, %v1079_v37  ;;  %v1018_v27 = vpop.f32.mrf.mxu0  ;;  %v2445_v47 = vpack.c.bf16 %v7703_v9, %v7702_v14  ;;  %v7704_v63 = vld [vmem:[%s7800_s18 + $0x71] sm:$0xff] }
 0x139   : > { %v1085_v48 = vadd.f32 %v1018_v27, %v8342_v52  ;;  %v1284_v60 = vpop.f32.mrf.mxu1 }
 0x13a   : > { %v8460_v30 = vadd.f32 %v1284_v60, %v1077_v3  ;;  %v7071_v39 = vpop.f32.mrf.mxu0 }
 0x13b   : > { %v1088_v32 = vadd.f32 %v7071_v39, %v8346_v13  ;;  %v7097_v53 = vpop.f32.mrf.mxu1  ;;  %v6394_v13 = vld [vmem:[%s7800_s18 + $0x81] sm:$0xff] }
 0x13c   : > { %v8467_v37 = vadd.f32 %v7097_v53, %v1080_v20  ;;  %v8469_v35 = vpop.f32.mrf.mxu0  ;;  %v2446_v18 = vpack.c.bf16 %v6394_v13, %v7704_v63 }
 0x13d   : > { %10052 = vst [vmem:[#allocation13_spill] sm:$0xff] %v8469_v35  ;;  %v8471_v52 = vpop.f32.mrf.mxu1 }
 0x13e   : > { %v7074_v3 = vpop.f32.mrf.mxu0  ;;  %7277 = vmatmul.mubr.msk.bf16.gmra.mxu0 %vm422_vm2, %v2444_v28 }
 0x13f   : > { %v1091_v41 = vadd.f32 %v7074_v3, %v8360_v6  ;;  %v7100_v31 = vpop.f32.mrf.mxu1  ;;  %7280 = vmatprep.mubr.msk.bf16.mxu0 %vm422_vm2, %v2445_v47 }
 0x140   : > { %v8477_v17 = vadd.f32 %v7100_v31, %v1083_v26  ;;  %v1034_v5 = vpop.f32.mrf.mxu0 }
 0x141   : > { %v1089_v34 = vadd.f32 %v1034_v5, %v8365_v25  ;;  %v1300_v20 = vpop.f32.mrf.mxu1  ;;  %v6413_v25 = vld [vmem:[%s10025_s2 + $0x4] sm:$0xf] }
 0x142   : > { %v8480_v16 = vadd.f32 %v1300_v20, %v1081_v57  ;;  %v7075_v2 = vpop.f32.mrf.mxu0  ;;  %7516 = vmatprep.subr.msk.bf16.mxu1 %vm2876_vm3, %v6413_v25 }
 0x143   : > { %v1092_v27 = vadd.f32 %v7075_v2, %v8369_v54  ;;  %v7101_v60 = vpop.f32.mrf.mxu1  ;;  %v2878_v54 = vsel %vm2876_vm3, %v6413_v25, 0 }
 0x144   : > { %v8484_v39 = vadd.f32 %v7101_v60, %v1084_v8  ;;  %v8486_v6 = vpop.f32.mrf.mxu0  ;;  %7285 = vmatpush3.bf16.msra.mxu1 %v2878_v54 }
 0x145   : > { %10053 = vst [vmem:[#allocation14_spill] sm:$0xff] %v8486_v6  ;;  %v8488_v19 = vpop.f32.mrf.mxu1 }
 0x146   : > { %10054 = vst [vmem:[#allocation15_spill] sm:$0xff] %v8488_v19  ;;  %v7078_v26 = vpop.f32.mrf.mxu0  ;;  %7281 = vmatmul.mubr.msk.bf16.gmra.mxu0 %vm422_vm2, %v2446_v18 }
 0x147   : > { %v8495_v57 = vadd.f32 %v7078_v26, %v8383_v44  ;;  %v7104_v49 = vpop.f32.mrf.mxu1 }
 0x148   : > { %v8499_v8 = vadd.f32 %v7104_v49, %v1087_v50  ;;  %v1050_v28 = vpop.f32.mrf.mxu0 }
 0x149   : > { %v8502_v53 = vadd.f32 %v1050_v28, %v8387_v24  ;;  %v1316_v14 = vpop.f32.mrf.mxu1 }
 0x14a   : > { %v8504_v9 = vadd.f32 %v1316_v14, %v1085_v48  ;;  %v7079_v47 = vpop.f32.mrf.mxu0 }
 0x14b   : > { %v8507_v3 = vadd.f32 %v7079_v47, %v8391_v43  ;;  %v7105_v44 = vpop.f32.mrf.mxu1 }
 0x14c   : > { %v8509_v31 = vadd.f32 %v7105_v44, %v1088_v32  ;;  %v8511_v13 = vpop.f32.mrf.mxu0 }
 0x14d   : > { %10055 = vst [vmem:[#allocation16_spill] sm:$0xff] %v8511_v13  ;;  %v8513_v5 = vpop.f32.mrf.mxu1 }
 0x14e   : > { %10056 = vst [vmem:[#allocation17_spill] sm:$0xff] %v8513_v5  ;;  %v7118_v50 = vpop.f32.mrf.mxu0 }
 0x14f   : > { %v7108_v20 = vpop.f32.mrf.mxu1  ;;  %v8516_v2 = vadd.f32 %v7118_v50, %v8403_v61  ;;  %v10032_v61 = vmov 0.0  }
 0x150   : > { %v8518_v24 = vadd.f32 %v7108_v20, %v1091_v41  ;;  %v1534_v48 = vpop.f32.mrf.mxu0  ;;  %2786 = vst.msk [vmem:[#allocation2 + $0x1d0] sm:$0xff] %vm2726_vm4, %v10032_v61  ;;  %2727 = vst.msk [vmem:[#allocation2] sm:$0xff] %vm2726_vm4, %v10032_v61 }
 0x151   : > { %v1332_v63 = vpop.f32.mrf.mxu1  ;;  %v8521_v18 = vadd.f32 %v1534_v48, %v8406_v12  ;;  %2730 = vst.msk [vmem:[#allocation2 + $0x10] sm:$0xff] %vm2726_vm4, %v10032_v61  ;;  %2732 = vst.msk [vmem:[#allocation2 + $0x20] sm:$0xff] %vm2726_vm4, %v10032_v61 }
 0x152   : > { %v8523_v43 = vadd.f32 %v1332_v63, %v1089_v34  ;;  %v7119_v32 = vpop.f32.mrf.mxu0  ;;  %2734 = vst.msk [vmem:[#allocation2 + $0x30] sm:$0xff] %vm2726_vm4, %v10032_v61  ;;  %2736 = vst.msk [vmem:[#allocation2 + $0x40] sm:$0xff] %vm2726_vm4, %v10032_v61 }
 0x153   : > { %v7109_v60 = vpop.f32.mrf.mxu1  ;;  %v8526_v26 = vadd.f32 %v7119_v32, %v8409_v23  ;;  %2738 = vst.msk [vmem:[#allocation2 + $0x50] sm:$0xff] %vm2726_vm4, %v10032_v61  ;;  %2740 = vst.msk [vmem:[#allocation2 + $0x60] sm:$0xff] %vm2726_vm4, %v10032_v61 }
 0x154   : > { %v8528_v25 = vadd.f32 %v7109_v60, %v1092_v27  ;;  %v8530_v49 = vpop.f32.mrf.mxu0  ;;  %2742 = vst.msk [vmem:[#allocation2 + $0x70] sm:$0xff] %vm2726_vm4, %v10032_v61  ;;  %2744 = vst.msk [vmem:[#allocation2 + $0x80] sm:$0xff] %vm2726_vm4, %v10032_v61 }
 0x155   : > { %2746 = vst.msk [vmem:[#allocation2 + $0x90] sm:$0xff] %vm2726_vm4, %v10032_v61  ;;  %2748 = vst.msk [vmem:[#allocation2 + $0xa0] sm:$0xff] %vm2726_vm4, %v10032_v61  ;;  %v8600_v12 = vpop.f32.mrf.mxu1 }
 0x156   : > { %2750 = vst.msk [vmem:[#allocation2 + $0xb0] sm:$0xff] %vm2726_vm4, %v10032_v61  ;;  %2752 = vst.msk [vmem:[#allocation2 + $0xc0] sm:$0xff] %vm2726_vm4, %v10032_v61  ;;  %v7122_v23 = vpop.f32.mrf.mxu0 }
 0x157   : > { %2754 = vst.msk [vmem:[#allocation2 + $0xd0] sm:$0xff] %vm2726_vm4, %v10032_v61  ;;  %2756 = vst.msk [vmem:[#allocation2 + $0xe0] sm:$0xff] %vm2726_vm4, %v10032_v61  ;;  %v7112_v41 = vpop.f32.mrf.mxu1  ;;  %v8603_v34 = vadd.f32 %v7122_v23, %v8421_v29 }
 0x158   : > { %2758 = vst.msk [vmem:[#allocation2 + $0xf0] sm:$0xff] %vm2726_vm4, %v10032_v61  ;;  %2760 = vst.msk [vmem:[#allocation2 + $0x100] sm:$0xff] %vm2726_vm4, %v10032_v61  ;;  %v8606_v27 = vadd.f32 %v7112_v41, %v8495_v57  ;;  %v1550_v54 = vpop.f32.mrf.mxu0 }
 0x159   : > { %2762 = vst.msk [vmem:[#allocation2 + $0x110] sm:$0xff] %vm2726_vm4, %v10032_v61  ;;  %2764 = vst.msk [vmem:[#allocation2 + $0x120] sm:$0xff] %vm2726_vm4, %v10032_v61  ;;  %v1348_v28 = vpop.f32.mrf.mxu1  ;;  %v8609_v14 = vadd.f32 %v1550_v54, %v8424_v15 }
 0x15a   : > { %2766 = vst.msk [vmem:[#allocation2 + $0x130] sm:$0xff] %vm2726_vm4, %v10032_v61  ;;  %2768 = vst.msk [vmem:[#allocation2 + $0x140] sm:$0xff] %vm2726_vm4, %v10032_v61  ;;  %v8612_v47 = vadd.f32 %v1348_v28, %v8502_v53  ;;  %v7123_v44 = vpop.f32.mrf.mxu0 }
 0x15b   : > { %2770 = vst.msk [vmem:[#allocation2 + $0x150] sm:$0xff] %vm2726_vm4, %v10032_v61  ;;  %2772 = vst.msk [vmem:[#allocation2 + $0x160] sm:$0xff] %vm2726_vm4, %v10032_v61  ;;  %v7113_v50 = vpop.f32.mrf.mxu1  ;;  %v8615_v20 = vadd.f32 %v7123_v44, %v8427_v62 }
 0x15c   : > { %2774 = vst.msk [vmem:[#allocation2 + $0x170] sm:$0xff] %vm2726_vm4, %v10032_v61  ;;  %2776 = vst.msk [vmem:[#allocation2 + $0x180] sm:$0xff] %vm2726_vm4, %v10032_v61  ;;  %v8618_v48 = vadd.f32 %v7113_v50, %v8507_v3  ;;  %v8620_v29 = vpop.f32.mrf.mxu0  ;;  %v6432_v3 = vld [vmem:[%s10025_s2 + $0x10] sm:$0xf] }
 0x15d   : > { %2778 = vst.msk [vmem:[#allocation2 + $0x190] sm:$0xff] %vm2726_vm4, %v10032_v61  ;;  %2782 = vst.msk [vmem:[#allocation2 + $0x1b0] sm:$0xff] %vm2726_vm4, %v10032_v61  ;;  %v8622_v57 = vpop.f32.mrf.mxu1  ;;  %7520 = vmatprep.subr.msk.bf16.mxu0 %vm2876_vm3, %v6432_v3 }
 0x15e   : > { %2784 = vst.msk [vmem:[#allocation2 + $0x1c0] sm:$0xff] %vm2726_vm4, %v10032_v61  ;;  %2788 = vst.msk [vmem:[#allocation2 + $0x1e0] sm:$0xff] %vm2726_vm4, %v10032_v61  ;;  %v7126_v63 = vpop.f32.mrf.mxu0 }
 0x15f   : > { %2790 = vst.msk [vmem:[#allocation2 + $0x1f0] sm:$0xff] %vm2726_vm4, %v10032_v61  ;;  %2792 = vst.msk [vmem:[#allocation2 + $0x200] sm:$0xff] %vm2726_vm4, %v10032_v61  ;;  %v8625_v32 = vadd.f32 %v7126_v63, %v8439_v56  ;;  %v8627_v15 = vpop.f32.mrf.mxu1  ;;  %v3256_v56 = vsel %vm2876_vm3, %v6432_v3, 0 }
 0x160   : > { %2794 = vst.msk [vmem:[#allocation2 + $0x210] sm:$0xff] %vm2726_vm4, %v10032_v61  ;;  %2796 = vst.msk [vmem:[#allocation2 + $0x220] sm:$0xff] %vm2726_vm4, %v10032_v61  ;;  %v1566_v53 = vpop.f32.mrf.mxu0  ;;  %7325 = vmatpush3.bf16.msra.mxu0 %v3256_v56 }
 0x161   : > { %10057 = vst [vmem:[#allocation18_spill] sm:$0xff] %v8600_v12  ;;  %10058 = vst [vmem:[#allocation19_spill] sm:$0xff] %v8622_v57  ;;  %v8630_v60 = vadd.f32 %v1566_v53, %v8442_v0  ;;  %v8632_v23 = vpop.f32.mrf.mxu1 }
 0x162   : > { %v7127_v62 = vpop.f32.mrf.mxu0  ;;  %2769 = vst.msk [vmem:[#allocation2 + $0x148] sm:$0x1] %vm2728_vm5, %v10032_v61  ;;  %2729 = vst.msk [vmem:[#allocation2 + $0x8] sm:$0x1] %vm2728_vm5, %v10032_v61 }
 0x163   : > { %v8638_v41 = vadd.f32 %v7127_v62, %v8447_v11  ;;  %v8640_v54 = vpop.f32.mrf.mxu1  ;;  %2731 = vst.msk [vmem:[#allocation2 + $0x18] sm:$0x1] %vm2728_vm5, %v10032_v61  ;;  %2733 = vst.msk [vmem:[#allocation2 + $0x28] sm:$0x1] %vm2728_vm5, %v10032_v61 }
 0x164   : > { %v8644_v28 = vpop.f32.mrf.mxu0  ;;  %2735 = vst.msk [vmem:[#allocation2 + $0x38] sm:$0x1] %vm2728_vm5, %v10032_v61  ;;  %2737 = vst.msk [vmem:[#allocation2 + $0x48] sm:$0x1] %vm2728_vm5, %v10032_v61 }
 0x165   : > { %2739 = vst.msk [vmem:[#allocation2 + $0x58] sm:$0x1] %vm2728_vm5, %v10032_v61  ;;  %2741 = vst.msk [vmem:[#allocation2 + $0x68] sm:$0x1] %vm2728_vm5, %v10032_v61  ;;  %v8680_v0 = vpop.f32.mrf.mxu1 }
 0x166   : > { %2743 = vst.msk [vmem:[#allocation2 + $0x78] sm:$0x1] %vm2728_vm5, %v10032_v61  ;;  %2745 = vst.msk [vmem:[#allocation2 + $0x88] sm:$0x1] %vm2728_vm5, %v10032_v61  ;;  %v7130_v11 = vpop.f32.mrf.mxu0 }
 0x167   : > { %2765 = vst.msk [vmem:[#allocation2 + $0x128] sm:$0x1] %vm2728_vm5, %v10032_v61  ;;  %2767 = vst.msk [vmem:[#allocation2 + $0x138] sm:$0x1] %vm2728_vm5, %v10032_v61  ;;  %v8683_v44 = vadd.f32 %v7130_v11, %v8457_v10  ;;  %v8685_v50 = vpop.f32.mrf.mxu1 }
 0x168   : > { %2771 = vst.msk [vmem:[#allocation2 + $0x158] sm:$0x1] %vm2728_vm5, %v10032_v61  ;;  %2773 = vst.msk [vmem:[#allocation2 + $0x168] sm:$0x1] %vm2728_vm5, %v10032_v61  ;;  %v1582_v63 = vpop.f32.mrf.mxu0 }
 0x169   : > { %2775 = vst.msk [vmem:[#allocation2 + $0x178] sm:$0x1] %vm2728_vm5, %v10032_v61  ;;  %2777 = vst.msk [vmem:[#allocation2 + $0x188] sm:$0x1] %vm2728_vm5, %v10032_v61  ;;  %v8688_v53 = vadd.f32 %v1582_v63, %v8460_v30  ;;  %v8690_v62 = vpop.f32.mrf.mxu1 }
 0x16a   : > { %2779 = vst.msk [vmem:[#allocation2 + $0x198] sm:$0x1] %vm2728_vm5, %v10032_v61  ;;  %10059 = vst [vmem:[#allocation20_spill] sm:$0xff] %v8683_v44  ;;  %v7131_v3 = vpop.f32.mrf.mxu0 }
 0x16b   : > { %10060 = vst [vmem:[#allocation21_spill] sm:$0xff] %v8688_v53  ;;  %v8693_v57 = vadd.f32 %v7131_v3, %v8467_v37  ;;  %v8695_v61 = vpop.f32.mrf.mxu1 }
 0x16c   : > { %v8697_v56 = vpop.f32.mrf.mxu0 }
 0x16d   : > { %10061 = vst [vmem:[#allocation22_spill] sm:$0xff] %v8693_v57  ;;  %10062 = vst [vmem:[#allocation23_spill] sm:$0xff] %v8697_v56  ;;  %v8699_v13 = vpop.f32.mrf.mxu1 }
 0x16e   : > { %v7134_v10 = vpop.f32.mrf.mxu0 }
 0x16f   : > { %v8702_v11 = vadd.f32 %v7134_v10, %v8477_v17  ;;  %v8704_v4 = vpop.f32.mrf.mxu1 }
 0x170   : > { %v1598_v30 = vpop.f32.mrf.mxu0 }
 0x171   : > { %10063 = vst [vmem:[#allocation24_spill] sm:$0xff] %v8702_v11  ;;  %v8707_v63 = vadd.f32 %v1598_v30, %v8480_v16  ;;  %v8709_v40 = vpop.f32.mrf.mxu1 }
 0x172   : > { %v7135_v37 = vpop.f32.mrf.mxu0 }
 0x173   : > { %10064 = vst [vmem:[#allocation25_spill] sm:$0xff] %v8707_v63  ;;  %v8712_v3 = vadd.f32 %v7135_v37, %v8484_v39  ;;  %v8714_v12 = vpop.f32.mrf.mxu1 }
 0x174   : > { %v8716_v6 = vpop.f32.mrf.mxu0 }
 0x175   : > { %10065 = vst [vmem:[#allocation26_spill] sm:$0xff] %v8712_v3  ;;  %10066 = vst [vmem:[#allocation27_spill] sm:$0xff] %v8716_v6  ;;  %v8718_v45 = vpop.f32.mrf.mxu1 }
 0x176   : > { %v7138_v17 = vpop.f32.mrf.mxu0 }
 0x177   : > { %v8721_v10 = vadd.f32 %v7138_v17, %v8499_v8  ;;  %v8723_v1 = vpop.f32.mrf.mxu1 }
 0x178   : > { %10068 = vst [vmem:[#allocation29_spill] sm:$0xff] %v8723_v1  ;;  %v1614_v16 = vpop.f32.mrf.mxu0 }
 0x179   : > { %10067 = vst [vmem:[#allocation28_spill] sm:$0xff] %v8721_v10  ;;  %v8726_v30 = vadd.f32 %v1614_v16, %v8504_v9  ;;  %v8728_v5 = vpop.f32.mrf.mxu1 }
 0x17a   : > { %10070 = vst [vmem:[#allocation31_spill] sm:$0xff] %v8728_v5  ;;  %v7139_v39 = vpop.f32.mrf.mxu0 }
 0x17b   : > { %10069 = vst [vmem:[#allocation30_spill] sm:$0xff] %v8726_v30  ;;  %v8731_v37 = vadd.f32 %v7139_v39, %v8509_v31  ;;  %v8733_v35 = vpop.f32.mrf.mxu1 }
 0x17c   : > { %10072 = vst [vmem:[#allocation33_spill] sm:$0xff] %v8733_v35  ;;  %v8735_v33 = vpop.f32.mrf.mxu0 }
 0x17d   : > { %10071 = vst [vmem:[#allocation32_spill] sm:$0xff] %v8731_v37  ;;  %10073 = vst [vmem:[#allocation34_spill] sm:$0xff] %v8735_v33  ;;  %v8737_v21 = vpop.f32.mrf.mxu1 }
 0x17e   : > { %10074 = vst [vmem:[#allocation35_spill] sm:$0xff] %v8737_v21  ;;  %v7142_v8 = vpop.f32.mrf.mxu0 }
 0x17f   : > { %v8740_v17 = vadd.f32 %v7142_v8, %v8518_v24  ;;  %v8742_v10 = vpop.f32.mrf.mxu1 }
 0x180   : > { %10076 = vst [vmem:[#allocation37_spill] sm:$0xff] %v8742_v10  ;;  %v1630_v9 = vpop.f32.mrf.mxu0 }
 0x181   : > { %10075 = vst [vmem:[#allocation36_spill] sm:$0xff] %v8740_v17  ;;  %v8745_v16 = vadd.f32 %v1630_v9, %v8523_v43  ;;  %v8747_v30 = vpop.f32.mrf.mxu1 }
 0x182   : > { %10078 = vst [vmem:[#allocation39_spill] sm:$0xff] %v8747_v30  ;;  %v7143_v31 = vpop.f32.mrf.mxu0 }
 0x183   : > { %10077 = vst [vmem:[#allocation38_spill] sm:$0xff] %v8745_v16  ;;  %v8750_v39 = vadd.f32 %v7143_v31, %v8528_v25  ;;  %v8752_v37 = vpop.f32.mrf.mxu1 }
 0x184   : > { %10080 = vst [vmem:[#allocation41_spill] sm:$0xff] %v8752_v37  ;;  %v8754_v33 = vpop.f32.mrf.mxu0 }
 0x185   : > { %10079 = vst [vmem:[#allocation40_spill] sm:$0xff] %v8750_v39  ;;  %10081 = vst [vmem:[#allocation42_spill] sm:$0xff] %v8754_v33  ;;  %v8756_v3 = vpop.f32.mrf.mxu1  ;;  %v8776_v33 = vld [vmem:[%s10025_s2] sm:$0xf] }
 0x186   : > { %10082 = vst [vmem:[#allocation43_spill] sm:$0xff] %v8756_v3  ;;  %v7146_v24 = vpop.f32.mrf.mxu0  ;;  %10089 = vst [vmem:[#allocation50_spill] sm:$0xff] %v8776_v33  ;;  %7517 = vmatprep.subr.msk.bf16.mxu1 %vm2876_vm3, %v8776_v33 }
 0x187   : > { %v8759_v8 = vadd.f32 %v7146_v24, %v8606_v27  ;;  %v8761_v17 = vpop.f32.mrf.mxu1 }
 0x188   : > { %10084 = vst [vmem:[#allocation45_spill] sm:$0xff] %v8761_v17  ;;  %v1646_v43 = vpop.f32.mrf.mxu0 }
 0x189   : > { %10083 = vst [vmem:[#allocation44_spill] sm:$0xff] %v8759_v8  ;;  %v8764_v9 = vadd.f32 %v1646_v43, %v8612_v47  ;;  %v8766_v16 = vpop.f32.mrf.mxu1 }
 0x18a   : > { %10086 = vst [vmem:[#allocation47_spill] sm:$0xff] %v8766_v16  ;;  %v7147_v25 = vpop.f32.mrf.mxu0 }
 0x18b   : > { %10085 = vst [vmem:[#allocation46_spill] sm:$0xff] %v8764_v9  ;;  %v8769_v31 = vadd.f32 %v7147_v25, %v8618_v48  ;;  %v8771_v39 = vpop.f32.mrf.mxu1 }
 0x18c   : > { %10088 = vst [vmem:[#allocation49_spill] sm:$0xff] %v8771_v39  ;;  %v8778_v27 = vpop.f32.mrf.mxu0 }
 0x18d   : > { %10087 = vst [vmem:[#allocation48_spill] sm:$0xff] %v8769_v31  ;;  %10090 = vst [vmem:[#allocation51_spill] sm:$0xff] %v8778_v27  ;;  %v8782_v47 = vpop.f32.mrf.mxu1  ;;  %v8795_v31 = vld [vmem:[%s10025_s2 + $0x18] sm:$0xf] }
 0x18e   : > { %10091 = vst [vmem:[#allocation52_spill] sm:$0xff] %v8782_v47  ;;  %v7186_v24 = vpop.f32.mrf.mxu0  ;;  %10094 = vst [vmem:[#allocation55_spill] sm:$0xff] %v8795_v31  ;;  %7522 = vmatprep.subr.msk.bf16.mxu0 %vm2876_vm3, %v8795_v31 }
 0x18f   : > { %v8784_v43 = vpop.f32.mrf.mxu1 }
 0x190   : > { %10092 = vst [vmem:[#allocation53_spill] sm:$0xff] %v8784_v43  ;;  %v8786_v9 = vpop.f32.mrf.mxu0 }
 0x191   : > { %v8788_v48 = vpop.f32.mrf.mxu1 }
 0x192   : > { %10093 = vst [vmem:[#allocation54_spill] sm:$0xff] %v8788_v48  ;;  %v8790_v25 = vpop.f32.mrf.mxu0 }
 0x193   : > { %v8797_v27 = vpop.f32.mrf.mxu1 }
 0x194   : > { %10095 = vst [vmem:[#allocation56_spill] sm:$0xff] %v8797_v27  ;;  %v8801_v33 = vpop.f32.mrf.mxu0 }
 0x195   : > { %v8803_v8 = vpop.f32.mrf.mxu1 }
 0x196   : > { %10096 = vst [vmem:[#allocation57_spill] sm:$0xff] %v8803_v8  ;;  %v8805_v43 = vpop.f32.mrf.mxu0 }
 0x197   : > { %v8807_v47 = vpop.f32.mrf.mxu1 }
 0x198   : > { %10097 = vst [vmem:[#allocation58_spill] sm:$0xff] %v8807_v47  ;;  %v8809_v48 = vpop.f32.mrf.mxu0 }
 0x199   : > { %v8811_v39 = vpop.f32.mrf.mxu1 }
 0x19a   : > { %10098 = vst [vmem:[#allocation59_spill] sm:$0xff] %v8811_v39  ;;  %v8813_v16 = vpop.f32.mrf.mxu0 }
 0x19b   : > { %v8815_v17 = vpop.f32.mrf.mxu1 }
 0x19c   : > { %10099 = vst [vmem:[#allocation60_spill] sm:$0xff] %v8815_v17  ;;  %v8817_v27 = vpop.f32.mrf.mxu0 }
 0x19d   : > { %v8819_v3 = vpop.f32.mrf.mxu1 }
 0x19e   : > { %10100 = vst [vmem:[#allocation61_spill] sm:$0xff] %v8819_v3  ;;  %v8821_v37 = vpop.f32.mrf.mxu0 }
 0x19f   : > { %v7220_v6 = vpop.f32.mrf.mxu1 }
 0x1a0   : > { %v8823_v8 = vpop.f32.mrf.mxu0 }
 0x1a1   : > { %v2276_v30 = vpop.f32.mrf.mxu1 }
 0x1a2   : > { %v8825_v63 = vpop.f32.mrf.mxu0 }
 0x1a3   : > { %v7221_v47 = vpop.f32.mrf.mxu1 }
 0x1a4   : > { %v8827_v19 = vpop.f32.mrf.mxu0 }
 0x1a5   : > { %10101 = vst [vmem:[#allocation62_spill] sm:$0xff] %v8827_v19  ;;  %v2279_v39 = vpop.f32.mrf.mxu1 }
 0x1a6   : > { %v8829_v10 = vpop.f32.mrf.mxu0 }
 0x1a7   : > { %10102 = vst [vmem:[#allocation63_spill] sm:$0xff] %v8829_v10  ;;  %v8831_v11 = vpop.f32.mrf.mxu1 }
 0x1a8   : > { %v8833_v17 = vpop.f32.mrf.mxu0 }
 0x1a9   : > { %10103 = vst [vmem:[#allocation64_spill] sm:$0xff] %v8833_v17  ;;  %v8835_v55 = vpop.f32.mrf.mxu1 }
 0x1aa   : > { %v8837_v3 = vpop.f32.mrf.mxu0 }
 0x1ab   : > { %10104 = vst [vmem:[#allocation65_spill] sm:$0xff] %v8837_v3  ;;  %v8839_v21 = vpop.f32.mrf.mxu1 }
 0x1ac   : > { %v8841_v38 = vpop.f32.mrf.mxu0 }
 0x1ad   : > { %10105 = vst [vmem:[#allocation66_spill] sm:$0xff] %v8841_v38  ;;  %v8843_v58 = vpop.f32.mrf.mxu1 }
 0x1ae   : > { %v8845_v31 = vpop.f32.mrf.mxu0 }
 0x1af   : > { %10106 = vst [vmem:[#allocation67_spill] sm:$0xff] %v8845_v31  ;;  %v8847_v35 = vpop.f32.mrf.mxu1 }
 0x1b0   : > { %v8849_v57 = vpop.f32.mrf.mxu0 }
 0x1b1   : > { %10107 = vst [vmem:[#allocation68_spill] sm:$0xff] %v8849_v57  ;;  %v8851_v10 = vpop.f32.mrf.mxu1 }
 0x1b2   : > { %v8853_v5 = vpop.f32.mrf.mxu0 }
 0x1b3   : > { %10108 = vst [vmem:[#allocation69_spill] sm:$0xff] %v8853_v5  ;;  %v8855_v17 = vpop.f32.mrf.mxu1 }
 0x1b4   : > { %10109 = vst [vmem:[#allocation70_spill] sm:$0xff] %v8855_v17  ;;  %v8857_v53 = vpop.f32.mrf.mxu0 }
 0x1b5   : > { %10110 = vst [vmem:[#allocation71_spill] sm:$0xff] %v8857_v53  ;;  %v8861_v56 = vpop.f32.mrf.mxu1 }
 0x1b6   : > { %v8859_v3 = vpop.f32.mrf.mxu0  ;;  %10112 = vst [vmem:[#allocation73_spill] sm:$0xff] %v8861_v56 }
 0x1b7   : > { %10111 = vst [vmem:[#allocation72_spill] sm:$0xff] %v8859_v3  ;;  %v8867_v31 = vpop.f32.mrf.mxu1 }
 0x1b8   : > { %v8863_v38 = vpop.f32.mrf.mxu0 }
 0x1b9   : > { %10113 = vst [vmem:[#allocation74_spill] sm:$0xff] %v8863_v38  ;;  %v8873_v44 = vpop.f32.mrf.mxu1 }
 0x1ba   : > { %v8865_v19 = vpop.f32.mrf.mxu0  ;;  %10117 = vst [vmem:[#allocation78_spill] sm:$0xff] %v8873_v44 }
 0x1bb   : > { %10114 = vst [vmem:[#allocation75_spill] sm:$0xff] %v8865_v19  ;;  %v8879_v53 = vpop.f32.mrf.mxu1 }
 0x1bc   : > { %v8869_v1 = vpop.f32.mrf.mxu0  ;;  %10120 = vst [vmem:[#allocation81_spill] sm:$0xff] %v8879_v53 }
 0x1bd   : > { %10115 = vst [vmem:[#allocation76_spill] sm:$0xff] %v8869_v1  ;;  %v8885_v38 = vpop.f32.mrf.mxu1  ;;  %v1909_v1 = vadd.f32 %v8627_v15, %v8516_v2 }
 0x1be   : > { %v8871_v57 = vpop.f32.mrf.mxu0 }
 0x1bf   : > { %10116 = vst [vmem:[#allocation77_spill] sm:$0xff] %v8871_v57  ;;  %v2157_v53 = vadd.f32 %v7186_v24, %v1909_v1  ;;  %v8897_v44 = vpop.f32.mrf.mxu1  ;;  %v1914_v24 = vadd.f32 %v8695_v61, %v8615_v20 }
 0x1c0   : > { %v8875_v5 = vpop.f32.mrf.mxu0 }
 0x1c1   : > { %10118 = vst [vmem:[#allocation79_spill] sm:$0xff] %v8875_v5  ;;  %v1364_v5 = vadd.f32 %v8414_v51, %v8374_v59  ;;  %v2405_v15 = vadd.f32 %v7220_v6, %v2157_v53  ;;  %v8908_v59 = vld [vmem:[%s10029_s6] ss:$0 sm:$0xff] }
 0x1c2   : > { %v8877_v17 = vpop.f32.mrf.mxu0 }
 0x1c3   : > { %10119 = vst [vmem:[#allocation80_spill] sm:$0xff] %v8877_v17  ;;  %v1907_v17 = vadd.f32 %v8632_v23, %v8521_v18  ;;  %v8912_v23 = vpop.f32.mrf.mxu1 }
 0x1c4   : > { %v8881_v3 = vpop.f32.mrf.mxu0 }
 0x1c5   : > { %10121 = vst [vmem:[#allocation82_spill] sm:$0xff] %v8881_v3  ;;  %v2155_v2 = vadd.f32 %v8786_v9, %v1907_v17  ;;  %v1368_v9 = vadd.f32 %v8432_v7, %v8396_v46 }
 0x1c6   : > { %v8883_v56 = vpop.f32.mrf.mxu0 }
 0x1c7   : > { %10122 = vst [vmem:[#allocation83_spill] sm:$0xff] %v8883_v56  ;;  %v1662_v56 = vadd.f32 %v8530_v49, %v1364_v5  ;;  %v2403_v18 = vadd.f32 %v2276_v30, %v2155_v2  ;;  %v8923_v30 = vpop.f32.mrf.mxu1  ;;  %v2162_v2 = vadd.f32 %v8813_v16, %v1914_v24  ;;  %v10128_v24 = vld [vmem:[#allocation70_spill] sm:$0xff] }
 0x1c8   : > { %v8887_v19 = vpop.f32.mrf.mxu0 }
 0x1c9   : > { %10123 = vst [vmem:[#allocation84_spill] sm:$0xff] %v8887_v19  ;;  %v1910_v19 = vadd.f32 %v8640_v54, %v8526_v26  ;;  %v1908_v1 = vadd.f32 %v8680_v0, %v1662_v56  ;;  %v1913_v26 = vadd.f32 %v8685_v50, %v8603_v34 }
 0x1ca   : > { %v8891_v57 = vpop.f32.mrf.mxu0 }
 0x1cb   : > { %10124 = vst [vmem:[#allocation85_spill] sm:$0xff] %v8891_v57  ;;  %v2158_v51 = vadd.f32 %v8790_v25, %v1910_v19  ;;  %v2156_v6 = vadd.f32 %v8801_v33, %v1908_v1  ;;  %v1911_v19 = vadd.f32 %v8690_v62, %v8609_v14  ;;  %v2161_v0 = vadd.f32 %v8805_v43, %v1913_v26  ;;  %v8936_v1 = vpop.f32.mrf.mxu1 }
 0x1cc   : > { %v8899_v3 = vpop.f32.mrf.mxu0  ;;  %v1372_v26 = vadd.f32 %v8451_v42, %v8412_v36  ;;  %v1918_v36 = vadd.f32 %v8714_v12, %v8638_v41 }
 0x1cd   : > { %v2406_v54 = vadd.f32 %v7221_v47, %v2158_v51  ;;  %v1666_v47 = vadd.f32 %v8620_v29, %v1368_v9  ;;  %v2159_v46 = vadd.f32 %v8809_v48, %v1911_v19  ;;  %v2409_v14 = vadd.f32 %v8831_v11, %v2161_v0 }
 0x1ce   : > { %v7254_v57 = vpop.f32.mrf.mxu0  ;;  %v1917_v48 = vadd.f32 %v8704_v4, %v8625_v32  ;;  %v2166_v0 = vadd.f32 %v8825_v63, %v1918_v36 }
 0x1cf   : > { %v2627_v5 = vadd.f32 %v7254_v57, %v2405_v15  ;;  %v2404_v57 = vadd.f32 %v2279_v39, %v2156_v6  ;;  %v1912_v25 = vadd.f32 %v8699_v13, %v1666_v47  ;;  %v2407_v29 = vadd.f32 %v8835_v55, %v2159_v46 }
 0x1d0   : > { %v2498_v49 = vpop.f32.mrf.mxu0  ;;  %v2410_v13 = vadd.f32 %v8839_v21, %v2162_v2  ;;  %v2165_v6 = vadd.f32 %v8821_v37, %v1917_v48  ;;  %v2414_v46 = vadd.f32 %v10128_v24, %v2166_v0  ;;  %v10131_v2 = vld [vmem:[#allocation31_spill] sm:$0xff]  ;;  %v10145_v24 = vld [vmem:[#allocation37_spill] sm:$0xff] }
 0x1d1   : > { %v2664_v53 = vadd.f32 %v8908_v59, %v2627_v5  ;;  %v2625_v17 = vadd.f32 %v2498_v49, %v2403_v18  ;;  %v2160_v51 = vadd.f32 %v8817_v27, %v1912_v25  ;;  %v1915_v49 = vadd.f32 %v8709_v40, %v8630_v60  ;;  %v8952_v27 = vpop.f32.mrf.mxu1  ;;  %v10130_v25 = vld [vmem:[#allocation21_spill] sm:$0xff]  ;;  %v10140_v0 = vld [vmem:[#allocation35_spill] sm:$0xff] }
 0x1d2   : > { %v7255_v56 = vpop.f32.mrf.mxu0  ;;  %v2413_v60 = vadd.f32 %v8847_v35, %v2165_v6 }
 0x1d3   : > { %v2696_v34 = vmax.f32 %v2664_v53, 0.0  ;;  %v2662_v50 = vadd.f32 %v8908_v59, %v2625_v17  ;;  %v2628_v33 = vadd.f32 %v7255_v56, %v2406_v54  ;;  %v2408_v32 = vadd.f32 %v8843_v58, %v2160_v51 }
 0x1d4   : > { %v2501_v7 = vpop.f32.mrf.mxu0  ;;  %v1670_v17 = vadd.f32 %v8644_v28, %v1372_v26  ;;  %v2163_v40 = vadd.f32 %v8823_v8, %v1915_v49  ;;  %v1376_v8 = vadd.f32 %v8471_v52, %v8430_v22  ;;  %v1919_v22 = vadd.f32 %v10131_v2, %v10130_v25  ;;  %v10132_v52 = vld [vmem:[#allocation63_spill] sm:$0xff]  ;;  %v10134_v26 = vld [vmem:[#allocation22_spill] sm:$0xff]  ;;  %v10135_v49 = vld [vmem:[#allocation33_spill] sm:$0xff] }
 0x1d5   : > { %2803 = vst.msk [vmem:[#allocation2 + $0x1d0] sm:$0xff] %vm2726_vm4, %v2696_v34  ;;  %v2694_v62 = vmax.f32 %v2662_v50, 0.0  ;;  %v2665_v39 = vadd.f32 %v8908_v59, %v2628_v33  ;;  %v2626_v43 = vadd.f32 %v2501_v7, %v2404_v57  ;;  %v8966_v57 = vpop.f32.mrf.mxu1  ;;  %v10125_v34 = vld [vmem:[#allocation20_spill] sm:$0xff]  ;;  %v10126_v50 = vld [vmem:[#allocation29_spill] sm:$0xff]  ;;  %v1922_v6 = vadd.f32 %v10135_v49, %v10134_v26 }
 0x1d6   : > { %v7258_v15 = vpop.f32.mrf.mxu0  ;;  %v1916_v19 = vadd.f32 %v8718_v45, %v1670_v17  ;;  %v2411_v28 = vadd.f32 %v8851_v10, %v2163_v40  ;;  %v1921_v33 = vadd.f32 %v10126_v50, %v10125_v34  ;;  %v10127_v45 = vld [vmem:[#allocation62_spill] sm:$0xff] }
 0x1d7   : > { %2801 = vst.msk [vmem:[#allocation2 + $0x1b0] sm:$0xff] %vm2726_vm4, %v2694_v62  ;;  %v2697_v61 = vmax.f32 %v2665_v39, 0.0  ;;  %v2663_v20 = vadd.f32 %v8908_v59, %v2626_v43  ;;  %v2631_v11 = vadd.f32 %v7258_v15, %v2409_v14  ;;  %v10129_v39 = vld [vmem:[#allocation23_spill] sm:$0xff]  ;;  %v8983_v51 = vpop.f32.mrf.mxu1 }
 0x1d8   : > { %v2514_v18 = vpop.f32.mrf.mxu0  ;;  %v2164_v47 = vadd.f32 %v10127_v45, %v1916_v19  ;;  %v1674_v43 = vadd.f32 %v10129_v39, %v1376_v8  ;;  %v2169_v15 = vadd.f32 %v10132_v52, %v1921_v33  ;;  %v10143_v45 = vld [vmem:[#allocation12_spill] sm:$0xff]  ;;  %v10148_v52 = vld [vmem:[#allocation15_spill] sm:$0xff] }
 0x1d9   : > { %2804 = vst.msk [vmem:[#allocation2 + $0x1e0] sm:$0xff] %vm2726_vm4, %v2697_v61  ;;  %v2695_v16 = vmax.f32 %v2663_v20, 0.0  ;;  %v2668_v55 = vadd.f32 %v8908_v59, %v2631_v11  ;;  %v2629_v5 = vadd.f32 %v2514_v18, %v2407_v29  ;;  %v10133_v29 = vld [vmem:[#allocation73_spill] sm:$0xff]  ;;  %v9007_v8 = vpop.f32.mrf.mxu1 }
 0x1da   : > { %v7259_v4 = vpop.f32.mrf.mxu0  ;;  %v2412_v61 = vadd.f32 %v10133_v29, %v2164_v47  ;;  %v2417_v36 = vadd.f32 %v8867_v31, %v2169_v15  ;;  %v10149_v29 = vld [vmem:[#allocation25_spill] sm:$0xff] }
 0x1db   : > { %2802 = vst.msk [vmem:[#allocation2 + $0x1c0] sm:$0xff] %vm2726_vm4, %v2695_v16  ;;  %v2700_v21 = vmax.f32 %v2668_v55, 0.0  ;;  %v2666_v54 = vadd.f32 %v8908_v59, %v2629_v5  ;;  %v2632_v53 = vadd.f32 %v7259_v4, %v2410_v13  ;;  %v10136_v4 = vld [vmem:[#allocation64_spill] sm:$0xff] }
 0x1dc   : > { %v2517_v42 = vpop.f32.mrf.mxu0  ;;  %v3231_v5 = vld [vmem:[#allocation2 + $0x1d0] sm:$0xff] }
 0x1dd   : > { %2807 = vst.msk [vmem:[#allocation2 + $0x210] sm:$0xff] %vm2726_vm4, %v2700_v21  ;;  %v2698_v58 = vmax.f32 %v2666_v54, 0.0  ;;  %v2669_v37 = vadd.f32 %v8908_v59, %v2632_v53  ;;  %v2630_v9 = vadd.f32 %v2517_v42, %v2408_v32  ;;  %v2167_v32 = vadd.f32 %v10136_v4, %v1919_v22  ;;  %v10137_v53 = vld [vmem:[#allocation55_spill] sm:$0xff] }
 0x1de   : > { %v7262_v56 = vpop.f32.mrf.mxu0  ;;  %v3229_v11 = vld [vmem:[#allocation2 + $0x1b0] sm:$0xff]  ;;  %v3460_v17 = vsel %vm2876_vm3, %v10137_v53, 0 }
 0x1df   : > { %2805 = vst.msk [vmem:[#allocation2 + $0x1f0] sm:$0xff] %vm2726_vm4, %v2698_v58  ;;  %v2701_v12 = vmax.f32 %v2669_v37, 0.0  ;;  %v2667_v35 = vadd.f32 %v8908_v59, %v2630_v9  ;;  %v2635_v41 = vadd.f32 %v7262_v56, %v2413_v60  ;;  %v8999_v58 = vld [vmem:[%s10025_s2 + $0x20] sm:$0xf]  ;;  %v10138_v37 = vld [vmem:[#allocation5_spill] sm:$0xff]  ;;  %v10139_v9 = vld [vmem:[#allocation7_spill] sm:$0xff]  ;;  %v1920_v56 = vadd.f32 %v10140_v0, %v1674_v43 }
 0x1e0   : > { %v2530_v63 = vpop.f32.mrf.mxu0  ;;  %v3232_v62 = vld [vmem:[#allocation2 + $0x1e0] sm:$0xff]  ;;  %v792_v19 = vadd.f32 %v10139_v9, %v10138_v37  ;;  %v10153_v53 = vld [vmem:[#allocation26_spill] sm:$0xff] }
 0x1e1   : > { %2808 = vst.msk [vmem:[#allocation2 + $0x220] sm:$0xff] %vm2726_vm4, %v2701_v12  ;;  %v2699_v10 = vmax.f32 %v2667_v35, 0.0  ;;  %v2672_v7 = vadd.f32 %v8908_v59, %v2635_v41  ;;  %v2633_v14 = vadd.f32 %v2530_v63, %v2411_v28  ;;  %v3238_v54 = vpack.c.bf16 %v3232_v62, %v3231_v5  ;;  %v10141_v28 = vld [vmem:[#allocation65_spill] sm:$0xff]  ;;  %v10142_v35 = vld [vmem:[#allocation78_spill] sm:$0xff]  ;;  %v10144_v63 = vld [vmem:[#allocation24_spill] sm:$0xff]  ;;  %v9025_v5 = vpop.f32.mrf.mxu1 }
 0x1e2   : > { %v7263_v20 = vpop.f32.mrf.mxu0  ;;  %v3230_v48 = vld [vmem:[#allocation2 + $0x1c0] sm:$0xff]  ;;  %v2170_v31 = vadd.f32 %v10141_v28, %v1922_v6  ;;  %v2415_v41 = vadd.f32 %v10142_v35, %v2167_v32  ;;  %v1082_v47 = vadd.f32 %v10143_v45, %v792_v19  ;;  %v10147_v62 = vld [vmem:[#allocation81_spill] sm:$0xff] }
 0x1e3   : > { %2806 = vst.msk [vmem:[#allocation2 + $0x200] sm:$0xff] %vm2726_vm4, %v2699_v10  ;;  %v2704_v18 = vmax.f32 %v2672_v7, 0.0  ;;  %v2670_v13 = vadd.f32 %v8908_v59, %v2633_v14  ;;  %v2636_v16 = vadd.f32 %v7263_v20, %v2414_v46  ;;  %v3237_v55 = vpack.c.bf16 %v3230_v48, %v3229_v11  ;;  %v10146_v10 = vld [vmem:[#allocation66_spill] sm:$0xff]  ;;  %v10151_v11 = vld [vmem:[#allocation67_spill] sm:$0xff]  ;;  %v10157_v28 = vld [vmem:[#allocation9_spill] sm:$0xff] }
 0x1e4   : > { %v2533_v21 = vpop.f32.mrf.mxu0  ;;  %v1925_v46 = vadd.f32 %v10145_v24, %v10144_v63  ;;  %v2168_v7 = vadd.f32 %v10146_v10, %v1920_v56  ;;  %v2418_v39 = vadd.f32 %v10147_v62, %v2170_v31  ;;  %v1380_v15 = vadd.f32 %v10148_v52, %v1082_v47  ;;  %v3235_v32 = vld [vmem:[#allocation2 + $0x210] sm:$0xff]  ;;  %v10160_v24 = vld [vmem:[#allocation13_spill] sm:$0xff]  ;;  %v10161_v10 = vld [vmem:[#allocation28_spill] sm:$0xff] }
 0x1e5   : > { %2812 = vst.msk [vmem:[#allocation2 + $0x141] sm:$0xff] %vm2726_vm4, %v2704_v18  ;;  %v2702_v40 = vmax.f32 %v2670_v13, 0.0  ;;  %v2673_v42 = vadd.f32 %v8908_v59, %v2636_v16  ;;  %v2634_v60 = vadd.f32 %v2533_v21, %v2412_v61  ;;  %7326 = vmatprep.mubr.msk.bf16.mxu0 %vm2726_vm4, %v3237_v55  ;;  %v10150_v61 = vld [vmem:[#allocation39_spill] sm:$0xff]  ;;  %v10156_v56 = vld [vmem:[#allocation6_spill] sm:$0xff]  ;;  %v10164_v52 = vld [vmem:[#allocation17_spill] sm:$0xff] }
 0x1e6   : > { %v7266_v12 = vpop.f32.mrf.mxu0  ;;  %7327 = vmatmul.mubr.msk.bf16.vlgmr.msra.gmra.mxu0 %vm2726_vm4, %v3238_v54  ;;  %v1923_v20 = vadd.f32 %v10150_v61, %v10149_v29  ;;  %v2173_v48 = vadd.f32 %v10151_v11, %v1925_v46  ;;  %v2416_v18 = vadd.f32 %v8885_v38, %v2168_v7  ;;  %v3233_v16 = vld [vmem:[#allocation2 + $0x1f0] sm:$0xff]  ;;  %v10152_v21 = vld [vmem:[#allocation27_spill] sm:$0xff]  ;;  %v808_v31 = vadd.f32 %v10157_v28, %v10156_v56  ;;  %v10162_v7 = vld [vmem:[#allocation45_spill] sm:$0xff] }
 0x1e7   : > { %2810 = vst.msk [vmem:[#allocation2 + $0x121] sm:$0xff] %vm2726_vm4, %v2702_v40  ;;  %v2705_v34 = vmax.f32 %v2673_v42, 0.0  ;;  %v2671_v50 = vadd.f32 %v8908_v59, %v2634_v60  ;;  %v2639_v33 = vadd.f32 %v7266_v12, %v2417_v36  ;;  %7345 = vmatpush3.bf16.msra.mxu0 %v3460_v17  ;;  %v1678_v54 = vadd.f32 %v10152_v21, %v1380_v15  ;;  %v10154_v17 = vld [vmem:[#allocation41_spill] sm:$0xff]  ;;  %v10155_v40 = vld [vmem:[#allocation68_spill] sm:$0xff]  ;;  %v10158_v12 = vld [vmem:[#allocation43_spill] sm:$0xff] }
 0x1e8   : > { %v2546_v14 = vpop.f32.mrf.mxu0  ;;  %7524 = vmatprep.subr.msk.bf16.mxu0 %vm2876_vm3, %v8999_v58  ;;  %v3236_v22 = vld [vmem:[#allocation2 + $0x220] sm:$0xff]  ;;  %v1926_v36 = vadd.f32 %v10154_v17, %v10153_v53  ;;  %v2171_v38 = vadd.f32 %v10155_v40, %v1923_v20  ;;  %v2421_v37 = vadd.f32 %v8897_v44, %v2173_v48  ;;  %v1086_v46 = vadd.f32 %v10160_v24, %v808_v31  ;;  %v10163_v62 = vld [vmem:[#allocation71_spill] sm:$0xff]  ;;  %v10165_v29 = vld [vmem:[#allocation30_spill] sm:$0xff] }
 0x1e9   : > { %2813 = vst.msk [vmem:[#allocation2 + $0x151] sm:$0xff] %vm2726_vm4, %v2705_v34  ;;  %v2703_v43 = vmax.f32 %v2671_v50, 0.0  ;;  %v2676_v25 = vadd.f32 %v8908_v59, %v2639_v33  ;;  %v2637_v2 = vadd.f32 %v2546_v14, %v2415_v41  ;;  %v3240_v60 = vpack.c.bf16 %v3236_v22, %v3235_v32  ;;  %v10159_v41 = vld [vmem:[#allocation69_spill] sm:$0xff]  ;;  %v9043_v33 = vpop.f32.mrf.mxu1  ;;  %v10166_v61 = vld [vmem:[#allocation47_spill] sm:$0xff]  ;;  %v10167_v11 = vld [vmem:[#allocation72_spill] sm:$0xff] }
 0x1ea   : > { %v7267_v13 = vpop.f32.mrf.mxu0  ;;  %v3234_v55 = vld [vmem:[#allocation2 + $0x200] sm:$0xff]  ;;  %v1924_v35 = vadd.f32 %v10158_v12, %v1678_v54  ;;  %v2174_v34 = vadd.f32 %v10159_v41, %v1926_v36  ;;  %v2419_v44 = vadd.f32 %v8912_v23, %v2171_v38  ;;  %v1929_v14 = vadd.f32 %v10162_v7, %v10161_v10  ;;  %v10170_v32 = vld [vmem:[#allocation49_spill] sm:$0xff]  ;;  %v10171_v54 = vld [vmem:[#allocation74_spill] sm:$0xff] }
 0x1eb   : > { %2811 = vst.msk [vmem:[#allocation2 + $0x131] sm:$0xff] %vm2726_vm4, %v2703_v43  ;;  %v2708_v26 = vmax.f32 %v2676_v25, 0.0  ;;  %v2674_v49 = vadd.f32 %v8908_v59, %v2637_v2  ;;  %v2640_v6 = vadd.f32 %v7267_v13, %v2418_v39  ;;  %v3239_v4 = vpack.c.bf16 %v3234_v55, %v3233_v16  ;;  %v9059_v16 = vpop.f32.mrf.mxu1 }
 0x1ec   : > { %v2549_v42 = vpop.f32.mrf.mxu0  ;;  %v2172_v39 = vadd.f32 %v10163_v62, %v1924_v35  ;;  %v2422_v25 = vadd.f32 %v8923_v30, %v2174_v34  ;;  %v1384_v15 = vadd.f32 %v10164_v52, %v1086_v46  ;;  %v1927_v20 = vadd.f32 %v10166_v61, %v10165_v29  ;;  %v10176_v34 = vld [vmem:[#allocation14_spill] sm:$0xff] }
 0x1ed   : > { %2816 = vst.msk [vmem:[#allocation2 + $0x181] sm:$0xff] %vm2726_vm4, %v2708_v26  ;;  %v2706_v9 = vmax.f32 %v2674_v49, 0.0  ;;  %v2677_v19 = vadd.f32 %v8908_v59, %v2640_v6  ;;  %v2638_v0 = vadd.f32 %v2549_v42, %v2416_v18  ;;  %7330 = vmatprep.mubr.msk.bf16.mxu0 %vm2726_vm4, %v3239_v4  ;;  %v2177_v48 = vadd.f32 %v10167_v11, %v1929_v14  ;;  %v10168_v49 = vld [vmem:[#allocation34_spill] sm:$0xff]  ;;  %v10169_v4 = vld [vmem:[#allocation32_spill] sm:$0xff]  ;;  %v2375_v12 = vpop.f32.mrf.mxu1 }
 0x1ee   : > { %v7270_v50 = vpop.f32.mrf.mxu0  ;;  %7331 = vmatmul.mubr.msk.bf16.gmra.mxu0 %vm2726_vm4, %v3240_v60  ;;  %v2420_v13 = vadd.f32 %v8936_v1, %v2172_v39  ;;  %v1682_v6 = vadd.f32 %v10168_v49, %v1384_v15  ;;  %v1930_v21 = vadd.f32 %v10170_v32, %v10169_v4  ;;  %v2175_v53 = vadd.f32 %v10171_v54, %v1927_v20  ;;  %v10172_v42 = vld [vmem:[#allocation8_spill] sm:$0xff]  ;;  %v10173_v60 = vld [vmem:[#allocation10_spill] sm:$0xff] }
 0x1ef   : > { %2814 = vst.msk [vmem:[#allocation2 + $0x161] sm:$0xff] %vm2726_vm4, %v2706_v9  ;;  %v2709_v45 = vmax.f32 %v2677_v19, 0.0  ;;  %v2675_v47 = vadd.f32 %v8908_v59, %v2638_v0  ;;  %v2643_v63 = vadd.f32 %v7270_v50, %v2421_v37  ;;  %v2425_v36 = vadd.f32 %v8952_v27, %v2177_v48  ;;  %v10174_v9 = vld [vmem:[#allocation52_spill] sm:$0xff]  ;;  %v10175_v0 = vld [vmem:[#allocation75_spill] sm:$0xff]  ;;  %v10180_v62 = vld [vmem:[#allocation18_spill] sm:$0xff]  ;;  %v7248_v29 = vpop.f32.mrf.mxu1 }
 0x1f0   : > { %v2562_v43 = vpop.f32.mrf.mxu0  ;;  %v824_v37 = vadd.f32 %v10173_v60, %v10172_v42  ;;  %v1928_v19 = vadd.f32 %v10174_v9, %v1682_v6  ;;  %v2178_v56 = vadd.f32 %v10175_v0, %v1930_v21  ;;  %v2423_v31 = vadd.f32 %v8966_v57, %v2175_v53  ;;  %v10184_v11 = vld [vmem:[#allocation4_spill] sm:$0xff]  ;;  %v10185_v48 = vld [vmem:[#allocation11_spill] sm:$0xff]  ;;  %v2850_v21 = vld [vmem:[#allocation2 + $0x90] sm:$0xff] }
 0x1f1   : > { %2817 = vst.msk [vmem:[#allocation2 + $0x191] sm:$0xff] %vm2726_vm4, %v2709_v45  ;;  %v2707_v23 = vmax.f32 %v2675_v47, 0.0  ;;  %v2680_v2 = vadd.f32 %v8908_v59, %v2643_v63  ;;  %v2641_v22 = vadd.f32 %v2562_v43, %v2419_v44  ;;  %v10177_v44 = vld [vmem:[#allocation36_spill] sm:$0xff]  ;;  %v10178_v45 = vld [vmem:[#allocation53_spill] sm:$0xff]  ;;  %v10181_v43 = vld [vmem:[#allocation38_spill] sm:$0xff]  ;;  %v2388_v0 = vpop.f32.mrf.mxu1 }
 0x1f2   : > { %v7271_v18 = vpop.f32.mrf.mxu0  ;;  %v1090_v50 = vadd.f32 %v10176_v34, %v824_v37  ;;  %v1933_v47 = vadd.f32 %v10178_v45, %v10177_v44  ;;  %v10179_v63 = vld [vmem:[#allocation76_spill] sm:$0xff]  ;;  %v2426_v10 = vadd.f32 %v8983_v51, %v2178_v56  ;;  %v10189_v6 = vld [vmem:[#allocation79_spill] sm:$0xff]  ;;  %v10195_v34 = vld [vmem:[#allocation58_spill] sm:$0xff] }
 0x1f3   : > { %2815 = vst.msk [vmem:[#allocation2 + $0x171] sm:$0xff] %vm2726_vm4, %v2707_v23  ;;  %v2712_v30 = vmax.f32 %v2680_v2, 0.0  ;;  %v2678_v55 = vadd.f32 %v8908_v59, %v2641_v22  ;;  %v2644_v26 = vadd.f32 %v7271_v18, %v2422_v25  ;;  %v2176_v24 = vadd.f32 %v10179_v63, %v1928_v19  ;;  %v10182_v25 = vld [vmem:[#allocation54_spill] sm:$0xff]  ;;  %v10183_v2 = vld [vmem:[#allocation77_spill] sm:$0xff]  ;;  %v10192_v42 = vld [vmem:[#allocation80_spill] sm:$0xff] }
 0x1f4   : > { %v2565_v17 = vpop.f32.mrf.mxu0  ;;  %v1388_v39 = vadd.f32 %v10180_v62, %v1090_v50  ;;  %v1931_v23 = vadd.f32 %v10182_v25, %v10181_v43  ;;  %v2181_v22 = vadd.f32 %v10183_v2, %v1933_v47  ;;  %v840_v18 = vadd.f32 %v10185_v48, %v10184_v11  ;;  %v10196_v44 = vld [vmem:[#allocation82_spill] sm:$0xff]  ;;  %v10198_v62 = vld [vmem:[#allocation59_spill] sm:$0xff] }
 0x1f5   : > { %2821 = vst.msk [vmem:[#allocation2 + $0xc0] sm:$0xff] %vm2726_vm4, %v2712_v30  ;;  %v2710_v1 = vmax.f32 %v2678_v55, 0.0  ;;  %v2681_v40 = vadd.f32 %v8908_v59, %v2644_v26  ;;  %v2642_v38 = vadd.f32 %v2565_v17, %v2420_v13  ;;  %v2424_v15 = vadd.f32 %v9007_v8, %v2176_v24  ;;  %v10186_v13 = vld [vmem:[#allocation42_spill] sm:$0xff]  ;;  %v10187_v55 = vld [vmem:[#allocation40_spill] sm:$0xff]  ;;  %v10201_v48 = vld [vmem:[#allocation51_spill] sm:$0xff] }
 0x1f6   : > { %v7274_v28 = vpop.f32.mrf.mxu0  ;;  %v1686_v30 = vadd.f32 %v10186_v13, %v1388_v39  ;;  %v10188_v26 = vld [vmem:[#allocation56_spill] sm:$0xff]  ;;  %v2179_v4 = vadd.f32 %v10189_v6, %v1931_v23  ;;  %v2429_v8 = vadd.f32 %v9025_v5, %v2181_v22  ;;  %v10200_v22 = vld [vmem:[#allocation50_spill] sm:$0xff]  ;;  %v6422_v6 = vld [vmem:[%s10025_s2 + $0x8] sm:$0xf] }
 0x1f7   : > { %2819 = vst.msk [vmem:[#allocation2 + $0xa0] sm:$0xff] %vm2726_vm4, %v2710_v1  ;;  %v2713_v27 = vmax.f32 %v2681_v40, 0.0  ;;  %v2679_v35 = vadd.f32 %v8908_v59, %v2642_v38  ;;  %v2647_v41 = vadd.f32 %v7274_v28, %v2425_v36  ;;  %v1934_v49 = vadd.f32 %v10188_v26, %v10187_v55  ;;  %v10190_v36 = vld [vmem:[#allocation16_spill] sm:$0xff]  ;;  %v10191_v40 = vld [vmem:[#allocation57_spill] sm:$0xff] }
 0x1f8   : > { %v2578_v46 = vpop.f32.mrf.mxu0  ;;  %v1094_v1 = vadd.f32 %v10190_v36, %v840_v18  ;;  %v1932_v38 = vadd.f32 %v10191_v40, %v1686_v30  ;;  %v2427_v37 = vadd.f32 %v9043_v33, %v2179_v4  ;;  %v10202_v13 = vld [vmem:[#allocation48_spill] sm:$0xff]  ;;  %v10206_v36 = vld [vmem:[#allocation85_spill] sm:$0xff] }
 0x1f9   : > { %2822 = vst.msk [vmem:[#allocation2 + $0xd0] sm:$0xff] %vm2726_vm4, %v2713_v27  ;;  %v2711_v57 = vmax.f32 %v2679_v35, 0.0  ;;  %v2684_v7 = vadd.f32 %v8908_v59, %v2647_v41  ;;  %v2645_v14 = vadd.f32 %v2578_v46, %v2423_v31  ;;  %v2182_v60 = vadd.f32 %v10192_v42, %v1934_v49  ;;  %v10193_v27 = vld [vmem:[#allocation19_spill] sm:$0xff]  ;;  %v10194_v41 = vld [vmem:[#allocation44_spill] sm:$0xff] }
 0x1fa   : > { %v7275_v52 = vpop.f32.mrf.mxu0  ;;  %v1392_v35 = vadd.f32 %v10193_v27, %v1094_v1  ;;  %v1937_v50 = vadd.f32 %v10195_v34, %v10194_v41  ;;  %v2180_v45 = vadd.f32 %v10196_v44, %v1932_v38  ;;  %v10204_v55 = vld [vmem:[#allocation84_spill] sm:$0xff] }
 0x1fb   : > { %2820 = vst.msk [vmem:[#allocation2 + $0xb0] sm:$0xff] %vm2726_vm4, %v2711_v57  ;;  %v2716_v51 = vmax.f32 %v2684_v7, 0.0  ;;  %v2682_v61 = vadd.f32 %v8908_v59, %v2645_v14  ;;  %v2648_v20 = vadd.f32 %v7275_v52, %v2426_v10  ;;  %v2430_v33 = vadd.f32 %v9059_v16, %v2182_v60  ;;  %v10197_v14 = vld [vmem:[#allocation46_spill] sm:$0xff]  ;;  %v10199_v16 = vld [vmem:[#allocation83_spill] sm:$0xff] }
 0x1fc   : > { %v2581_v32 = vpop.f32.mrf.mxu0  ;;  %v9114_v63 = vld [vmem:[#allocation2 + $0xc0] sm:$0xff]  ;;  %v1935_v39 = vadd.f32 %v10198_v62, %v10197_v14  ;;  %v2185_v43 = vadd.f32 %v10199_v16, %v1937_v50  ;;  %v2428_v25 = vadd.f32 %v2375_v12, %v2180_v45  ;;  %v2958_v52 = vsel %vm2876_vm3, %v10200_v22, 0 }
 0x1fd   : > { %2825 = vst.msk [vmem:[#allocation2 + $0x100] sm:$0xff] %vm2726_vm4, %v2716_v51  ;;  %v2714_v54 = vmax.f32 %v2682_v61, 0.0  ;;  %v2685_v53 = vadd.f32 %v8908_v59, %v2648_v20  ;;  %v2646_v17 = vadd.f32 %v2581_v32, %v2424_v15  ;;  %v7249_v15 = vpop.f32.mrf.mxu1  ;;  %v1690_v18 = vadd.f32 %v10201_v48, %v1392_v35  ;;  %v10203_v12 = vld [vmem:[#allocation60_spill] sm:$0xff] }
 0x1fe   : > { %v7278_v9 = vpop.f32.mrf.mxu0  ;;  %v9104_v19 = vld [vmem:[#allocation2 + $0xa0] sm:$0xff]  ;;  %v1938_v30 = vadd.f32 %v10203_v12, %v10202_v13  ;;  %v2183_v26 = vadd.f32 %v10204_v55, %v1935_v39  ;;  %v2433_v32 = vadd.f32 %v7248_v29, %v2185_v43 }
 0x1ff   : > { %2823 = vst.msk [vmem:[#allocation2 + $0xe0] sm:$0xff] %vm2726_vm4, %v2714_v54  ;;  %v2717_v5 = vmax.f32 %v2685_v53, 0.0  ;;  %v2683_v56 = vadd.f32 %v8908_v59, %v2646_v17  ;;  %v2651_v28 = vadd.f32 %v7278_v9, %v2429_v8  ;;  %v2858_v31 = vpack.c.bf16 %v9104_v19, %v2850_v21  ;;  %v10205_v53 = vld [vmem:[#allocation61_spill] sm:$0xff]  ;;  %v2391_v60 = vpop.f32.mrf.mxu1 }
 0x200   : > { %v2594_v47 = vpop.f32.mrf.mxu0  ;;  %v9116_v24 = vld [vmem:[#allocation2 + $0xd0] sm:$0xff]  ;;  %v1936_v17 = vadd.f32 %v10205_v53, %v1690_v18  ;;  %v2186_v1 = vadd.f32 %v10206_v36, %v1938_v30  ;;  %v2431_v40 = vadd.f32 %v2388_v0, %v2183_v26  ;;  %v3664_v18 = vsel %vm2876_vm3, %v8999_v58, 0  ;;  %v3025_v30 = vld [vmem:[#allocation2 + $0x1] sm:$0xff] }
 0x201   : > { %2826 = vst.msk [vmem:[#allocation2 + $0x110] sm:$0xff] %vm2726_vm4, %v2717_v5  ;;  %v2715_v46 = vmax.f32 %v2683_v56, 0.0  ;;  %v2688_v10 = vadd.f32 %v8908_v59, %v2651_v28  ;;  %v2649_v57 = vadd.f32 %v2594_v47, %v2427_v37  ;;  %7286 = vmatprep.mubr.msk.bf16.mxu1 %vm2726_vm4, %v2858_v31  ;;  %v3544_v7 = vpack.c.bf16 %v9116_v24, %v9114_v63 }
 0x202   : > { %v7279_v23 = vpop.f32.mrf.mxu0  ;;  %v9126_v2 = vld [vmem:[#allocation2 + $0xb0] sm:$0xff]  ;;  %v2184_v56 = vadd.f32 %v8899_v3, %v1936_v17  ;;  %v2434_v0 = vadd.f32 %v7249_v15, %v2186_v1 }
 0x203   : > { %2824 = vst.msk [vmem:[#allocation2 + $0xf0] sm:$0xff] %vm2726_vm4, %v2715_v46  ;;  %v2720_v51 = vmax.f32 %v2688_v10, 0.0  ;;  %v2686_v61 = vadd.f32 %v8908_v59, %v2649_v57  ;;  %v2652_v20 = vadd.f32 %v7279_v23, %v2430_v33  ;;  %v2859_v11 = vpack.c.bf16 %v9114_v63, %v9126_v2  ;;  %v2836_v10 = vld [vmem:[#allocation2] sm:$0xff]  ;;  %v7545_v63 = vld [vmem:[%s10028_s5 + $0x78] sm:$0xff]  }
 0x204   : > { %v2597_v49 = vpop.f32.mrf.mxu0  ;;  %v3543_v4 = vpack.c.bf16 %v9126_v2, %v9104_v19  ;;  %v2432_v41 = vadd.f32 %v2391_v60, %v2184_v56  ;;  %v9161_v44 = vld [vmem:[#allocation2 + $0x100] sm:$0xff]  ;;  %v3128_v56 = vld [vmem:[#allocation2 + $0x130] sm:$0xff]  ;;  %v10207_v19 = vmov 0.0   ;;  %v7548_v2 = vld [vmem:[%s10028_s5 + $0xb8] sm:$0xff]  }
 0x205   : > { %2830 = vst.msk [vmem:[#allocation2 + $0x31] sm:$0xff] %vm2726_vm4, %v2720_v51  ;;  %v2718_v21 = vmax.f32 %v2686_v61, 0.0  ;;  %v2689_v8 = vadd.f32 %v8908_v59, %v2652_v20  ;;  %v2650_v54 = vadd.f32 %v2597_v49, %v2428_v25  ;;  %7287 = vmatmul.mubr.msk.bf16.vlgmr.msra.gmra.mxu1 %vm2726_vm4, %v2859_v11  ;;  %v3052_v20 = vsel %vm2876_vm3, %v6422_v6, 0 }
 0x206   : > { %7295 = vmatpush3.bf16.msra.mxu1 %v2958_v52  ;;  %v7282_v38 = vpop.f32.mrf.mxu0  ;;  %v9148_v42 = vld [vmem:[#allocation2 + $0xe0] sm:$0xff]  ;;  %4779 = vst.msk [vmem:[#allocation3 + $0x10] sm:$0xff] %vm3788_vm6, %v10207_v19  ;;  %4776 = vst.msk [vmem:[#allocation3] sm:$0xff] %vm3788_vm6, %v10207_v19 }
 0x207   : > { %2828 = vst.msk [vmem:[#allocation2 + $0x11] sm:$0xff] %vm2726_vm4, %v2718_v21  ;;  %v2721_v29 = vmax.f32 %v2689_v8, 0.0  ;;  %v2687_v37 = vadd.f32 %v8908_v59, %v2650_v54  ;;  %v2655_v9 = vadd.f32 %v7282_v38, %v2433_v32  ;;  %v2860_v5 = vpack.c.bf16 %v9148_v42, %v9116_v24  ;;  %7518 = vmatprep.subr.msk.bf16.mxu1 %vm2876_vm3, %v6422_v6  ;;  %v7546_v24 = vld [vmem:[%s10028_s5 + $0xf8] sm:$0xff]  }
 0x208   : > { %v2610_v28 = vpop.f32.mrf.mxu0  ;;  %4780 = vst.msk [vmem:[#allocation3 + $0x18] sm:$0x3] %vm4777_vm7, %v10207_v19  ;;  %4778 = vst.msk [vmem:[#allocation3 + $0x8] sm:$0x3] %vm4777_vm7, %v10207_v19 }
 0x209   : > { %2831 = vst.msk [vmem:[#allocation2 + $0x41] sm:$0xff] %vm2726_vm4, %v2721_v29  ;;  %v2719_v31 = vmax.f32 %v2687_v37, 0.0  ;;  %v2692_v27 = vadd.f32 %v8908_v59, %v2655_v9  ;;  %v2653_v35 = vadd.f32 %v2610_v28, %v2431_v40  ;;  %7290 = vmatprep.mubr.msk.bf16.mxu1 %vm2726_vm4, %v2860_v5  ;;  %v6437_v37 = vld [vmem:[%s10025_s2 + $0x14] sm:$0xf] }
 0x20a   : > { %v7283_v34 = vpop.f32.mrf.mxu0  ;;  %v9159_v50 = vld [vmem:[#allocation2 + $0xf0] sm:$0xff]  ;;  %4781 = vst.msk [vmem:[#allocation3 + $0x20] sm:$0xff] %vm3788_vm6, %v10207_v19  ;;  %4783 = vst.msk [vmem:[#allocation3 + $0x30] sm:$0xff] %vm3788_vm6, %v10207_v19 }
 0x20b   : > { %2829 = vst.msk [vmem:[#allocation2 + $0x21] sm:$0xff] %vm2726_vm4, %v2719_v31  ;;  %v2724_v45 = vmax.f32 %v2692_v27, 0.0  ;;  %v2690_v3 = vadd.f32 %v8908_v59, %v2653_v35  ;;  %v2656_v33 = vadd.f32 %v7283_v34, %v2434_v0  ;;  %v2861_v47 = vpack.c.bf16 %v9161_v44, %v9159_v50  ;;  %v3127_v27 = vld [vmem:[#allocation2 + $0x120] sm:$0xff]  ;;  %v3130_v34 = vld [vmem:[#allocation2 + $0x150] sm:$0xff] }
 0x20c   : > { %v2613_v46 = vpop.f32.mrf.mxu0  ;;  %v3545_v57 = vpack.c.bf16 %v9159_v50, %v9148_v42  ;;  %v2839_v51 = vld [vmem:[#allocation2 + $0x30] sm:$0xff]  ;;  %v3135_v35 = vpack.c.bf16 %v3128_v56, %v3127_v27  ;;  %4782 = vst.msk [vmem:[#allocation3 + $0x28] sm:$0x3] %vm4777_vm7, %v10207_v19  ;;  %4784 = vst.msk [vmem:[#allocation3 + $0x38] sm:$0x3] %vm4777_vm7, %v10207_v19 }
 0x20d   : > { %2834 = vst.msk [vmem:[#allocation2 + $0x71] sm:$0xff] %vm2726_vm4, %v2724_v45  ;;  %v2722_v14 = vmax.f32 %v2690_v3, 0.0  ;;  %v2693_v62 = vadd.f32 %v8908_v59, %v2656_v33  ;;  %v2654_v39 = vadd.f32 %v2613_v46, %v2432_v41  ;;  %7291 = vmatmul.mubr.msk.bf16.gmra.mxu1 %vm2726_vm4, %v2861_v47  ;;  %v3028_v36 = vld [vmem:[#allocation2 + $0x31] sm:$0xff]  ;;  %v3129_v3 = vld [vmem:[#allocation2 + $0x140] sm:$0xff]  ;;  %v3358_v47 = vsel %vm2876_vm3, %v6437_v37, 0 }
 0x20e   : > { %v2837_v16 = vld [vmem:[#allocation2 + $0x10] sm:$0xff]  ;;  %v3136_v33 = vpack.c.bf16 %v3130_v34, %v3129_v3  ;;  %v3131_v46 = vld [vmem:[#allocation2 + $0x160] sm:$0xff]  ;;  %4785 = vst.msk [vmem:[#allocation3 + $0x40] sm:$0xff] %vm3788_vm6, %v10207_v19  ;;  %4787 = vst.msk [vmem:[#allocation3 + $0x50] sm:$0xff] %vm3788_vm6, %v10207_v19 }
 0x20f   : > { %2832 = vst.msk [vmem:[#allocation2 + $0x51] sm:$0xff] %vm2726_vm4, %v2722_v14  ;;  %v2725_v43 = vmax.f32 %v2693_v62, 0.0  ;;  %v2691_v25 = vadd.f32 %v8908_v59, %v2654_v39  ;;  %v2844_v23 = vpack.c.bf16 %v2837_v16, %v2836_v10  ;;  %v6427_v59 = vld [vmem:[%s10025_s2 + $0xc] sm:$0xf]  ;;  %v3026_v58 = vld [vmem:[#allocation2 + $0x11] sm:$0xff] }
 0x210   : > { %v3436_v52 = vld [vmem:[#allocation2 + $0x40] sm:$0xff]  ;;  %v3033_v8 = vpack.c.bf16 %v3026_v58, %v3025_v30  ;;  %v3154_v38 = vsel %vm2876_vm3, %v6427_v59, 0  ;;  %v3132_v45 = vld [vmem:[#allocation2 + $0x170] sm:$0xff]  ;;  %v6447_v14 = vld [vmem:[%s10025_s2 + $0x1c] sm:$0xf]  ;;  %4789 = vst.msk [vmem:[#allocation3 + $0x60] sm:$0xff] %vm3788_vm6, %v10207_v19 }
 0x211   : > { %2835 = vst.msk [vmem:[#allocation2 + $0x81] sm:$0xff] %vm2726_vm4, %v2725_v43  ;;  %v2723_v22 = vmax.f32 %v2691_v25, 0.0  ;;  %7296 = vmatprep.mubr.msk.bf16.mxu1 %vm2726_vm4, %v2844_v23  ;;  %v3442_v48 = vpack.c.bf16 %v3436_v52, %v2839_v51  ;;  %v3029_v1 = vld [vmem:[#allocation2 + $0x41] sm:$0xff]  ;;  %v3137_v10 = vpack.c.bf16 %v3132_v45, %v3131_v46  ;;  %v3134_v62 = vld [vmem:[#allocation2 + $0x190] sm:$0xff] }
 0x212   : > { %v2838_v15 = vld [vmem:[#allocation2 + $0x20] sm:$0xff]  ;;  %v3646_v9 = vpack.c.bf16 %v3029_v1, %v3028_v36  ;;  %v3332_v39 = vld [vmem:[#allocation2 + $0x131] sm:$0xff]  ;;  %4786 = vst.msk [vmem:[#allocation3 + $0x48] sm:$0x3] %vm4777_vm7, %v10207_v19  ;;  %4788 = vst.msk [vmem:[#allocation3 + $0x58] sm:$0x3] %vm4777_vm7, %v10207_v19 }
 0x213   : > { %2833 = vst.msk [vmem:[#allocation2 + $0x61] sm:$0xff] %vm2726_vm4, %v2723_v22  ;;  %v2845_v61 = vpack.c.bf16 %v2839_v51, %v2838_v15  ;;  %v3441_v11 = vpack.c.bf16 %v2838_v15, %v2837_v16  ;;  %v3638_v6 = vld [vmem:[#allocation2 + $0x21] sm:$0xff]  ;;  %v3334_v22 = vld [vmem:[#allocation2 + $0x151] sm:$0xff] }
 0x214   : > { %v2843_v49 = vld [vmem:[#allocation2 + $0x70] sm:$0xff]  ;;  %v3645_v53 = vpack.c.bf16 %v3638_v6, %v3026_v58  ;;  %v3034_v40 = vpack.c.bf16 %v3028_v36, %v3638_v6  ;;  %v3133_v16 = vld [vmem:[#allocation2 + $0x180] sm:$0xff]  ;;  %4790 = vst.msk [vmem:[#allocation3 + $0x68] sm:$0x3] %vm4777_vm7, %v10207_v19  ;;  %4792 = vst.msk [vmem:[#allocation3 + $0x78] sm:$0x3] %vm4777_vm7, %v10207_v19 }
 0x215   : > { %7297 = vmatmul.mubr.msk.bf16.vlgmr.msra.gmra.mxu1 %vm2726_vm4, %v2845_v61  ;;  %7346 = vmatprep.mubr.msk.bf16.mxu0 %vm2726_vm4, %v3441_v11  ;;  %v3032_v28 = vld [vmem:[#allocation2 + $0x71] sm:$0xff]  ;;  %v3138_v43 = vpack.c.bf16 %v3134_v62, %v3133_v16  ;;  %v3331_v25 = vld [vmem:[#allocation2 + $0x121] sm:$0xff]  ;;  %v3562_v61 = vsel %vm2876_vm3, %v6447_v14, 0  ;;  %4791 = vst.msk [vmem:[#allocation3 + $0x70] sm:$0xff] %vm3788_vm6, %v10207_v19  ;;  %4793 = vst.msk [vmem:[#allocation3 + $0x80] sm:$0xff] %vm3788_vm6, %v10207_v19 }
 0x216   : > { %7305 = vmatpush3.bf16.msra.mxu1 %v3052_v20  ;;  %7347 = vmatmul.mubr.msk.bf16.vlgmr.msra.gmra.mxu0 %vm2726_vm4, %v3442_v48  ;;  %v2841_v13 = vld [vmem:[#allocation2 + $0x50] sm:$0xff]  ;;  %v3339_v23 = vpack.c.bf16 %v3332_v39, %v3331_v25  ;;  %v3333_v15 = vld [vmem:[#allocation2 + $0x141] sm:$0xff]  ;;  %4794 = vst.msk [vmem:[#allocation3 + $0x88] sm:$0x3] %vm4777_vm7, %v10207_v19  ;;  %4796 = vst.msk [vmem:[#allocation3 + $0x98] sm:$0x3] %vm4777_vm7, %v10207_v19 }
 0x217   : > { %v2846_v12 = vpack.c.bf16 %v2841_v13, %v3436_v52  ;;  %7365 = vmatpush3.bf16.msra.mxu0 %v3664_v18  ;;  %7519 = vmatprep.subr.msk.bf16.mxu1 %vm2876_vm3, %v6427_v59  ;;  %v3030_v17 = vld [vmem:[#allocation2 + $0x51] sm:$0xff]  ;;  %v3340_v51 = vpack.c.bf16 %v3334_v22, %v3333_v15  ;;  %v3335_v20 = vld [vmem:[#allocation2 + $0x161] sm:$0xff]  ;;  %4795 = vst.msk [vmem:[#allocation3 + $0x90] sm:$0xff] %vm3788_vm6, %v10207_v19 }
 0x218   : > { %v3440_v55 = vld [vmem:[#allocation2 + $0x80] sm:$0xff]  ;;  %v3035_v29 = vpack.c.bf16 %v3030_v17, %v3029_v1  ;;  %v3336_v52 = vld [vmem:[#allocation2 + $0x171] sm:$0xff]  ;;  %6844 = vmatprep.subr.bf16.mxu0 %v7546_v24  ;;  %v7554_v30 = vld [vmem:[%s10028_s5 + $0xe8] sm:$0xff]  }
 0x219   : > { %7300 = vmatprep.mubr.msk.bf16.mxu1 %vm2726_vm4, %v2846_v12  ;;  %v3444_v54 = vpack.c.bf16 %v3440_v55, %v2843_v49  ;;  %v3644_v0 = vld [vmem:[#allocation2 + $0x81] sm:$0xff]  ;;  %v3341_v11 = vpack.c.bf16 %v3336_v52, %v3335_v20  ;;  %v3338_v48 = vld [vmem:[#allocation2 + $0x191] sm:$0xff] }
 0x21a   : > { %v2842_v26 = vld [vmem:[#allocation2 + $0x60] sm:$0xff]  ;;  %v3648_v41 = vpack.c.bf16 %v3644_v0, %v3032_v28  ;;  %v7550_v42 = vld [vmem:[%s10028_s5 + $0xf0] sm:$0xff]  }
 0x21b   : > { %v2847_v32 = vpack.c.bf16 %v2843_v49, %v2842_v26  ;;  %v3443_v21 = vpack.c.bf16 %v2842_v26, %v2841_v13  ;;  %v3642_v60 = vld [vmem:[#allocation2 + $0x61] sm:$0xff]  ;;  %v3542_v13 = vld [vmem:[#allocation2 + $0x110] sm:$0xff] }
 0x21c   : > { %v3647_v5 = vpack.c.bf16 %v3642_v60, %v3030_v17  ;;  %v3036_v31 = vpack.c.bf16 %v3032_v28, %v3642_v60  ;;  %v3337_v18 = vld [vmem:[#allocation2 + $0x181] sm:$0xff]  ;;  %v3546_v12 = vpack.c.bf16 %v3542_v13, %v9161_v44  ;;  %v7551_v50 = vld [vmem:[%s10028_s5 + $0x30] sm:$0xff]  }
 0x21d   : > { %7301 = vmatmul.mubr.msk.bf16.gmra.mxu1 %vm2726_vm4, %v2847_v32  ;;  %7350 = vmatprep.mubr.msk.bf16.mxu0 %vm2726_vm4, %v3443_v21  ;;  %v3342_v59 = vpack.c.bf16 %v3338_v48, %v3337_v18  ;;  %v7552_v44 = vld [vmem:[%s10028_s5 + $0xb0] sm:$0xff]  }
 0x21e   : > { %7306 = vmatprep.mubr.msk.bf16.mxu1 %vm2726_vm4, %v3033_v8  ;;  %7351 = vmatmul.mubr.msk.bf16.gmra.mxu0 %vm2726_vm4, %v3444_v54 }
 0x21f   : > { %7366 = vmatprep.mubr.msk.bf16.mxu0 %vm2726_vm4, %v3645_v53 }
 0x225   : > { %7307 = vmatmul.mubr.msk.bf16.vlgmr.msra.gmra.mxu1 %vm2726_vm4, %v3034_v40 }
 0x226   : > { %7315 = vmatpush3.bf16.msra.mxu1 %v3154_v38  ;;  %7310 = vmatprep.mubr.msk.bf16.mxu1 %vm2726_vm4, %v3035_v29 }
 0x227   : > { %7367 = vmatmul.mubr.msk.bf16.vlgmr.msra.gmra.mxu0 %vm2726_vm4, %v3646_v9  ;;  %7521 = vmatprep.subr.msk.bf16.mxu1 %vm2876_vm3, %v6437_v37 }
 0x228   : > { %7370 = vmatprep.mubr.msk.bf16.mxu0 %vm2726_vm4, %v3647_v5  ;;  %6845 = vmatpush3.bf16.msra.mxu0 %v7548_v2 }
 0x229   : > { %6846 = vmatprep.subr.bf16.mxu0 %v7550_v42 }
 0x22c   : > { %6847 = vmatpush3.bf16.msra.mxu0 %v7552_v44 }
 0x22d   : > { %7311 = vmatmul.mubr.msk.bf16.gmra.mxu1 %vm2726_vm4, %v3036_v31  ;;  %6848 = vmatprep.subr.bf16.mxu0 %v7554_v30 }
 0x22e   : > { %7316 = vmatprep.mubr.msk.bf16.mxu1 %vm2726_vm4, %v3135_v35 }
 0x22f   : > { %7371 = vmatmul.mubr.msk.bf16.gmra.mxu0 %vm2726_vm4, %v3648_v41 }
 0x235   : > { %7317 = vmatmul.mubr.msk.bf16.vlgmr.msra.gmra.mxu1 %vm2726_vm4, %v3136_v33 }
 0x236   : > { %7335 = vmatpush3.bf16.msra.mxu1 %v3358_v47  ;;  %7320 = vmatprep.mubr.msk.bf16.mxu1 %vm2726_vm4, %v3137_v10 }
 0x237   : > { %7523 = vmatprep.subr.msk.bf16.mxu1 %vm2876_vm3, %v6447_v14 }
 0x23d   : > { %7321 = vmatmul.mubr.msk.bf16.gmra.mxu1 %vm2726_vm4, %v3138_v43 }
 0x23e   : > { %7336 = vmatprep.mubr.msk.bf16.mxu1 %vm2726_vm4, %v3339_v23 }
 0x245   : > { %7337 = vmatmul.mubr.msk.bf16.vlgmr.msra.gmra.mxu1 %vm2726_vm4, %v3340_v51 }
 0x246   : > { %7355 = vmatpush3.bf16.msra.mxu1 %v3562_v61  ;;  %7340 = vmatprep.mubr.msk.bf16.mxu1 %vm2726_vm4, %v3341_v11 }
 0x247   : > { %6822 = vmatprep.subr.bf16.mxu1 %v7545_v63 }
 0x24d   : > { %7341 = vmatmul.mubr.msk.bf16.gmra.mxu1 %vm2726_vm4, %v3342_v59 }
 0x24e   : > { %7356 = vmatprep.mubr.msk.bf16.mxu1 %vm2726_vm4, %v3543_v4  ;;  %v7549_v4 = vld [vmem:[%s10028_s5 + $0x70] sm:$0xff]  }
 0x255   : > { %7357 = vmatmul.mubr.msk.bf16.vlgmr.msra.gmra.mxu1 %vm2726_vm4, %v3544_v7  ;;  %v7547_v7 = vld [vmem:[%s10028_s5 + $0x38] sm:$0xff]  }
 0x256   : > { %7360 = vmatprep.mubr.msk.bf16.mxu1 %vm2726_vm4, %v3545_v57  ;;  %6823 = vmatpush3.bf16.msra.mxu1 %v7547_v7  ;;  %v7553_v57 = vld [vmem:[%s10028_s5 + $0x68] sm:$0xff]  }
 0x257   : > { %6824 = vmatprep.subr.bf16.mxu1 %v7549_v4 }
 0x25a   : > { %6825 = vmatpush3.bf16.msra.mxu1 %v7551_v50 }
 0x25b   : > { %6826 = vmatprep.subr.bf16.mxu1 %v7553_v57 }
 0x25d   : > { %7361 = vmatmul.mubr.msk.bf16.gmra.mxu1 %vm2726_vm4, %v3546_v12 }
 0x2a6   : > { %v9302_v49 = vpop.f32.mrf.mxu0 }
 0x2a8   : > { %v9304_v21 = vpop.f32.mrf.mxu0 }
 0x2aa   : > { %v9308_v53 = vpop.f32.mrf.mxu0 }
 0x2ac   : > { %v9312_v1 = vpop.f32.mrf.mxu0 }
 0x2ae   : > { %v9314_v60 = vpop.f32.mrf.mxu0 }
 0x2b0   : > { %v9316_v9 = vpop.f32.mrf.mxu0 }
 0x2b2   : > { %v9318_v28 = vpop.f32.mrf.mxu0 }
 0x2b4   : > { %v9320_v27 = vpop.f32.mrf.mxu0 }
 0x2c5   : > { %v7288_v58 = vpop.f32.mrf.mxu1 }
 0x2c7   : > { %v2914_v55 = vpop.f32.mrf.mxu1 }
 0x2c9   : > { %v7289_v26 = vpop.f32.mrf.mxu1 }
 0x2cb   : > { %v2917_v6 = vpop.f32.mrf.mxu1 }
 0x2cd   : > { %v7292_v32 = vpop.f32.mrf.mxu1 }
 0x2cf   : > { %v2930_v8 = vpop.f32.mrf.mxu1 }
 0x2d1   : > { %v9306_v54 = vpop.f32.mrf.mxu1 }
 0x2d3   : > { %v9310_v17 = vpop.f32.mrf.mxu1 }
 0x2d5   : > { %v7298_v36 = vpop.f32.mrf.mxu1 }
 0x2d6   : > { %v9322_v41 = vpop.f32.mrf.mxu0  ;;  %v3003_v18 = vadd.f32 %v7298_v36, %v7288_v58 }
 0x2d7   : > { %v2994_v40 = vpop.f32.mrf.mxu1 }
 0x2d8   : > { %v9324_v3 = vpop.f32.mrf.mxu0  ;;  %v2995_v13 = vadd.f32 %v2994_v40, %v2914_v55 }
 0x2d9   : > { %v7299_v38 = vpop.f32.mrf.mxu1 }
 0x2da   : > { %v9326_v46 = vpop.f32.mrf.mxu0  ;;  %v3006_v7 = vadd.f32 %v7299_v38, %v7289_v26  ;;  %v7557_v38 = vld [vmem:[%s10028_s5 + $0x60] sm:$0xff]  }
 0x2db   : > { %v2997_v29 = vpop.f32.mrf.mxu1 }
 0x2dc   : > { %v9330_v62 = vpop.f32.mrf.mxu0  ;;  %v2998_v42 = vadd.f32 %v2997_v29, %v2917_v6  ;;  %v7555_v6 = vld [vmem:[%s10028_s5 + $0x28] sm:$0xff]  }
 0x2dd   : > { %v7302_v37 = vpop.f32.mrf.mxu1  ;;  %6827 = vmatpush3.bf16.msra.mxu1 %v7555_v6 }
 0x2de   : > { %v9332_v43 = vpop.f32.mrf.mxu0  ;;  %v3019_v30 = vadd.f32 %v7302_v37, %v7292_v32  ;;  %v7556_v32 = vld [vmem:[%s10028_s5 + $0xa8] sm:$0xff]   ;;  %6828 = vmatprep.subr.bf16.mxu1 %v7557_v38 }
 0x2df   : > { %v3010_v5 = vpop.f32.mrf.mxu1  ;;  %6849 = vmatpush3.bf16.msra.mxu0 %v7556_v32 }
 0x2e0   : > { %v9334_v22 = vpop.f32.mrf.mxu0  ;;  %v3011_v36 = vadd.f32 %v3010_v5, %v2930_v8 }
 0x2e1   : > { %v7303_v56 = vpop.f32.mrf.mxu1  ;;  %10208 = vst [vmem:[#allocation20_spill] sm:$0xff] %v9334_v22 }
 0x2e2   : > { %v9336_v51 = vpop.f32.mrf.mxu0 }
 0x2e3   : > { %v3013_v0 = vpop.f32.mrf.mxu1  ;;  %10209 = vst [vmem:[#allocation29_spill] sm:$0xff] %v9336_v51 }
 0x2e4   : > { %v9338_v11 = vpop.f32.mrf.mxu0 }
 0x2e5   : > { %v7308_v31 = vpop.f32.mrf.mxu1  ;;  %10210 = vst [vmem:[#allocation62_spill] sm:$0xff] %v9338_v11 }
 0x2e6   : > { %v3121_v12 = vadd.f32 %v7308_v31, %v3003_v18 }
 0x2e7   : > { %v3088_v35 = vpop.f32.mrf.mxu1  ;;  %v7368_v63 = vpop.f32.mrf.mxu0 }
 0x2e8   : > { %v3119_v2 = vadd.f32 %v3088_v35, %v2995_v13  ;;  %v3014_v35 = vadd.f32 %v3013_v0, %v9310_v17  ;;  %v9374_v13 = vld [vmem:[%s10029_s6 + $0x1] ss:$0 sm:$0xff] }
 0x2e9   : > { %v7309_v34 = vpop.f32.mrf.mxu1  ;;  %v9340_v19 = vpop.f32.mrf.mxu0 }
 0x2ea   : > { %v3122_v44 = vadd.f32 %v7309_v34, %v3006_v7 }
 0x2eb   : > { %v3091_v45 = vpop.f32.mrf.mxu1  ;;  %v7369_v8 = vpop.f32.mrf.mxu0 }
 0x2ec   : > { %v3120_v51 = vadd.f32 %v3091_v45, %v2998_v42 }
 0x2ed   : > { %v7312_v33 = vpop.f32.mrf.mxu1  ;;  %v3703_v17 = vpop.f32.mrf.mxu0 }
 0x2ee   : > { %v3125_v55 = vadd.f32 %v7312_v33, %v3019_v30 }
 0x2ef   : > { %v3104_v47 = vpop.f32.mrf.mxu1 }
 0x2f0   : > { %v3123_v29 = vadd.f32 %v3104_v47, %v3011_v36 }
 0x2f1   : > { %v7313_v10 = vpop.f32.mrf.mxu1 }
 0x2f3   : > { %v9328_v14 = vpop.f32.mrf.mxu1 }
 0x2f4   : > { %v3124_v0 = vadd.f32 %v9328_v14, %v3014_v35  ;;  %v7570_v35 = vld [vmem:[%s10028_s5 + $0xc8] sm:$0xff]  }
 0x2f5   : > { %v7318_v39 = vpop.f32.mrf.mxu1 }
 0x2f6   : > { %v3223_v4 = vadd.f32 %v7318_v39, %v3121_v12  ;;  %v7372_v12 = vpop.f32.mrf.mxu0 }
 0x2f7   : > { %v3190_v16 = vpop.f32.mrf.mxu1 }
 0x2f8   : > { %v3221_v57 = vadd.f32 %v3190_v16, %v3119_v2  ;;  %v3325_v58 = vadd.f32 %v9302_v49, %v3223_v4  ;;  %v3022_v49 = vadd.f32 %v7303_v56, %v9306_v54 }
 0x2f9   : > { %v7319_v25 = vpop.f32.mrf.mxu1 }
 0x2fa   : > { %v3224_v11 = vadd.f32 %v7319_v25, %v3122_v44  ;;  %v3323_v26 = vadd.f32 %v9304_v21, %v3221_v57  ;;  %v7558_v21 = vld [vmem:[%s10028_s5 + $0xe0] sm:$0xff]   ;;  %v3126_v33 = vadd.f32 %v7313_v10, %v3022_v49 }
 0x2fb   : > { %v3193_v23 = vpop.f32.mrf.mxu1  ;;  %6850 = vmatprep.subr.bf16.mxu0 %v7558_v21  ;;  %v7559_v25 = vld [vmem:[%s10028_s5 + $0x20] sm:$0xff]   ;;  %v7569_v21 = vld [vmem:[%s10028_s5 + $0x48] sm:$0xff]  }
 0x2fc   : > { %v3222_v40 = vadd.f32 %v3193_v23, %v3120_v51  ;;  %v3326_v45 = vadd.f32 %v9308_v53, %v3224_v11  ;;  %v7560_v53 = vld [vmem:[%s10028_s5 + $0xa0] sm:$0xff]   ;;  %6829 = vmatpush3.bf16.msra.mxu1 %v7559_v25  ;;  %v10213_v25 = vld [vmem:[#allocation62_spill] sm:$0xff] }
 0x2fd   : > { %v7322_v52 = vpop.f32.mrf.mxu1  ;;  %6851 = vmatpush3.bf16.msra.mxu0 %v7560_v53 }
 0x2fe   : > { %v3227_v37 = vadd.f32 %v7322_v52, %v3125_v55  ;;  %v3324_v16 = vadd.f32 %v9312_v1, %v3222_v40  ;;  %v3716_v40 = vpop.f32.mrf.mxu0 }
 0x2ff   : > { %v3206_v15 = vpop.f32.mrf.mxu1 }
 0x300   : > { %v3225_v39 = vadd.f32 %v3206_v15, %v3123_v29  ;;  %v3329_v1 = vadd.f32 %v9314_v60, %v3227_v37  ;;  %v7561_v60 = vld [vmem:[%s10028_s5 + $0x58] sm:$0xff]   ;;  %v10212_v37 = vld [vmem:[#allocation29_spill] sm:$0xff] }
 0x301   : > { %v7323_v61 = vpop.f32.mrf.mxu1  ;;  %6830 = vmatprep.subr.bf16.mxu1 %v7561_v60  ;;  %v7576_v60 = vld [vmem:[%s10028_s5 + $0x80] sm:$0xff]  }
 0x302   : > { %v3228_v10 = vadd.f32 %v7323_v61, %v3126_v33 }
 0x303   : > { %v3209_v20 = vpop.f32.mrf.mxu1 }
 0x304   : > { %v3330_v7 = vadd.f32 %v9318_v28, %v3228_v10  ;;  %v7565_v28 = vld [vmem:[%s10028_s5 + $0x50] sm:$0xff]  }
 0x305   : > { %v7338_v48 = vpop.f32.mrf.mxu1 }
 0x306   : > { %v3427_v18 = vadd.f32 %v7338_v48, %v3325_v58  ;;  %v3327_v48 = vadd.f32 %v9316_v9, %v3225_v39  ;;  %v7563_v9 = vld [vmem:[%s10028_s5 + $0x18] sm:$0xff]  }
 0x307   : > { %v3394_v59 = vpop.f32.mrf.mxu1  ;;  %6831 = vmatpush3.bf16.msra.mxu1 %v7563_v9  ;;  %v7577_v9 = vld [vmem:[%s10028_s5 + $0x178] sm:$0xff]  }
 0x308   : > { %v3425_v34 = vadd.f32 %v3394_v59, %v3323_v26  ;;  %v3529_v47 = vadd.f32 %v9322_v41, %v3427_v18  ;;  %v3226_v41 = vadd.f32 %v3209_v20, %v3124_v0  ;;  %v7564_v20 = vld [vmem:[%s10028_s5 + $0x98] sm:$0xff]   ;;  %v10211_v26 = vld [vmem:[#allocation20_spill] sm:$0xff]  ;;  %6832 = vmatprep.subr.bf16.mxu1 %v7565_v28 }
 0x309   : > { %v7339_v24 = vpop.f32.mrf.mxu1 }
 0x30a   : > { %v3428_v56 = vadd.f32 %v7339_v24, %v3326_v45  ;;  %v3527_v51 = vadd.f32 %v9324_v3, %v3425_v34  ;;  %v7562_v3 = vld [vmem:[%s10028_s5 + $0xd8] sm:$0xff]   ;;  %v3328_v44 = vadd.f32 %v9320_v27, %v3226_v41  ;;  %v7571_v34 = vld [vmem:[%s10028_s5 + $0x8] sm:$0xff]  }
 0x30b   : > { %v3397_v50 = vpop.f32.mrf.mxu1  ;;  %6852 = vmatprep.subr.bf16.mxu0 %v7562_v3 }
 0x30c   : > { %v3426_v23 = vadd.f32 %v3397_v50, %v3324_v16  ;;  %6853 = vmatpush3.bf16.msra.mxu0 %v7564_v20  ;;  %v7578_v20 = vld [vmem:[%s10028_s5 + $0x1f8] sm:$0xff]  }
 0x30d   : > { %v7342_v22 = vpop.f32.mrf.mxu1 }
 0x30e   : > { %v3431_v11 = vadd.f32 %v7342_v22, %v3329_v1  ;;  %v3530_v22 = vadd.f32 %v9326_v46, %v3428_v56  ;;  %v3528_v4 = vadd.f32 %v9330_v62, %v3426_v23  ;;  %v7566_v62 = vld [vmem:[%s10028_s5 + $0xd0] sm:$0xff]   ;;  %v7373_v56 = vpop.f32.mrf.mxu0 }
 0x30f   : > { %v3410_v31 = vpop.f32.mrf.mxu1  ;;  %6854 = vmatprep.subr.bf16.mxu0 %v7566_v62 }
 0x310   : > { %v3429_v24 = vadd.f32 %v3410_v31, %v3327_v48  ;;  %v3533_v30 = vadd.f32 %v9332_v43, %v3431_v11  ;;  %v7568_v43 = vld [vmem:[%s10028_s5 + $0x90] sm:$0xff]   ;;  %v3719_v3 = vpop.f32.mrf.mxu0 }
 0x311   : > { %v7343_v5 = vpop.f32.mrf.mxu1  ;;  %6855 = vmatpush3.bf16.msra.mxu0 %v7568_v43 }
 0x312   : > { %v3432_v50 = vadd.f32 %v7343_v5, %v3330_v7  ;;  %v3531_v6 = vadd.f32 %v10211_v26, %v3429_v24  ;;  %6856 = vmatprep.subr.bf16.mxu0 %v7570_v35 }
 0x313   : > { %v3413_v54 = vpop.f32.mrf.mxu1 }
 0x314   : > { %v3430_v31 = vadd.f32 %v3413_v54, %v3328_v44  ;;  %v3534_v5 = vadd.f32 %v10212_v37, %v3432_v50  ;;  %v7572_v54 = vld [vmem:[%s10028_s5 + $0x88] sm:$0xff]  }
 0x315   : > { %v7358_v52 = vpop.f32.mrf.mxu1  ;;  %6857 = vmatpush3.bf16.msra.mxu0 %v7572_v54 }
 0x316   : > { %v3631_v15 = vadd.f32 %v7358_v52, %v3529_v47  ;;  %v3532_v53 = vadd.f32 %v10213_v25, %v3430_v31  ;;  %v7573_v52 = vld [vmem:[%s10028_s5 + $0x40] sm:$0xff]  }
 0x317   : > { %v3598_v59 = vpop.f32.mrf.mxu1 }
 0x318   : > { %v3733_v14 = vadd.f32 %v7368_v63, %v3631_v15  ;;  %v3629_v61 = vadd.f32 %v3598_v59, %v3527_v51  ;;  %v7574_v15 = vld [vmem:[%s10028_s5 + $0xc0] sm:$0xff]  }
 0x319   : > { %v7359_v2 = vpop.f32.mrf.mxu1  ;;  %v7575_v59 = vld [vmem:[%s10028_s5] sm:$0xff]   ;;  %6858 = vmatprep.subr.bf16.mxu0 %v7574_v15 }
 0x31a   : > { %v3731_v63 = vadd.f32 %v9340_v19, %v3629_v61  ;;  %v3632_v46 = vadd.f32 %v7359_v2, %v3530_v22  ;;  %v3746_v42 = vadd.f32 %v9374_v13, %v3733_v14  ;;  %v7567_v19 = vld [vmem:[%s10028_s5 + $0x10] sm:$0xff]   ;;  %6859 = vmatpush3.bf16.msra.mxu0 %v7576_v60  ;;  %v7587_v60 = vld [vmem:[%s10028_s5 + $0x128] sm:$0xff]  }
 0x31b   : > { %v3601_v57 = vpop.f32.mrf.mxu1  ;;  %6833 = vmatpush3.bf16.msra.mxu1 %v7567_v19  ;;  %6888 = vmatprep.subr.bf16.mxu0 %v7578_v20  ;;  %v7593_v20 = vld [vmem:[%s10028_s5 + $0x158] sm:$0xff]  }
 0x31c   : > { %v9405_v58 = vadd.f32 %v9374_v13, %v3731_v63  ;;  %v3734_v36 = vadd.f32 %v7369_v8, %v3632_v46  ;;  %v3630_v27 = vadd.f32 %v3601_v57, %v3528_v4  ;;  %v3754_v55 = vmax.f32 %v3746_v42, 0.0  ;;  %6834 = vmatprep.subr.bf16.mxu1 %v7569_v21 }
 0x31d   : > { %v7362_v18 = vpop.f32.mrf.mxu1 }
 0x31e   : > { %v3752_v32 = vmax.f32 %v9405_v58, 0.0  ;;  %v3732_v38 = vadd.f32 %v3703_v17, %v3630_v27  ;;  %v3635_v49 = vadd.f32 %v7362_v18, %v3533_v30  ;;  %3765 = vrot.lane.b32.xlu0 %v3754_v55, %s7715_s19  ;;  %4800 = vst.msk [vmem:[#allocation3 + $0x31] sm:$0xff] %vm3788_vm6, %v3754_v55  ;;  %v3747_v8 = vadd.f32 %v9374_v13, %v3734_v36 }
 0x31f   : > { %v3614_v29 = vpop.f32.mrf.mxu1  ;;  %6835 = vmatpush3.bf16.msra.mxu1 %v7571_v34 }
 0x320   : > { %4798 = vst.msk [vmem:[#allocation3 + $0x11] sm:$0xff] %vm3788_vm6, %v3752_v32  ;;  %v3737_v45 = vadd.f32 %v7372_v12, %v3635_v49  ;;  %v3633_v33 = vadd.f32 %v3614_v29, %v3531_v6  ;;  %v3755_v39 = vmax.f32 %v3747_v8, 0.0  ;;  %v3745_v16 = vadd.f32 %v9374_v13, %v3732_v38  ;;  %6836 = vmatprep.subr.bf16.mxu1 %v7573_v52  ;;  %v7582_v52 = vld [vmem:[%s10028_s5 + $0x1f0] sm:$0xff]  }
 0x321   : > { %v7363_v47 = vpop.f32.mrf.mxu1 }
 0x322   : > { %v3735_v17 = vadd.f32 %v3716_v40, %v3633_v33  ;;  %v3636_v0 = vadd.f32 %v7363_v47, %v3534_v5  ;;  %3769 = vrot.lane.b32.xlu1 %v3755_v39, %s7716_s30  ;;  %4801 = vst.msk [vmem:[#allocation3 + $0x41] sm:$0xff] %vm3788_vm6, %v3755_v39  ;;  %v3753_v10 = vmax.f32 %v3745_v16, 0.0  ;;  %v3750_v23 = vadd.f32 %v9374_v13, %v3737_v45  ;;  %s6623_s30 = sshll.u32 %s10224_s28, 6 }
 0x323   : > { %v3617_v1 = vpop.f32.mrf.mxu1  ;;  %6837 = vmatpush3.bf16.msra.mxu1 %v7575_v59  ;;  %v7586_v59 = vld [vmem:[%s10028_s5 + $0x1e8] sm:$0xff]   ;;  %s9961_s11 = scalar_lea.vmem %s10031_s8, %s6623_s30 }
 0x324   : > { %v3738_v51 = vadd.f32 %v7373_v56, %v3636_v0  ;;  %v3634_v41 = vadd.f32 %v3617_v1, %v3532_v53  ;;  %3761 = vrot.lane.b32.xlu0 %v3753_v10, %s7717_s13  ;;  %4799 = vst.msk [vmem:[#allocation3 + $0x21] sm:$0xff] %vm3788_vm6, %v3753_v10  ;;  %v3748_v11 = vadd.f32 %v9374_v13, %v3735_v17  ;;  %v3758_v48 = vmax.f32 %v3750_v23, 0.0  ;;  %v7579_v0 = vld [vmem:[%s10028_s5 + $0x138] sm:$0xff]   ;;  %v7581_v1 = vld [vmem:[%s10028_s5 + $0x170] sm:$0xff]  }
 0x325   : > { %v9458_v7 = vld [vmem:[#allocation3 + $0x32] sm:$0xff]  ;;  %6866 = vmatprep.subr.bf16.mxu1 %v7577_v9  ;;  %v7592_v9 = vld [vmem:[%s10028_s5 + $0x1a0] sm:$0xff]  }
 0x326   : > { %v3736_v14 = vadd.f32 %v3719_v3, %v3634_v41  ;;  %v3756_v61 = vmax.f32 %v3748_v11, 0.0  ;;  %4804 = vst.msk [vmem:[#allocation3 + $0x71] sm:$0xff] %vm3788_vm6, %v3758_v48  ;;  %v3751_v22 = vadd.f32 %v9374_v13, %v3738_v51  ;;  %v9462_v4 = vld [vmem:[#allocation3 + $0x30] sm:$0xff]  ;;  %v7580_v10 = vld [vmem:[%s10028_s5 + $0x1b8] sm:$0xff]   ;;  %v7588_v3 = vld [vmem:[%s10028_s5 + $0x1a8] sm:$0xff]  }
 0x327   : > { %v9472_v50 = vld [vmem:[#allocation3 + $0x12] sm:$0xff] }
 0x328   : > { %3773 = vrot.lane.b32.xlu1 %v3756_v61, %s7718_s22  ;;  %4802 = vst.msk [vmem:[#allocation3 + $0x51] sm:$0xff] %vm3788_vm6, %v3756_v61  ;;  %v3749_v12 = vadd.f32 %v9374_v13, %v3736_v14  ;;  %v3759_v24 = vmax.f32 %v3751_v22, 0.0  ;;  %v7583_v41 = vld [vmem:[%s10028_s5 + $0x130] sm:$0xff]   ;;  %v7589_v14 = vld [vmem:[%s10028_s5 + $0x160] sm:$0xff]  }
 0x329   : > { %v9460_v2 = vld [vmem:[#allocation3 + $0x42] sm:$0xff]  ;;  %v7584_v11 = vld [vmem:[%s10028_s5 + $0x1b0] sm:$0xff]  }
 0x32a   : > { %v9464_v63 = vld [vmem:[#allocation3 + $0x40] sm:$0xff]  ;;  %v3757_v46 = vmax.f32 %v3749_v12, 0.0  ;;  %4805 = vst.msk [vmem:[#allocation3 + $0x81] sm:$0xff] %vm3788_vm6, %v3759_v24  ;;  %v5328_v13 = vpack.c.bf16 %v9460_v2, %v9458_v7  ;;  %v7594_v12 = vld [vmem:[%s10028_s5 + $0x1d8] sm:$0xff]  }
 0x32b   : > { %v5116_v42 = vpack.c.bf16 %v9464_v63, %v9462_v4  ;;  %v9474_v44 = vld [vmem:[#allocation3 + $0x22] sm:$0xff] }
 0x32c   : > { %3781 = vrot.lane.b32.xlu1 %v3758_v48, %s7719_s23  ;;  %3777 = vrot.lane.b32.xlu0 %v3757_v46, %s7720_s24  ;;  %4803 = vst.msk [vmem:[#allocation3 + $0x61] sm:$0xff] %vm3788_vm6, %v3757_v46  ;;  %v5327_v57 = vpack.c.bf16 %v9474_v44, %v9472_v50  ;;  %v7585_v48 = vld [vmem:[%s10028_s5 + $0x168] sm:$0xff]   ;;  %v7590_v61 = vld [vmem:[%s10028_s5 + $0x1e0] sm:$0xff]  }
 0x32d   : > { %v9478_v30 = vld [vmem:[#allocation3 + $0x70] sm:$0xff]  ;;  %v7591_v22 = vld [vmem:[%s10028_s5 + $0x120] sm:$0xff]   ;;  %v7596_v46 = vld [vmem:[%s10028_s5 + $0x198] sm:$0xff]  }
 0x32e   : > { %v9484_v19 = vld [vmem:[#allocation3 + $0x72] sm:$0xff] }
 0x32f   : > { %v9488_v27 = vld [vmem:[#allocation3 + $0x52] sm:$0xff] }
 0x330   : > { %3785 = vrot.lane.b32.xlu0 %v3759_v24, %s7721_s25  ;;  %v9494_v40 = vld [vmem:[#allocation3 + $0x50] sm:$0xff]  ;;  %v7595_v24 = vld [vmem:[%s10028_s5 + $0x118] sm:$0xff]  }
 0x331   : > { %v9480_v28 = vld [vmem:[#allocation3 + $0x80] sm:$0xff] }
 0x332   : > { %v9482_v62 = vld [vmem:[#allocation3 + $0x82] sm:$0xff]  ;;  %v5118_v36 = vpack.c.bf16 %v9480_v28, %v9478_v30 }
 0x333   : > { %v5330_v55 = vpack.c.bf16 %v9482_v62, %v9484_v19  ;;  %v9492_v43 = vld [vmem:[#allocation3 + $0x62] sm:$0xff] }
 0x334   : > { %v9496_v31 = vld [vmem:[#allocation3 + $0x60] sm:$0xff]  ;;  %v5329_v26 = vpack.c.bf16 %v9492_v43, %v9488_v27 }
 0x335   : > { %v5117_v18 = vpack.c.bf16 %v9496_v31, %v9494_v40 }
 0x390   : > { %v3766_v6 = vpop.permute.xlu0 %3765 }
 0x394   : > { %v3770_v38 = vpop.permute.xlu1 %3769 }
 0x396   : > { %v3762_v49 = vpop.permute.xlu0 %3761 }
 0x397   : > { %v3789_v8 = vsel %vm3788_vm6, %v3752_v32, %v3762_v49  ;;  %v7599_v49 = vld [vmem:[%s10028_s5 + $0x110] sm:$0xff]  }
 0x398   : > { %v3791_v29 = vsel %vm3790_vm8, %v3789_v8, %v3766_v6  ;;  %v7597_v6 = vld [vmem:[%s10028_s5 + $0x150] sm:$0xff]  }
 0x399   : > { %v3793_v5 = vsel %vm3792_vm9, %v3791_v29, %v3770_v38  ;;  %v7598_v38 = vld [vmem:[%s10028_s5 + $0x1d0] sm:$0xff]   ;;  %v7601_v29 = vld [vmem:[%s10028_s5 + $0x148] sm:$0xff]  }
 0x39a   : > { %v3774_v37 = vpop.permute.xlu1 %3773  ;;  %v7600_v8 = vld [vmem:[%s10028_s5 + $0x190] sm:$0xff]  }
 0x39b   : > { %v3795_v21 = vsel %vm3794_vm10, %v3793_v5, %v3774_v37  ;;  %v7602_v37 = vld [vmem:[%s10028_s5 + $0x1c8] sm:$0xff]  }
 0x39c   : > { %v7603_v5 = vld [vmem:[%s10028_s5 + $0x108] sm:$0xff]  }
 0x39e   : > { %v3778_v35 = vpop.permute.xlu0 %3777  ;;  %v3782_v34 = vpop.permute.xlu1 %3781 }
 0x39f   : > { %v3797_v45 = vsel %vm3796_vm11, %v3795_v21, %v3778_v35  ;;  %v7604_v21 = vld [vmem:[%s10028_s5 + $0x188] sm:$0xff]   ;;  %v7605_v35 = vld [vmem:[%s10028_s5 + $0x140] sm:$0xff]  }
 0x3a0   : > { %v3799_v33 = vsel %vm3798_vm12, %v3797_v45, %v3782_v34  ;;  %v7606_v34 = vld [vmem:[%s10028_s5 + $0x1c0] sm:$0xff]  }
 0x3a1   : > { %v7607_v45 = vld [vmem:[%s10028_s5 + $0x100] sm:$0xff]  }
 0x3a2   : > { %v3786_v39 = vpop.permute.xlu0 %3785 }
 0x3a3   : > { %v9505_v16 = vsel %vm3800_vm13, %v3799_v33, %v3786_v39  ;;  %v7608_v33 = vld [vmem:[%s10028_s5 + $0x180] sm:$0xff]  }
 0x3a4   : > { %v3805_v58 = vrot.slane %v9505_v16, 2  ;;  %v3803_v32 = vrot.slane %v9505_v16, 1  ;;  %v3807_v54 = vrot.slane %v9505_v16, 3  ;;  %v3811_v56 = vrot.slane %v9505_v16, 5 }
 0x3a5   : > { %v3815_v47 = vrot.slane %v9505_v16, 7  ;;  %v3817_v23 = vpack.c.bf16 %v9505_v16, %v9505_v16  ;;  %v3809_v39 = vrot.slane %v9505_v16, 4 }
 0x3a6   : > { %v3818_v25 = vpack.c.bf16 %v3803_v32, %v3803_v32  ;;  %v3820_v53 = vpack.c.bf16 %v3807_v54, %v3807_v54  ;;  %v3819_v17 = vpack.c.bf16 %v3805_v58, %v3805_v58  ;;  %v3822_v15 = vpack.c.bf16 %v3811_v56, %v3811_v56 }
 0x3a7   : > { %v3824_v51 = vpack.c.bf16 %v3815_v47, %v3815_v47  ;;  %v3813_v58 = vrot.slane %v9505_v16, 6  ;;  %v3821_v32 = vpack.c.bf16 %v3809_v39, %v3809_v39  ;;  %v10214_v56 = vmov 0.0   ;;  %v7609_v47 = vld [vmem:[%s10028_s5 + $0x238] sm:$0xff]   ;;  %v7611_v16 = vld [vmem:[%s10028_s5 + $0x228] sm:$0xff]  }
 0x3a8   : > { %4370 = vmatprep.mubr.bf16.mxu1 %v3818_v25  ;;  %4410 = vmatprep.mubr.bf16.mxu0 %v3820_v53  ;;  %v7610_v25 = vld [vmem:[%s10028_s5 + $0x230] sm:$0xff]   ;;  %v7612_v53 = vld [vmem:[%s10028_s5 + $0x220] sm:$0xff]  }
 0x3a9   : > { %4371 = vmatmul.mubr.bf16.vlgmr.msra.gmra.mxu1 %v3817_v23  ;;  %4411 = vmatmul.mubr.bf16.vlgmr.msra.gmra.mxu0 %v3819_v17  ;;  %v3823_v54 = vpack.c.bf16 %v3813_v58, %v3813_v58  ;;  %v7613_v17 = vld [vmem:[%s10028_s5 + $0x218] sm:$0xff]   ;;  %v7616_v23 = vld [vmem:[%s10028_s5 + $0x200] sm:$0xff]  }
 0x3aa   : > { %6867 = vmatpush3.bf16.msra.mxu1 %v7579_v0  ;;  %6889 = vmatpush3.bf16.msra.mxu0 %v7580_v10  ;;  %v7614_v0 = vld [vmem:[%s10028_s5 + $0x210] sm:$0xff]   ;;  %v7615_v10 = vld [vmem:[%s10028_s5 + $0x208] sm:$0xff]  }
 0x3ab   : > { %4450 = vmatprep.mubr.bf16.mxu1 %v3822_v15  ;;  %4490 = vmatprep.mubr.bf16.mxu0 %v3824_v51  ;;  %v7623_v15 = vld [vmem:[%s10028_s5 + $0x270] sm:$0xff]  }
 0x3ac   : > { %6868 = vmatprep.subr.bf16.mxu1 %v7581_v1  ;;  %6890 = vmatprep.subr.bf16.mxu0 %v7582_v52  ;;  %v7617_v1 = vld [vmem:[%s10026_s3 + $0x8] sm:$0xff]   ;;  %v7622_v52 = vld [vmem:[%s10028_s5 + $0x278] sm:$0xff]  }
 0x3ae   : > { %6869 = vmatpush3.bf16.msra.mxu1 %v7583_v41  ;;  %6891 = vmatpush3.bf16.msra.mxu0 %v7584_v11 }
 0x3af   : > { %6870 = vmatprep.subr.bf16.mxu1 %v7585_v48  ;;  %6892 = vmatprep.subr.bf16.mxu0 %v7586_v59  ;;  %v7624_v59 = vld [vmem:[%s10028_s5 + $0x268] sm:$0xff]  }
 0x3b2   : > { %6871 = vmatpush3.bf16.msra.mxu1 %v7587_v60  ;;  %6893 = vmatpush3.bf16.msra.mxu0 %v7588_v3 }
 0x3b3   : > { %6872 = vmatprep.subr.bf16.mxu1 %v7589_v14  ;;  %6894 = vmatprep.subr.bf16.mxu0 %v7590_v61 }
 0x3b6   : > { %6873 = vmatpush3.bf16.msra.mxu1 %v7591_v22  ;;  %6895 = vmatpush3.bf16.msra.mxu0 %v7592_v9  ;;  %v7625_v22 = vld [vmem:[%s10028_s5 + $0x260] sm:$0xff]   ;;  %v7626_v9 = vld [vmem:[%s10028_s5 + $0x258] sm:$0xff]  }
 0x3b7   : > { %6874 = vmatprep.subr.bf16.mxu1 %v7593_v20  ;;  %6896 = vmatprep.subr.bf16.mxu0 %v7594_v12  ;;  %v7627_v20 = vld [vmem:[%s10028_s5 + $0x250] sm:$0xff]   ;;  %v7628_v12 = vld [vmem:[%s10028_s5 + $0x248] sm:$0xff]  }
 0x3ba   : > { %6875 = vmatpush3.bf16.msra.mxu1 %v7595_v24  ;;  %6897 = vmatpush3.bf16.msra.mxu0 %v7596_v46  ;;  %v3953_v46 = vld [vmem:[%s10029_s6 + $0x4] sm:$0x1] }
 0x3bb   : > { %6876 = vmatprep.subr.bf16.mxu1 %v7597_v6  ;;  %6898 = vmatprep.subr.bf16.mxu0 %v7598_v38 }
 0x3be   : > { %6877 = vmatpush3.bf16.msra.mxu1 %v7599_v49  ;;  %6899 = vmatpush3.bf16.msra.mxu0 %v7600_v8 }
 0x3bf   : > { %6878 = vmatprep.subr.bf16.mxu1 %v7601_v29  ;;  %6900 = vmatprep.subr.bf16.mxu0 %v7602_v37 }
 0x3c2   : > { %6879 = vmatpush3.bf16.msra.mxu1 %v7603_v5  ;;  %6901 = vmatpush3.bf16.msra.mxu0 %v7604_v21 }
 0x3c3   : > { %6880 = vmatprep.subr.bf16.mxu1 %v7605_v35  ;;  %6902 = vmatprep.subr.bf16.mxu0 %v7606_v34 }
 0x3c6   : > { %6881 = vmatpush3.bf16.msra.mxu1 %v7607_v45  ;;  %6903 = vmatpush3.bf16.msra.mxu0 %v7608_v33 }
 0x3c7   : > { %7374 = vmatprep.subr.bf16.mxu1 %v10214_v56  ;;  %7394 = vmatprep.subr.bf16.mxu0 %v10214_v56 }
 0x3c9   : > { %4451 = vmatmul.mubr.bf16.vlgmr.msra.gmra.mxu1 %v3821_v32  ;;  %4491 = vmatmul.mubr.bf16.vlgmr.msra.gmra.mxu0 %v3823_v54 }
 0x3ca   : > { %7375 = vmatpush3.bf16.msra.mxu1 %v7609_v47  ;;  %7390 = vmatprep.mubr.msk.bf16.mxu1 %vm7722_vm14, %v10214_v56  ;;  %v4820_v47 = vld [vmem:[#allocation3 + $0x1] sm:$0xff] }
 0x3cb   : > { %7376 = vmatprep.subr.bf16.mxu1 %v10214_v56  ;;  %7410 = vmatprep.mubr.msk.bf16.mxu0 %vm7722_vm14, %v10214_v56 }
 0x3cc   : > { %7395 = vmatpush3.bf16.msra.mxu0 %v7622_v52 }
 0x3cd   : > { %7396 = vmatprep.subr.bf16.mxu0 %v10214_v56 }
 0x3ce   : > { %7377 = vmatpush3.bf16.msra.mxu1 %v7610_v25  ;;  %v4821_v25 = vld [vmem:[#allocation3 + $0x11] sm:$0xff] }
 0x3cf   : > { %7378 = vmatprep.subr.bf16.mxu1 %v10214_v56 }
 0x3d0   : > { %7397 = vmatpush3.bf16.msra.mxu0 %v7623_v15  ;;  %v4824_v15 = vld [vmem:[#allocation3 + $0x41] sm:$0xff] }
 0x3d1   : > { %7398 = vmatprep.subr.bf16.mxu0 %v10214_v56 }
 0x3d2   : > { %7379 = vmatpush3.bf16.msra.mxu1 %v7611_v16 }
 0x3d3   : > { %7380 = vmatprep.subr.bf16.mxu1 %v10214_v56 }
 0x3d4   : > { %7399 = vmatpush3.bf16.msra.mxu0 %v7624_v59 }
 0x3d5   : > { %7400 = vmatprep.subr.bf16.mxu0 %v10214_v56 }
 0x3d6   : > { %7381 = vmatpush3.bf16.msra.mxu1 %v7612_v53  ;;  %v7618_v53 = vld [vmem:[%s10026_s3 + $0x10] sm:$0xff]  }
 0x3d7   : > { %7382 = vmatprep.subr.bf16.mxu1 %v10214_v56 }
 0x3d8   : > { %7401 = vmatpush3.bf16.msra.mxu0 %v7625_v22  ;;  %v5012_v22 = vpack.c.bf16 %v9484_v19, %v9492_v43 }
 0x3d9   : > { %7402 = vmatprep.subr.bf16.mxu0 %v10214_v56 }
 0x3da   : > { %7383 = vmatpush3.bf16.msra.mxu1 %v7613_v17  ;;  %v4828_v17 = vpack.c.bf16 %v4821_v25, %v4820_v47  ;;  %v4806_v47 = vld [vmem:[#allocation3] sm:$0xff] }
 0x3db   : > { %7384 = vmatprep.subr.bf16.mxu1 %v10214_v56 }
 0x3dc   : > { %7403 = vmatpush3.bf16.msra.mxu0 %v7626_v9 }
 0x3dd   : > { %7404 = vmatprep.subr.bf16.mxu0 %v10214_v56 }
 0x3de   : > { %7385 = vmatpush3.bf16.msra.mxu1 %v7614_v0  ;;  %v4822_v0 = vld [vmem:[#allocation3 + $0x21] sm:$0xff] }
 0x3df   : > { %7386 = vmatprep.subr.bf16.mxu1 %v10214_v56  ;;  %v5221_v9 = vpack.c.bf16 %v4822_v0, %v4821_v25  ;;  %v4807_v25 = vld [vmem:[#allocation3 + $0x10] sm:$0xff] }
 0x3e0   : > { %7405 = vmatpush3.bf16.msra.mxu0 %v7627_v20 }
 0x3e1   : > { %7406 = vmatprep.subr.bf16.mxu0 %v10214_v56 }
 0x3e2   : > { %7387 = vmatpush3.bf16.msra.mxu1 %v7615_v10  ;;  %v4825_v10 = vld [vmem:[#allocation3 + $0x51] sm:$0xff] }
 0x3e3   : > { %7388 = vmatprep.subr.bf16.mxu1 %v10214_v56 }
 0x3e4   : > { %7407 = vmatpush3.bf16.msra.mxu0 %v7628_v12  ;;  %v7621_v12 = vld [vmem:[%s10026_s3 + $0x40] sm:$0xff]  }
 0x3e5   : > { %7408 = vmatprep.subr.bf16.mxu0 %v10214_v56 }
 0x3e6   : > { %7389 = vmatpush3.bf16.msra.mxu1 %v7616_v23  ;;  %v4823_v23 = vld [vmem:[#allocation3 + $0x31] sm:$0xff] }
 0x3e7   : > { %7414 = vmatprep.subr.bf16.mxu1 %v7617_v1  ;;  %v9679_v52 = vpack.c.bf16 %v4823_v23, %v4822_v0  ;;  %v5222_v20 = vpack.c.bf16 %v4824_v15, %v4823_v23  ;;  %v7632_v23 = vld [vmem:[%s10026_s3 + $0x28] sm:$0xff]  }
 0x469   : > { %v6838_v51 = vpop.f32.mrf.mxu1  ;;  %v6860_v41 = vpop.f32.mrf.mxu0 }
 0x46b   : > { %v6839_v11 = vpop.f32.mrf.mxu1  ;;  %v6861_v48 = vpop.f32.mrf.mxu0 }
 0x46c   : > { %v6840_v24 = vadd.f32 %v6839_v11, %v6838_v51  ;;  %v6862_v8 = vadd.f32 %v6861_v48, %v6860_v41  ;;  %v7619_v51 = vld [vmem:[%s10026_s3 + $0x20] sm:$0xff]   ;;  %v9684_v41 = vpack.c.bf16 %v4825_v10, %v4824_v15  ;;  %v4827_v48 = vld [vmem:[#allocation3 + $0x71] sm:$0xff] }
 0x46d   : > { %v6841_v60 = vpop.f32.mrf.mxu1  ;;  %v6863_v3 = vpop.f32.mrf.mxu0  ;;  %v5001_v11 = vld [vmem:[#allocation3 + $0x2] sm:$0xff] }
 0x46e   : > { %v4373_v6 = vadd.f32 %v6840_v24, %v3953_v46  ;;  %v5009_v60 = vpack.c.bf16 %v9472_v50, %v5001_v11  ;;  %v5010_v3 = vpack.c.bf16 %v9458_v7, %v9474_v44  ;;  %v9714_v46 = vld [vmem:[#allocation3 + $0x81] sm:$0xff]  ;;  %v5539_v7 = vld [vmem:[#allocation3 + $0x91] sm:$0xff] }
 0x46f   : > { %v6842_v14 = vpop.f32.mrf.mxu1  ;;  %v6864_v61 = vpop.f32.mrf.mxu0  ;;  %v5769_v44 = vld [vmem:[%s10027_s4] sm:$0xf] }
 0x470   : > { %v4413_v5 = vadd.f32 %v6862_v8, %v4373_v6  ;;  %v7620_v14 = vld [vmem:[%s10026_s3 + $0x30] sm:$0xff]   ;;  %v5011_v61 = vpack.c.bf16 %v9488_v27, %v9460_v2  ;;  %v5426_v6 = vld [vmem:[#allocation3 + $0x20] sm:$0xff]  ;;  %v5435_v8 = vpack.c.bf16 %v9494_v40, %v9464_v63  ;;  %v5543_v2 = vpack.c.bf16 %v5539_v7, %v9714_v46 }
 0x471   : > { %v5115_v15 = vpack.c.bf16 %v5426_v6, %v4807_v25 }
 0x489   : > { %v6882_v38 = vpop.f32.mrf.mxu1  ;;  %v6904_v49 = vpop.f32.mrf.mxu0 }
 0x48b   : > { %v6883_v29 = vpop.f32.mrf.mxu1  ;;  %v6905_v37 = vpop.f32.mrf.mxu0 }
 0x48c   : > { %v6884_v21 = vadd.f32 %v6883_v29, %v6882_v38  ;;  %v6906_v33 = vadd.f32 %v6905_v37, %v6904_v49  ;;  %v5224_v38 = vpack.c.bf16 %v9714_v46, %v4827_v48  ;;  %v5434_v49 = vpack.c.bf16 %v9462_v4, %v5426_v6  ;;  %v5433_v37 = vld [vmem:[#allocation3 + $0x90] sm:$0xff] }
 0x48d   : > { %v6885_v35 = vpop.f32.mrf.mxu1  ;;  %v6907_v34 = vpop.f32.mrf.mxu0  ;;  %v5436_v29 = vpack.c.bf16 %v9478_v30, %v9496_v31  ;;  %v5788_v30 = vsel %vm2876_vm3, %v5769_v44, 0 }
 0x48e   : > { %v4453_v45 = vadd.f32 %v6884_v21, %v4413_v5  ;;  %v5437_v5 = vpack.c.bf16 %v5433_v37, %v9480_v28  ;;  %v7629_v21 = vld [vmem:[%s10028_s5 + $0x240] sm:$0xff]   ;;  %v5645_v34 = vld [vmem:[#allocation3 + $0x92] sm:$0xff] }
 0x48f   : > { %v6886_v39 = vpop.f32.mrf.mxu1  ;;  %v6908_v58 = vpop.f32.mrf.mxu0  ;;  %7409 = vmatpush3.bf16.msra.mxu0 %v7629_v21  ;;  %v7630_v35 = vld [vmem:[%s10026_s3] sm:$0xff]  }
 0x490   : > { %v4493_v32 = vadd.f32 %v6906_v33, %v4453_v45  ;;  %7424 = vmatprep.subr.bf16.mxu0 %v7630_v35  ;;  %v5649_v45 = vpack.c.bf16 %v5645_v34, %v9482_v62  ;;  %v4516_v33 = vld [vmem:[%s10029_s6 + $0x5] sm:$0x1] }
 0x492   : > { %v4498_v54 = vmax.f32 %v4493_v32, 0.0 }
 0x494   : > { %v4499_v16 = vpack.c.bf16 %v4498_v54, %v4498_v54 }
 0x496   : > { %7391 = vmatmul.mubr.bf16.vlgmr.msra.gmra.mxu1 %v4499_v16 }
 0x497   : > { %7416 = vmatprep.mubr.msk.bf16.mxu1 %vm3788_vm6, %v4828_v17  ;;  %7415 = vmatpush3.bf16.msra.mxu1 %v7617_v1  ;;  %v4826_v1 = vld [vmem:[#allocation3 + $0x61] sm:$0xff]  ;;  %v7631_v17 = vld [vmem:[%s10026_s3 + $0x18] sm:$0xff]  }
 0x498   : > { %7434 = vmatprep.subr.bf16.mxu1 %v7618_v53  ;;  %v9690_v59 = vpack.c.bf16 %v4827_v48, %v4826_v1  ;;  %v5223_v24 = vpack.c.bf16 %v4826_v1, %v4825_v10  ;;  %v4814_v10 = vpack.c.bf16 %v4807_v25, %v4806_v47  ;;  %v10037_v1 = vlaneseq }
 0x49a   : > { %v4713_v48 = vand.u32 127, %v10037_v1 }
 0x49e   : > { %7417 = vmatmul.mubr.msk.bf16.vlgmr.msra.gmra.mxu1 %vm3788_vm6, %v9679_v52 }
 0x49f   : > { %7420 = vmatprep.mubr.msk.bf16.mxu1 %vm3788_vm6, %v9684_v41  ;;  %7435 = vmatpush3.bf16.msra.mxu1 %v7618_v53 }
 0x4a0   : > { %7454 = vmatprep.subr.bf16.mxu1 %v7619_v51 }
 0x4a6   : > { %7421 = vmatmul.mubr.msk.bf16.gmra.mxu1 %vm3788_vm6, %v9690_v59 }
 0x4a7   : > { %7436 = vmatprep.mubr.msk.bf16.mxu1 %vm3788_vm6, %v5009_v60  ;;  %v9836_v60 = vcvt.s32.f32 %v4713_v48 }
 0x4a9   : > { %10215 = vst [vmem:[#allocation70_spill] sm:$0xff] %v9836_v60  ;;  %vm4715_vm15 = vcmp.lt.f32.partialorder %v9836_v60, 5.0 }
 0x4ae   : > { %7437 = vmatmul.mubr.msk.bf16.vlgmr.msra.gmra.mxu1 %vm3788_vm6, %v5010_v3 }
 0x4af   : > { %7440 = vmatprep.mubr.msk.bf16.mxu1 %vm3788_vm6, %v5011_v61  ;;  %7455 = vmatpush3.bf16.msra.mxu1 %v7619_v51  ;;  %v7633_v51 = vld [vmem:[%s10026_s3 + $0x38] sm:$0xff]  }
 0x4b0   : > { %7474 = vmatprep.subr.bf16.mxu1 %v7620_v14 }
 0x4b6   : > { %7441 = vmatmul.mubr.msk.bf16.gmra.mxu1 %vm3788_vm6, %v5012_v22 }
 0x4b7   : > { %7456 = vmatprep.mubr.msk.bf16.mxu1 %vm3788_vm6, %v5221_v9 }
 0x4be   : > { %7457 = vmatmul.mubr.msk.bf16.vlgmr.msra.gmra.mxu1 %vm3788_vm6, %v5222_v20 }
 0x4bf   : > { %7460 = vmatprep.mubr.msk.bf16.mxu1 %vm3788_vm6, %v5223_v24  ;;  %7475 = vmatpush3.bf16.msra.mxu1 %v7620_v14 }
 0x4c0   : > { %7494 = vmatprep.subr.bf16.mxu1 %v7621_v12 }
 0x4c6   : > { %7461 = vmatmul.mubr.msk.bf16.gmra.mxu1 %vm3788_vm6, %v5224_v38 }
 0x4c7   : > { %7476 = vmatprep.mubr.msk.bf16.mxu1 %vm3788_vm6, %v5434_v49 }
 0x4ce   : > { %7477 = vmatmul.mubr.msk.bf16.vlgmr.msra.gmra.mxu1 %vm3788_vm6, %v5435_v8 }
 0x4cf   : > { %7480 = vmatprep.mubr.msk.bf16.mxu1 %vm3788_vm6, %v5436_v29  ;;  %7495 = vmatpush3.bf16.msra.mxu1 %v7621_v12 }
 0x4d6   : > { %7481 = vmatmul.mubr.msk.bf16.gmra.mxu1 %vm3788_vm6, %v5437_v5 }
 0x4d7   : > { %7496 = vmatprep.mubr.msk.bf16.mxu1 %vm3788_vm6, %v5010_v3  ;;  %v4623_v3 = vld [vmem:[%s10029_s6 + $0x6] sm:$0x1] }
 0x4de   : > { %7497 = vmatmul.mubr.msk.bf16.vlgmr.msra.gmra.mxu1 %vm3788_vm6, %v5011_v61 }
 0x4df   : > { %7500 = vmatprep.mubr.msk.bf16.mxu1 %vm3788_vm6, %v5012_v22 }
 0x4e6   : > { %7501 = vmatmul.mubr.msk.bf16.gmra.mxu1 %vm3788_vm6, %v5649_v45 }
 0x556   : > { %v4599_v39 = vpop.f32.mrf.mxu1 }
 0x557   : > { %v4600_v58 = vadd.f32 %v4599_v39, %v4516_v33 }
 0x558   : > { %v7392_v32 = vpop.f32.mrf.mxu1 }
 0x559   : > { %v4605_v54 = vmax.f32 %v4600_v58, 0.0 }
 0x55a   : > { %v4602_v16 = vpop.f32.mrf.mxu1 }
 0x55b   : > { %v4606_v53 = vpack.c.bf16 %v4605_v54, %v4605_v54 }
 0x55c   : > { %v7393_v0 = vpop.f32.mrf.mxu1 }
 0x55d   : > { %7411 = vmatmul.mubr.bf16.vlgmr.msra.gmra.mxu0 %v4606_v53 }
 0x55e   : > { %7425 = vmatpush3.bf16.msra.mxu0 %v7630_v35  ;;  %7426 = vmatprep.mubr.msk.bf16.mxu0 %vm3788_vm6, %v4814_v10  ;;  %v9792_v4 = vpop.f32.mrf.mxu1 }
 0x55f   : > { %7444 = vmatprep.subr.bf16.mxu0 %v7631_v17 }
 0x560   : > { %v9794_v63 = vpop.f32.mrf.mxu1 }
 0x565   : > { %7427 = vmatmul.mubr.msk.bf16.vlgmr.msra.gmra.mxu0 %vm3788_vm6, %v5434_v49 }
 0x566   : > { %7445 = vmatpush3.bf16.msra.mxu0 %v7631_v17  ;;  %7430 = vmatprep.mubr.msk.bf16.mxu0 %vm3788_vm6, %v5435_v8 }
 0x567   : > { %7464 = vmatprep.subr.bf16.mxu0 %v7632_v23 }
 0x56d   : > { %7431 = vmatmul.mubr.msk.bf16.gmra.mxu0 %vm3788_vm6, %v5436_v29 }
 0x56e   : > { %7446 = vmatprep.mubr.msk.bf16.mxu0 %vm3788_vm6, %v5115_v15 }
 0x575   : > { %7447 = vmatmul.mubr.msk.bf16.vlgmr.msra.gmra.mxu0 %vm3788_vm6, %v5116_v42  ;;  %v9796_v42 = vpop.f32.mrf.mxu1 }
 0x576   : > { %7465 = vmatpush3.bf16.msra.mxu0 %v7632_v23  ;;  %7450 = vmatprep.mubr.msk.bf16.mxu0 %vm3788_vm6, %v5117_v18 }
 0x577   : > { %7484 = vmatprep.subr.bf16.mxu0 %v7633_v51 }
 0x57d   : > { %7451 = vmatmul.mubr.msk.bf16.gmra.mxu0 %vm3788_vm6, %v5118_v36 }
 0x57e   : > { %7466 = vmatprep.mubr.msk.bf16.mxu0 %vm3788_vm6, %v5327_v57 }
 0x585   : > { %7467 = vmatmul.mubr.msk.bf16.vlgmr.msra.gmra.mxu0 %vm3788_vm6, %v5328_v13  ;;  %v9798_v13 = vpop.f32.mrf.mxu1 }
 0x586   : > { %7485 = vmatpush3.bf16.msra.mxu0 %v7633_v51  ;;  %7470 = vmatprep.mubr.msk.bf16.mxu0 %vm3788_vm6, %v5329_v26 }
 0x587   : > { %v9800_v50 = vpop.f32.mrf.mxu1  ;;  %7525 = vmatprep.subr.msk.bf16.mxu0 %vm2876_vm3, %v5769_v44 }
 0x589   : > { %v9805_v57 = vpop.f32.mrf.mxu1 }
 0x58b   : > { %v9809_v28 = vpop.f32.mrf.mxu1 }
 0x58d   : > { %7471 = vmatmul.mubr.msk.bf16.gmra.mxu0 %vm3788_vm6, %v5330_v55  ;;  %v9811_v62 = vpop.f32.mrf.mxu1 }
 0x58e   : > { %7486 = vmatprep.mubr.msk.bf16.mxu0 %vm3788_vm6, %v9679_v52 }
 0x58f   : > { %v7438_v19 = vpop.f32.mrf.mxu1 }
 0x591   : > { %v5068_v36 = vpop.f32.mrf.mxu1 }
 0x593   : > { %v9813_v27 = vpop.f32.mrf.mxu1 }
 0x595   : > { %7487 = vmatmul.mubr.msk.bf16.vlgmr.msra.gmra.mxu0 %vm3788_vm6, %v9684_v41  ;;  %v9815_v55 = vpop.f32.mrf.mxu1 }
 0x596   : > { %7490 = vmatprep.mubr.msk.bf16.mxu0 %vm3788_vm6, %v9690_v59  ;;  %7505 = vmatpush3.bf16.msra.mxu0 %v5788_v30 }
 0x597   : > { %v9817_v43 = vpop.f32.mrf.mxu1 }
 0x599   : > { %v9819_v40 = vpop.f32.mrf.mxu1 }
 0x59b   : > { %v9821_v31 = vpop.f32.mrf.mxu1 }
 0x59d   : > { %7491 = vmatmul.mubr.msk.bf16.gmra.mxu0 %vm3788_vm6, %v5543_v2  ;;  %v9823_v18 = vpop.f32.mrf.mxu1 }
 0x59f   : > { %v9825_v26 = vpop.f32.mrf.mxu1 }
 0x5a1   : > { %v9827_v52 = vpop.f32.mrf.mxu1 }
 0x5a3   : > { %v9829_v41 = vpop.f32.mrf.mxu1 }
 0x5a5   : > { %v9831_v11 = vpop.f32.mrf.mxu1 }
 0x5a7   : > { %v9834_v59 = vpop.f32.mrf.mxu1 }
 0x5a9   : > { %v9841_v14 = vpop.f32.mrf.mxu1 }
 0x5ab   : > { %v9849_v12 = vpop.f32.mrf.mxu1 }
 0x5ad   : > { %v9853_v38 = vpop.f32.mrf.mxu1 }
 0x5af   : > { %v7478_v29 = vpop.f32.mrf.mxu1 }
 0x5b1   : > { %v9855_v21 = vpop.f32.mrf.mxu1 }
 0x5b3   : > { %v9857_v45 = vpop.f32.mrf.mxu1 }
 0x5b5   : > { %v9859_v58 = vpop.f32.mrf.mxu1 }
 0x5b7   : > { %v9861_v47 = vpop.f32.mrf.mxu1 }
 0x5b9   : > { %v9863_v53 = vpop.f32.mrf.mxu1 }
 0x5bb   : > { %v9865_v10 = vpop.f32.mrf.mxu1 }
 0x5bd   : > { %v9867_v51 = vpop.f32.mrf.mxu1 }
 0x61d   : > { %v4706_v61 = vpop.f32.mrf.mxu0 }
 0x61e   : > { %v9844_v22 = vadd.f32 %v4706_v61, %v4623_v3  ;;  %v7498_v3 = vpop.f32.mrf.mxu1 }
 0x61f   : > { %v7412_v9 = vpop.f32.mrf.mxu0 }
 0x620   : > { %10216 = vst [vmem:[#allocation23_spill] sm:$0xff] %v9844_v22  ;;  %v9847_v20 = vsel %vm4715_vm15, %v9844_v22, -1e+30  ;;  %v5705_v60 = vpop.f32.mrf.mxu1 }
 0x621   : > { %v4709_v24 = vpop.f32.mrf.mxu0  ;;  %v4717_v46 = vsel %vm471_vm0, %v9847_v20, -inf }
 0x622   : > { %4718 = vmax.xlane.f32.xlu1 %v4717_v46 }
 0x623   : > { %v7413_v6 = vpop.f32.mrf.mxu0 }
 0x625   : > { %v7428_v49 = vpop.f32.mrf.mxu0 }
 0x626   : > { %v4979_v7 = vadd.f32 %v7428_v49, %v9792_v4 }
 0x627   : > { %v4970_v8 = vpop.f32.mrf.mxu0 }
 0x628   : > { %v4971_v44 = vadd.f32 %v4970_v8, %v9794_v63  ;;  %v5101_v61 = vadd.f32 %v7438_v19, %v4979_v7 }
 0x629   : > { %v7429_v37 = vpop.f32.mrf.mxu0 }
 0x62a   : > { %v4982_v48 = vadd.f32 %v7429_v37, %v9796_v42  ;;  %v5099_v46 = vadd.f32 %v5068_v36, %v4971_v44  ;;  %v7499_v36 = vpop.f32.mrf.mxu1 }
 0x62b   : > { %v4973_v5 = vpop.f32.mrf.mxu0 }
 0x62c   : > { %v4974_v24 = vadd.f32 %v4973_v5, %v9798_v13  ;;  %v5102_v22 = vadd.f32 %v9813_v27, %v4982_v48 }
 0x62d   : > { %v7432_v35 = vpop.f32.mrf.mxu0 }
 0x62e   : > { %v4995_v4 = vadd.f32 %v7432_v35, %v9800_v50  ;;  %v5100_v42 = vadd.f32 %v9815_v55, %v4974_v24 }
 0x62f   : > { %v4986_v34 = vpop.f32.mrf.mxu0 }
 0x630   : > { %v4987_v49 = vadd.f32 %v4986_v34, %v9805_v57  ;;  %v5105_v27 = vadd.f32 %v9817_v43, %v4995_v4 }
 0x631   : > { %v7433_v33 = vpop.f32.mrf.mxu0 }
 0x632   : > { %v4998_v5 = vadd.f32 %v7433_v33, %v9809_v28 }
 0x633   : > { %v4989_v39 = vpop.f32.mrf.mxu0 }
 0x634   : > { %v4990_v57 = vadd.f32 %v4989_v39, %v9811_v62  ;;  %v5106_v28 = vadd.f32 %v9821_v31, %v4998_v5 }
 0x635   : > { %v7448_v32 = vpop.f32.mrf.mxu0 }
 0x636   : > { %v5207_v6 = vadd.f32 %v7448_v32, %v5101_v61  ;;  %v5103_v32 = vadd.f32 %v9819_v40, %v4987_v49  ;;  %v5104_v40 = vadd.f32 %v9823_v18, %v4990_v57 }
 0x637   : > { %v5174_v54 = vpop.f32.mrf.mxu0 }
 0x638   : > { %v5205_v56 = vadd.f32 %v5174_v54, %v5099_v46  ;;  %v5313_v19 = vadd.f32 %v9825_v26, %v5207_v6 }
 0x639   : > { %v7449_v25 = vpop.f32.mrf.mxu0 }
 0x63a   : > { %v5208_v8 = vadd.f32 %v7449_v25, %v5102_v22  ;;  %v5311_v13 = vadd.f32 %v9827_v52, %v5205_v56  ;;  %v5708_v52 = vpop.f32.mrf.mxu1 }
 0x63b   : > { %v5177_v16 = vpop.f32.mrf.mxu0 }
 0x63c   : > { %v5206_v7 = vadd.f32 %v5177_v16, %v5100_v42  ;;  %v5314_v55 = vadd.f32 %v9829_v41, %v5208_v8  ;;  %v7502_v48 = vpop.f32.mrf.mxu1 }
 0x63d   : > { %v7452_v17 = vpop.f32.mrf.mxu0 }
 0x63e   : > { %v5211_v34 = vadd.f32 %v7452_v17, %v5105_v27  ;;  %v5312_v56 = vadd.f32 %v9831_v11, %v5206_v7  ;;  %v5721_v46 = vpop.f32.mrf.mxu1 }
 0x63f   : > { %v5190_v0 = vpop.f32.mrf.mxu0 }
 0x640   : > { %v5209_v26 = vadd.f32 %v5190_v0, %v5103_v32  ;;  %v5317_v39 = vadd.f32 %v9834_v59, %v5211_v34  ;;  %v7503_v7 = vpop.f32.mrf.mxu1 }
 0x641   : > { %v7453_v23 = vpop.f32.mrf.mxu0 }
 0x642   : > { %v5212_v62 = vadd.f32 %v7453_v23, %v5106_v28  ;;  %v5315_v41 = vadd.f32 %v9841_v14, %v5209_v26  ;;  %v5724_v26 = vpop.f32.mrf.mxu1 }
 0x643   : > { %v5193_v15 = vpop.f32.mrf.mxu0 }
 0x644   : > { %v5210_v44 = vadd.f32 %v5193_v15, %v5104_v40  ;;  %v6599_v15 = vld [vmem:[%s10029_s6 + $0x2] ss:$0 sm:$0xff] }
 0x645   : > { %v7468_v2 = vpop.f32.mrf.mxu0 }
 0x646   : > { %v5419_v50 = vadd.f32 %v7468_v2, %v5313_v19  ;;  %v5316_v14 = vadd.f32 %v9853_v38, %v5210_v44 }
 0x647   : > { %v5386_v30 = vpop.f32.mrf.mxu0 }
 0x648   : > { %v5417_v22 = vadd.f32 %v5386_v30, %v5311_v13  ;;  %v5526_v33 = vadd.f32 %v7478_v29, %v5419_v50 }
 0x649   : > { %v7469_v9 = vpop.f32.mrf.mxu0 }
 0x64a   : > { %v5420_v25 = vadd.f32 %v7469_v9, %v5314_v55  ;;  %v5524_v2 = vadd.f32 %v9855_v21, %v5417_v22  ;;  %v5318_v21 = vadd.f32 %v9849_v12, %v5212_v62 }
 0x64b   : > { %v5389_v1 = vpop.f32.mrf.mxu0 }
 0x64c   : > { %v5418_v16 = vadd.f32 %v5389_v1, %v5312_v56  ;;  %v5527_v11 = vadd.f32 %v9857_v45, %v5420_v25 }
 0x64d   : > { %v7472_v63 = vpop.f32.mrf.mxu0 }
 0x64e   : > { %v5423_v31 = vadd.f32 %v7472_v63, %v5317_v39  ;;  %v5525_v1 = vadd.f32 %v9859_v58, %v5418_v16 }
 0x64f   : > { %v5402_v37 = vpop.f32.mrf.mxu0 }
 0x650   : > { %v5421_v29 = vadd.f32 %v5402_v37, %v5315_v41  ;;  %v5530_v4 = vadd.f32 %v9861_v47, %v5423_v31  ;;  %v6600_v31 = vld [vmem:[%s10029_s6 + $0x3] ss:$0 sm:$0xff] }
 0x651   : > { %v7473_v35 = vpop.f32.mrf.mxu0 }
 0x652   : > { %v5424_v6 = vadd.f32 %v7473_v35, %v5318_v21  ;;  %v5528_v49 = vadd.f32 %v9863_v53, %v5421_v29 }
 0x653   : > { %v5405_v54 = vpop.f32.mrf.mxu0 }
 0x654   : > { %v5422_v58 = vadd.f32 %v5405_v54, %v5316_v14 }
 0x655   : > { %v7488_v43 = vpop.f32.mrf.mxu0 }
 0x656   : > { %v5632_v17 = vadd.f32 %v7488_v43, %v5526_v33  ;;  %v5529_v50 = vadd.f32 %v9867_v51, %v5422_v58 }
 0x657   : > { %v5599_v0 = vpop.f32.mrf.mxu0 }
 0x658   : > { %v5630_v30 = vadd.f32 %v5599_v0, %v5524_v2  ;;  %v5738_v23 = vadd.f32 %v7498_v3, %v5632_v17  ;;  %v10217_v17 = vld [vmem:[#allocation70_spill] sm:$0xff] }
 0x659   : > { %v7489_v61 = vpop.f32.mrf.mxu0  ;;  %vm4732_vm7 = vcmp.eq.f32.partialorder %v10217_v17, 0.0  ;;  %vm4734_vm9 = vcmp.eq.f32.partialorder %v10217_v17, 1.0  ;;  %vm4754_vm12 = vcmp.eq.f32.partialorder %v10217_v17, 3.0  ;;  %vm4763_vm15 = vcmp.eq.f32.partialorder %v10217_v17, 4.0 }
 0x65a   : > { %v5736_v9 = vadd.f32 %v5705_v60, %v5630_v30  ;;  %v5633_v18 = vadd.f32 %v7489_v61, %v5527_v11  ;;  %v5751_v8 = vadd.f32 %v6599_v15, %v5738_v23 }
 0x65b   : > { %v5602_v59 = vpop.f32.mrf.mxu0 }
 0x65c   : > { %v5739_v24 = vadd.f32 %v7499_v36, %v5633_v18  ;;  %v5631_v45 = vadd.f32 %v5602_v59, %v5525_v1  ;;  %v5749_v63 = vadd.f32 %v6599_v15, %v5736_v9  ;;  %v5531_v36 = vadd.f32 %v9865_v10, %v5424_v6 }
 0x65d   : > { %v7492_v60 = vpop.f32.mrf.mxu0  ;;  %v5759_v53 = vmax.f32 %v5751_v8, 0.0 }
 0x65e   : > { %v5752_v12 = vadd.f32 %v6599_v15, %v5739_v24  ;;  %v5737_v3 = vadd.f32 %v5708_v52, %v5631_v45  ;;  %v5636_v42 = vadd.f32 %v7492_v60, %v5530_v4  ;;  %v5757_v27 = vmax.f32 %v5749_v63, 0.0 }
 0x65f   : > { %v5615_v38 = vpop.f32.mrf.mxu0 }
 0x660   : > { %v5750_v19 = vadd.f32 %v6599_v15, %v5737_v3  ;;  %v5634_v37 = vadd.f32 %v5615_v38, %v5528_v49  ;;  %v5760_v13 = vmax.f32 %v5752_v12, 0.0  ;;  %v5742_v35 = vadd.f32 %v7502_v48, %v5636_v42 }
 0x661   : > { %v7493_v5 = vpop.f32.mrf.mxu0 }
 0x662   : > { %v5758_v32 = vmax.f32 %v5750_v19, 0.0  ;;  %v5740_v47 = vadd.f32 %v5721_v46, %v5634_v37  ;;  %v5637_v57 = vadd.f32 %v7493_v5, %v5531_v36  ;;  %v5766_v54 = vpack.c.bf16 %v5760_v13, %v5759_v53 }
 0x663   : > { %v5618_v22 = vpop.f32.mrf.mxu0  ;;  %v5755_v10 = vadd.f32 %v6599_v15, %v5742_v35 }
 0x664   : > { %v5765_v55 = vpack.c.bf16 %v5758_v32, %v5757_v27  ;;  %v5635_v34 = vadd.f32 %v5618_v22, %v5529_v50  ;;  %v5743_v25 = vadd.f32 %v7503_v7, %v5637_v57  ;;  %v5753_v56 = vadd.f32 %v6599_v15, %v5740_v47  ;;  %v10219_v57 = vld [vmem:[#allocation23_spill] sm:$0xff] }
 0x665   : > { %v5763_v16 = vmax.f32 %v5755_v10, 0.0  ;;  %v10218_v32 = vlaneseq }
 0x666   : > { %v5741_v52 = vadd.f32 %v5724_v26, %v5635_v34  ;;  %7506 = vmatprep.mubr.msk.bf16.mxu0 %vm2726_vm4, %v5765_v55  ;;  %v5756_v28 = vadd.f32 %v6599_v15, %v5743_v25  ;;  %v5761_v51 = vmax.f32 %v5753_v56, 0.0 }
 0x667   : > { %7507 = vmatmul.mubr.msk.bf16.vlgmr.msra.gmra.mxu0 %vm2726_vm4, %v5766_v54  ;;  %v5904_v47 = vshrl.u32 %v10218_v32, 7 }
 0x668   : > { %v5754_v33 = vadd.f32 %v6599_v15, %v5741_v52  ;;  %v5764_v43 = vmax.f32 %v5756_v28, 0.0 }
 0x669   : > { %v5905_v52 = vsub.s32 0, %v5904_v47 }
 0x66a   : > { %v5762_v40 = vmax.f32 %v5754_v33, 0.0  ;;  %v5768_v62 = vpack.c.bf16 %v5764_v43, %v5763_v16 }
 0x66c   : > { %v5767_v2 = vpack.c.bf16 %v5762_v40, %v5761_v51 }
 0x66e   : > { %7510 = vmatprep.mubr.msk.bf16.mxu0 %vm2726_vm4, %v5767_v2 }
 0x66f   : > { %7511 = vmatmul.mubr.msk.bf16.gmra.mxu0 %vm2726_vm4, %v5768_v62 }
 0x6ab   : > { %v4719_v39 = vpop.xlane.xlu1 %4718 }
 0x6ac   : > { %vm4720_vm1 = vcmp.ge.f32.partialorder %v9847_v20, %v4719_v39  ;;  %v4725_v41 = vsub.f32 %v9847_v20, %v4719_v39 }
 0x6ad   : > { %v4721_v0 = vsel %vm4720_vm1, %v10217_v17, 1e+09 }
 0x6ae   : > { %v4726_v44 = vmul.f32 1.442695, %v4725_v41  ;;  %v4722_v30 = vsel %vm471_vm0, %v4721_v0, inf }
 0x6af   : > { %4723 = vmin.xlane.f32.xlu0 %v4722_v30 }
 0x6b0   : > { %7634 = vpow2.f32 %v4726_v44 }
 0x6bd   : > { %v7635_v11 = vpop.eup %7634 }
 0x6be   : > { %v4728_v48 = vsel %vm471_vm0, %v7635_v11, 0.0 }
 0x6bf   : > { %4729 = vadd.xlane.f32.xlu0 %v4728_v48 }
 0x727   : > { %v7508_v29 = vpop.f32.mrf.mxu0 }
 0x728   : > { %v5833_v61 = vadd.f32 %v7508_v29, %v6600_v31 }
 0x729   : > { %v5824_v9 = vpop.f32.mrf.mxu0 }
 0x72a   : > { %v6607_v18 = vmul.f32 -1.442695, %v5833_v61  ;;  %v5825_v20 = vadd.f32 %v6600_v31, %v5824_v9 }
 0x72b   : > { %v7509_v1 = vpop.f32.mrf.mxu0 }
 0x72c   : > { %7636 = vpow2.f32 %v6607_v18  ;;  %v6605_v21 = vmul.f32 -1.442695, %v5825_v20  ;;  %v5836_v23 = vadd.f32 %v7509_v1, %v6600_v31 }
 0x72d   : > { %v5827_v59 = vpop.f32.mrf.mxu0 }
 0x72e   : > { %7638 = vpow2.f32 %v6605_v21  ;;  %v6608_v14 = vmul.f32 -1.442695, %v5836_v23  ;;  %v5828_v15 = vadd.f32 %v6600_v31, %v5827_v59 }
 0x72f   : > { %v7512_v24 = vpop.f32.mrf.mxu0 }
 0x730   : > { %7640 = vpow2.f32 %v6608_v14  ;;  %v6606_v45 = vmul.f32 -1.442695, %v5828_v15  ;;  %v5849_v46 = vadd.f32 %v7512_v24, %v6600_v31 }
 0x731   : > { %v5840_v6 = vpop.f32.mrf.mxu0 }
 0x732   : > { %7642 = vpow2.f32 %v6606_v45  ;;  %v6611_v4 = vmul.f32 -1.442695, %v5849_v46  ;;  %v5841_v60 = vadd.f32 %v6600_v31, %v5840_v6 }
 0x733   : > { %v7513_v49 = vpop.f32.mrf.mxu0 }
 0x734   : > { %7644 = vpow2.f32 %v6611_v4  ;;  %v6609_v58 = vmul.f32 -1.442695, %v5841_v60  ;;  %v5852_v63 = vadd.f32 %v7513_v49, %v6600_v31 }
 0x735   : > { %v5843_v12 = vpop.f32.mrf.mxu0 }
 0x736   : > { %7646 = vpow2.f32 %v6609_v58  ;;  %v6612_v3 = vmul.f32 -1.442695, %v5852_v63  ;;  %v5844_v8 = vadd.f32 %v6600_v31, %v5843_v12  ;;  %v10222_v63 = vmov 0.0  }
 0x738   : > { %7648 = vpow2.f32 %v6612_v3  ;;  %v6610_v42 = vmul.f32 -1.442695, %v5844_v8  ;;  %v9913_v38 = vpop.xlane.xlu0 %4723 }
 0x739   : > { %v7637_v19 = vpop.eup %7636  ;;  %v4737_v37 = vmul.f32 4.0, %v9913_v38  ;;  %v5906_v16 = vrot.slane %v9913_v38, %v5905_v52 }
 0x73a   : > { %v5881_v7 = vadd.f32 1.0, %v7637_v19  ;;  %7650 = vpow2.f32 %v6610_v42 }
 0x73b   : > { %v7639_v13 = vpop.eup %7638  ;;  %v4738_v36 = vadd.f32 5.0, %v4737_v37  ;;  %vm9928_vm5 = vcmp.eq.f32.partialorder %v10217_v17, %v5906_v16 }
 0x73c   : > { %7652 = vrcp.f32 %v5881_v7  ;;  %v5879_v5 = vadd.f32 1.0, %v7639_v13  ;;  %v4735_v13 = vsel %vm4734_vm9, %v9913_v38, 0.0 }
 0x73d   : > { %v7641_v27 = vpop.eup %7640  ;;  %vm4740_vm2 = vcmp.eq.f32.partialorder %v10217_v17, %v4738_v36  ;;  %v4748_v50 = vadd.f32 1.0, %v4738_v36  ;;  %v4757_v53 = vadd.f32 2.0, %v4738_v36  ;;  %v4766_v61 = vadd.f32 3.0, %v4738_v36 }
 0x73e   : > { %7654 = vrcp.f32 %v5879_v5  ;;  %v5882_v35 = vadd.f32 1.0, %v7641_v27  ;;  %v4741_v22 = vsel %vm4740_vm2, %v10219_v57, 0.0  ;;  %vm4772_vm2 = vcmp.eq.f32.partialorder %v10217_v17, 5.0 }
 0x73f   : > { %v7643_v55 = vpop.eup %7642  ;;  %v4742_v34 = vsel %vm471_vm0, %v4741_v22, 0.0  ;;  %vm4749_vm3 = vcmp.eq.f32.partialorder %v10217_v17, %v4748_v50  ;;  %vm4758_vm4 = vcmp.eq.f32.partialorder %v10217_v17, %v4757_v53  ;;  %vm4767_vm6 = vcmp.eq.f32.partialorder %v10217_v17, %v4766_v61 }
 0x740   : > { %7656 = vrcp.f32 %v5882_v35  ;;  %v5880_v26 = vadd.f32 1.0, %v7643_v55  ;;  %4743 = vadd.xlane.f32.xlu1 %v4742_v34  ;;  %v4750_v54 = vsel %vm4749_vm3, %v10219_v57, 0.0  ;;  %v4759_v25 = vsel %vm4758_vm4, %v10219_v57, 0.0 }
 0x741   : > { %v7645_v56 = vpop.eup %7644  ;;  %v4751_v10 = vsel %vm471_vm0, %v4750_v54, 0.0  ;;  %v4760_v43 = vsel %vm471_vm0, %v4759_v25, 0.0  ;;  %v4768_v59 = vsel %vm4767_vm6, %v10219_v57, 0.0 }
 0x742   : > { %7658 = vrcp.f32 %v5880_v26  ;;  %v5885_v28 = vadd.f32 1.0, %v7645_v56  ;;  %4752 = vadd.xlane.f32.xlu0 %v4751_v10  ;;  %v4769_v24 = vsel %vm471_vm0, %v4768_v59, 0.0  ;;  %vm4745_vm0 = vcmp.eq.f32.partialorder %v10217_v17, 2.0 }
 0x743   : > { %v7647_v33 = vpop.eup %7646 }
 0x744   : > { %7660 = vrcp.f32 %v5885_v28  ;;  %v5883_v51 = vadd.f32 1.0, %v7647_v33  ;;  %4761 = vadd.xlane.f32.xlu1 %v4760_v43 }
 0x745   : > { %v7649_v40 = vpop.eup %7648 }
 0x746   : > { %7662 = vrcp.f32 %v5883_v51  ;;  %v5886_v62 = vadd.f32 1.0, %v7649_v40 }
 0x747   : > { %v7651_v2 = vpop.eup %7650 }
 0x748   : > { %v5884_v39 = vadd.f32 1.0, %v7651_v2  ;;  %v4730_v46 = vpop.xlane.xlu0 %4729 }
 0x749   : > { %v7653_v41 = vpop.eup %7652 }
 0x74a   : > { %7664 = vrcp.f32 %v5884_v39  ;;  %v5910_v44 = vsel %vm9928_vm5, %v7653_v41, 0.0 }
 0x74b   : > { %v7655_v30 = vpop.eup %7654  ;;  %5920 = vadd.xlane.f32.xlu0 %v5910_v44  ;;  %7666 = vrcp.f32 %v5886_v62 }
 0x74c   : > { %v5908_v31 = vsel %vm9928_vm5, %v7655_v30, 0.0  ;;  %7668 = vrcp.f32 %v4730_v46 }
 0x74d   : > { %v7657_v11 = vpop.eup %7656 }
 0x74e   : > { %v5911_v48 = vsel %vm9928_vm5, %v7657_v11, 0.0 }
 0x74f   : > { %v7659_v29 = vpop.eup %7658  ;;  %5922 = vadd.xlane.f32.xlu1 %v5911_v48  ;;  %5916 = vadd.xlane.f32.xlu0 %v5908_v31 }
 0x750   : > { %v5909_v18 = vsel %vm9928_vm5, %v7659_v29, 0.0 }
 0x751   : > { %v7661_v9 = vpop.eup %7660 }
 0x752   : > { %v5914_v20 = vsel %vm9928_vm5, %v7661_v9, 0.0 }
 0x753   : > { %v7663_v1 = vpop.eup %7662  ;;  %5918 = vadd.xlane.f32.xlu1 %v5909_v18  ;;  %5928 = vadd.xlane.f32.xlu0 %v5914_v20 }
 0x754   : > { %v5912_v21 = vsel %vm9928_vm5, %v7663_v1, 0.0 }
 0x757   : > { %v7665_v23 = vpop.eup %7664  ;;  %5924 = vadd.xlane.f32.xlu0 %v5912_v21 }
 0x758   : > { %v5913_v14 = vsel %vm9928_vm5, %v7665_v23, 0.0  ;;  %v7667_v15 = vpop.eup %7666 }
 0x759   : > { %5926 = vadd.xlane.f32.xlu1 %v5913_v14  ;;  %v5915_v45 = vsel %vm9928_vm5, %v7667_v15, 0.0  ;;  %v7669_v60 = vpop.eup %7668 }
 0x75a   : > { %v4733_v3 = vsel %vm4732_vm7, %v7669_v60, 0.0 }
 0x75b   : > { %4770 = vadd.xlane.f32.xlu0 %v4769_v24  ;;  %v4736_v5 = vadd.f32 %v4735_v13, %v4733_v3 }
 0x75d   : > { %5930 = vadd.xlane.f32.xlu1 %v5915_v45 }
 0x7c9   : > { %v4744_v6 = vpop.xlane.xlu1 %4743 }
 0x7ca   : > { %v4746_v36 = vsel %vm4745_vm0, %v4744_v6, 0.0 }
 0x7cb   : > { %v4753_v4 = vpop.xlane.xlu0 %4752  ;;  %v4747_v35 = vadd.f32 %v4746_v36, %v4736_v5 }
 0x7cc   : > { %v4755_v26 = vsel %vm4754_vm12, %v4753_v4, 0.0 }
 0x7cd   : > { %v4762_v49 = vpop.xlane.xlu1 %4761  ;;  %v4756_v33 = vadd.f32 %v4755_v26, %v4747_v35 }
 0x7ce   : > { %v4764_v16 = vsel %vm4763_vm15, %v4762_v49, 0.0 }
 0x7cf   : > { %v4765_v0 = vadd.f32 %v4764_v16, %v4756_v33 }
 0x7d4   : > { %v5921_v58 = vpop.xlane.xlu0 %5920 }
 0x7d5   : > { %vm5934_vm8 = vcmp.gt.f32.partialorder %v5921_v58, 0.5  ;;  %v5958_v8 = vsel %vm4732_vm7, %v5921_v58, 0.0 }
 0x7d6   : > { %v6615_v12 = vsel %vm5934_vm8, 1.0, %v10222_v63 }
 0x7d7   : > { %v5966_v42 = vsel %vm4734_vm9, %v6615_v12, 0.0 }
 0x7d8   : > { %v5974_v19 = vadd.f32 %v5966_v42, %v5958_v8  ;;  %v5923_v37 = vpop.xlane.xlu1 %5922  ;;  %v5917_v7 = vpop.xlane.xlu0 %5916 }
 0x7d9   : > { %vm5935_vm10 = vcmp.gt.f32.partialorder %v5923_v37, 0.5  ;;  %vm5932_vm11 = vcmp.gt.f32.partialorder %v5917_v7, 0.5  ;;  %v5959_v47 = vsel %vm4732_vm7, %v5923_v37, 0.0  ;;  %v5956_v38 = vsel %vm4732_vm7, %v5917_v7, 0.0 }
 0x7da   : > { %5982 = vst [vmem:[%s9961_s11 + $0x10] sm:$0xff] %v5974_v19  ;;  %v6616_v27 = vsel %vm5935_vm10, 1.0, %v10222_v63  ;;  %v6613_v32 = vsel %vm5932_vm11, 1.0, %v10222_v63 }
 0x7db   : > { %v5967_v50 = vsel %vm4734_vm9, %v6616_v27, 0.0  ;;  %v5964_v53 = vsel %vm4734_vm9, %v6613_v32, 0.0 }
 0x7dc   : > { %v5975_v57 = vadd.f32 %v5967_v50, %v5959_v47  ;;  %v5972_v22 = vadd.f32 %v5964_v53, %v5956_v38  ;;  %v5919_v55 = vpop.xlane.xlu1 %5918  ;;  %v5929_v34 = vpop.xlane.xlu0 %5928 }
 0x7dd   : > { %vm5933_vm13 = vcmp.gt.f32.partialorder %v5919_v55, 0.5  ;;  %vm5938_vm14 = vcmp.gt.f32.partialorder %v5929_v34, 0.5  ;;  %v5957_v56 = vsel %vm4732_vm7, %v5919_v55, 0.0  ;;  %v5962_v10 = vsel %vm4732_vm7, %v5929_v34, 0.0 }
 0x7de   : > { %5983 = vst [vmem:[%s9961_s11 + $0x18] sm:$0xff] %v5975_v57  ;;  %5980 = vst [vmem:[%s9961_s11] sm:$0xff] %v5972_v22  ;;  %v6614_v54 = vsel %vm5933_vm13, 1.0, %v10222_v63  ;;  %v6619_v25 = vsel %vm5938_vm14, 1.0, %v10222_v63 }
 0x7df   : > { %v5965_v52 = vsel %vm4734_vm9, %v6614_v54, 0.0  ;;  %v5970_v28 = vsel %vm4734_vm9, %v6619_v25, 0.0 }
 0x7e0   : > { %v5973_v43 = vadd.f32 %v5965_v52, %v5957_v56  ;;  %v5978_v51 = vadd.f32 %v5970_v28, %v5962_v10  ;;  %v5925_v40 = vpop.xlane.xlu0 %5924 }
 0x7e1   : > { %vm5936_vm1 = vcmp.gt.f32.partialorder %v5925_v40, 0.5  ;;  %v5960_v39 = vsel %vm4732_vm7, %v5925_v40, 0.0 }
 0x7e2   : > { %5981 = vst [vmem:[%s9961_s11 + $0x8] sm:$0xff] %v5973_v43  ;;  %5986 = vst [vmem:[%s9961_s11 + $0x30] sm:$0xff] %v5978_v51  ;;  %v6617_v2 = vsel %vm5936_vm1, 1.0, %v10222_v63  ;;  %v5927_v62 = vpop.xlane.xlu1 %5926 }
 0x7e3   : > { %v5968_v41 = vsel %vm4734_vm9, %v6617_v2, 0.0  ;;  %vm5937_vm3 = vcmp.gt.f32.partialorder %v5927_v62, 0.5  ;;  %v5961_v48 = vsel %vm4732_vm7, %v5927_v62, 0.0 }
 0x7e4   : > { %v5976_v44 = vadd.f32 %v5968_v41, %v5960_v39  ;;  %v6618_v30 = vsel %vm5937_vm3, 1.0, %v10222_v63  ;;  %v4771_v11 = vpop.xlane.xlu0 %4770 }
 0x7e5   : > { %v5969_v31 = vsel %vm4734_vm9, %v6618_v30, 0.0  ;;  %v4773_v29 = vsel %vm4772_vm2, %v4771_v11, 0.0 }
 0x7e6   : > { %5984 = vst [vmem:[%s9961_s11 + $0x20] sm:$0xff] %v5976_v44  ;;  %v5977_v61 = vadd.f32 %v5969_v31, %v5961_v48  ;;  %v4774_v9 = vadd.f32 %v4773_v29, %v4765_v0  ;;  %v5931_v18 = vpop.xlane.xlu1 %5930 }
 0x7e7   : > { %vm5939_vm4 = vcmp.gt.f32.partialorder %v5931_v18, 0.5  ;;  %v5963_v1 = vsel %vm4732_vm7, %v5931_v18, 0.0 }
 0x7e8   : > { %5985 = vst [vmem:[%s9961_s11 + $0x28] sm:$0xff] %v5977_v61  ;;  %4775 = vst [vmem:[%s309_s14] sm:$0x1] %v4774_v9  ;;  %v6620_v20 = vsel %vm5939_vm4, 1.0, %v10222_v63 }
 0x7e9   : > { %v5971_v21 = vsel %vm4734_vm9, %v6620_v20, 0.0 }
 0x7ea   : > { %v5979_v23 = vadd.f32 %v5971_v21, %v5963_v1 }
 0x7ec   : > { %5987 = vst [vmem:[%s9961_s11 + $0x38] sm:$0xff] %v5979_v23 }
 0x7ed PF: > { %s19_s27 = sadd.s32 1, %s7711_s27  }
 0x7ee   : > { %p16_p4 = scmp.ge.s32.totalorder %s19_s27, 4  }
 0x7f0   :  { %18 = sbr.rel (!%p16_p4) target bundleno = 1 (0x1), region = 140 }

</bundles_post_ra>
